<compile_context>
chip_gen: v6e
topology: v6e:2x2x1
jax: 0.10.0
libtpu: 0.0.40
codegen_flags: <defaults>
</compile_context>

<pallas_src>
import functools

import jax
import jax.numpy as jnp
from jax.experimental import pallas as pl
from jax.experimental.pallas import tpu as pltpu

_VMEM_LIMIT = 48 * 1024 * 1024


def _round_up(x, m):
    return (x + m - 1) // m * m


# ----------------------------------------------------------------------------
# Pallas kernel 1a: fused GEMM, single K block (K small enough to be resident)
#   O = act(A @ B + shift)     A:(TM,K) bf16  B:(K,CP) bf16  shift:(1,CP) f32
# ----------------------------------------------------------------------------
def _gemm_kernel_single(a_ref, b_ref, shift_ref, o_ref, *, act):
    r = jnp.dot(a_ref[...], b_ref[...], preferred_element_type=jnp.float32)
    r = r + shift_ref[...]
    if act == "leaky":
        r = jnp.where(r >= 0.0, r, 0.2 * r)
    elif act == "sigmoid":
        r = jax.nn.sigmoid(r)
    o_ref[...] = r.astype(o_ref.dtype)


# ----------------------------------------------------------------------------
# Pallas kernel 1b: fused GEMM, K-tiled accumulation with the FULL weight
# matrix resident in VMEM (constant block index); A streams (TM, TK) tiles.
# ----------------------------------------------------------------------------
def _gemm_kernel_ktiled(a_ref, b_ref, shift_ref, o_ref, acc_ref, *, act, tk):
    k = pl.program_id(1)

    @pl.when(k == 0)
    def _():
        acc_ref[...] = jnp.zeros_like(acc_ref)

    start = pl.multiple_of(k * tk, 128)
    acc_ref[...] += jnp.dot(a_ref[...], b_ref[pl.ds(start, tk), :],
                            preferred_element_type=jnp.float32)

    @pl.when(k == pl.num_programs(1) - 1)
    def _():
        r = acc_ref[...] + shift_ref[...]
        if act == "leaky":
            r = jnp.where(r >= 0.0, r, 0.2 * r)
        elif act == "sigmoid":
            r = jax.nn.sigmoid(r)
        o_ref[...] = r.astype(o_ref.dtype)


def _pick_tm(m, cp):
    """Largest divisor-of-M tile <= a CP-dependent target; >= 2 tiles when
    possible so both v7x TensorCores get work.  Returns (TM, padded_M)."""
    base = 2048 if cp <= 256 else 1024
    target = max(8, min(base, max(8, m // 2)))
    for d in range(min(target, m), 7, -1):
        if m % d == 0 and d % 8 == 0:
            return d, m                       # no M padding needed
    tm = min(_round_up(min(base, m), 8), _round_up(m, 8))
    return tm, _round_up(m, tm)


def fused_matmul(a, b_packed, shift, act, out_dtype, k_tile_max=2048):
    """O = act(A @ B + shift).
    a: (M, K) float; b_packed: (K, CP) bf16 with BN scale folded and C zero-
    padded to a multiple of 128; shift: (1, CP) f32.
    Returns an (M, CP) array of out_dtype (caller strips channel padding)."""
    M, K = a.shape
    K2, CP = b_packed.shape
    assert K == K2 and CP % 128 == 0

    TM, MP = _pick_tm(M, CP)
    a_p = a.astype(jnp.bfloat16)
    if MP != M:
        a_p = jnp.pad(a_p, ((0, MP - M), (0, 0)))

    tile_k = (K % 128 == 0) and (K > k_tile_max)

    if not tile_k:
        out = pl.pallas_call(
            functools.partial(_gemm_kernel_single, act=act),
            out_shape=jax.ShapeDtypeStruct((MP, CP), out_dtype),
            grid_spec=pltpu.PrefetchScalarGridSpec(
                num_scalar_prefetch=0,
                grid=(MP // TM,),
                in_specs=[
                    pl.BlockSpec((TM, K), lambda i: (i, 0)),
                    pl.BlockSpec((K, CP), lambda i: (0, 0)),   # resident weights
                    pl.BlockSpec((1, CP), lambda i: (0, 0)),
                ],
                out_specs=pl.BlockSpec((TM, CP), lambda i: (i, 0)),
            ),
            compiler_params=pltpu.CompilerParams(
                dimension_semantics=("parallel",),
                vmem_limit_bytes=_VMEM_LIMIT),
        )(a_p, b_packed, shift)
    else:
        TK = next(t for t in (2048, 1024, 512, 256, 128)
                  if t <= k_tile_max and K % t == 0)
        out = pl.pallas_call(
            functools.partial(_gemm_kernel_ktiled, act=act, tk=TK),
            out_shape=jax.ShapeDtypeStruct((MP, CP), out_dtype),
            grid_spec=pltpu.PrefetchScalarGridSpec(
                num_scalar_prefetch=0,
                grid=(MP // TM, K // TK),
                in_specs=[
                    pl.BlockSpec((TM, TK), lambda i, k: (i, k)),
                    pl.BlockSpec((K, CP), lambda i, k: (0, 0)),  # resident weights
                    pl.BlockSpec((1, CP), lambda i, k: (0, 0)),
                ],
                out_specs=pl.BlockSpec((TM, CP), lambda i, k: (i, 0)),
                scratch_shapes=[pltpu.VMEM((TM, CP), jnp.float32)],
            ),
            compiler_params=pltpu.CompilerParams(
                dimension_semantics=("parallel", "arbitrary"),
                vmem_limit_bytes=_VMEM_LIMIT),
        )(a_p, b_packed, shift)

    return out[:M] if MP != M else out


# ----------------------------------------------------------------------------
# Pallas kernel 2: batch-tiled mean / unbiased variance over the batch axis,
# fused with the final 4x4 conv (a GEMV on NCHW-flattened features) + sigmoid.
# ----------------------------------------------------------------------------
def _stats_final_kernel(x_ref, w_ref, mean_ref, var_ref, sig_ref,
                        sum_ref, sq_ref, *, n_rows, inv_n, inv_nm1):
    i = pl.program_id(0)

    @pl.when(i == 0)
    def _():
        sum_ref[...] = jnp.zeros_like(sum_ref)
        sq_ref[...] = jnp.zeros_like(sq_ref)

    x = x_ref[...]                                        # (TN, F) f32
    sum_ref[...] += jnp.sum(x, axis=0, keepdims=True)
    sq_ref[...] += jnp.sum(x * x, axis=0, keepdims=True)
    sig_ref[...] = jax.nn.sigmoid(
        jnp.dot(x, w_ref[...], preferred_element_type=jnp.float32))

    @pl.when(i == pl.num_programs(0) - 1)
    def _():
        m = sum_ref[...] * inv_n
        mean_ref[...] = m
        var_ref[...] = (sq_ref[...] - n_rows * m * m) * inv_nm1


def stats_and_final(feat, w_col):
    """feat: (N, F) f32 NCHW-flattened features, w_col: (F, 1) f32 final conv
    weight.  Returns per-feature batch mean, unbiased variance, sigmoid."""
    N, F = feat.shape
    TN = N if N <= 512 else 256
    NP = _round_up(N, TN)
    feat_p = feat if NP == N else jnp.pad(feat, ((0, NP - N), (0, 0)))
    # TODO(synk): torch.var(unbiased=True) gives NaN for N==1; we guard to 0.
    inv_nm1 = 1.0 / max(N - 1, 1)
    kernel = functools.partial(_stats_final_kernel, n_rows=float(N),
                               inv_n=1.0 / N, inv_nm1=inv_nm1)
    mean, var, sig = pl.pallas_call(
        kernel,
        out_shape=(jax.ShapeDtypeStruct((1, F), jnp.float32),
                   jax.ShapeDtypeStruct((1, F), jnp.float32),
                   jax.ShapeDtypeStruct((NP, 1), jnp.float32)),
        grid_spec=pltpu.PrefetchScalarGridSpec(
            num_scalar_prefetch=0,
            grid=(NP // TN,),
            in_specs=[pl.BlockSpec((TN, F), lambda i: (i, 0)),
                      pl.BlockSpec((F, 1), lambda i: (0, 0))],
            out_specs=(pl.BlockSpec((1, F), lambda i: (0, 0)),
                       pl.BlockSpec((1, F), lambda i: (0, 0)),
                       pl.BlockSpec((TN, 1), lambda i: (i, 0))),
            scratch_shapes=[pltpu.VMEM((1, F), jnp.float32),
                            pltpu.VMEM((1, F), jnp.float32)],
        ),
        compiler_params=pltpu.CompilerParams(
            dimension_semantics=("arbitrary",),
            vmem_limit_bytes=_VMEM_LIMIT),
    )(feat_p, w_col)
    return mean.reshape(F), var.reshape(F), sig[:N]


# ----------------------------------------------------------------------------
# Plain-JAX glue: im2col (NHWC), BN folding, one-time weight packing
# ----------------------------------------------------------------------------
def im2col_nhwc(x, k, s, p):
    """x: (N,H,W,C) -> (N*Ho*Wo, C*k*k) with (C, kh, kw) feature ordering."""
    N, H, W, C = x.shape
    xp = jnp.pad(x, ((0, 0), (p, p), (p, p), (0, 0)))
    Ho = (H + 2 * p - k) // s + 1
    Wo = (W + 2 * p - k) // s + 1
    cols = []
    for i in range(k):
        for j in range(k):
            cols.append(xp[:, i:i + s * Ho:s, j:j + s * Wo:s, :])   # (N,Ho,Wo,C)
    pat = jnp.stack(cols, axis=3)                 # (N, Ho, Wo, k*k, C)
    pat = jnp.transpose(pat, (0, 1, 2, 4, 3))     # (N, Ho, Wo, C, k*k)
    return pat.reshape(N * Ho * Wo, C * k * k), Ho, Wo


def conv_layer(x_nhwc, b_packed, shift, c_out, act, out_dtype):
    """Strided 4x4/s2/p1 conv lowered to im2col + fused Pallas GEMM."""
    # TODO(synk): patch gather is done by XLA here instead of in-kernel.
    N = x_nhwc.shape[0]
    a, Ho, Wo = im2col_nhwc(x_nhwc, 4, 2, 1)
    out = fused_matmul(a, b_packed, shift, act, out_dtype)
    if out.shape[1] != c_out:
        out = out[:, :c_out]
    return out.reshape(N, Ho, Wo, c_out)


def bn_fold(gamma, beta, running_mean, running_var, eps=1e-5):
    scale = gamma / jnp.sqrt(running_var + eps)
    shift = beta - running_mean * scale
    return scale, shift


def pack_conv_weights(w_oihw, scale=None, shift=None):
    """(C_out, C_in, 4, 4) -> resident-ready (C_in*16, CP) bf16 + (1, CP) f32."""
    c_out = w_oihw.shape[0]
    cp = _round_up(c_out, 128)
    b = w_oihw.reshape(c_out, -1).T.astype(jnp.float32)     # (C_in*16, C_out)
    if scale is not None:
        b = b * scale[None, :]                              # fold BN scale
    b = jnp.pad(b, ((0, 0), (0, cp - c_out))).astype(jnp.bfloat16)
    if shift is None:
        shift = jnp.zeros((c_out,), jnp.float32)
    shift = jnp.pad(shift.astype(jnp.float32), (0, cp - c_out)).reshape(1, cp)
    return b, shift


def pack_params(params):
    """One-time (outside the jitted forward) weight packing."""
    packed = {}
    packed["b1"], packed["s1"] = pack_conv_weights(params["w1"])
    for idx, wname in ((2, "w2"), (3, "w3"), (4, "w4")):
        sc, sh = bn_fold(params[f"bn{idx}_gamma"], params[f"bn{idx}_beta"],
                         params[f"bn{idx}_mean"], params[f"bn{idx}_var"])
        packed[f"b{idx}"], packed[f"s{idx}"] = pack_conv_weights(
            params[wname], sc, sh)
    packed["wf_col"] = params["wf"].reshape(1, -1).T.astype(jnp.float32)  # (F,1)
    return packed


def init_params(key, nc=1, ndf=8):
    keys = jax.random.split(key, 11)
    w = lambda k, shape: (0.02 * jax.random.normal(k, shape)).astype(jnp.float32)
    params = {
        "w1": w(keys[0], (ndf, nc, 4, 4)),
        "w2": w(keys[1], (ndf * 2, ndf, 4, 4)),
        "w3": w(keys[2], (ndf * 4, ndf * 2, 4, 4)),
        "w4": w(keys[3], (ndf * 8, ndf * 4, 4, 4)),
        "wf": w(keys[4], (1, ndf * 8, 4, 4)),
    }
    ki = 5
    for idx, c in zip((2, 3, 4), (ndf * 2, ndf * 4, ndf * 8)):
        params[f"bn{idx}_gamma"] = (
            1.0 + 0.1 * jax.random.normal(keys[ki], (c,))).astype(jnp.float32)
        params[f"bn{idx}_beta"] = (
            0.1 * jax.random.normal(keys[ki + 1], (c,))).astype(jnp.float32)
        params[f"bn{idx}_mean"] = jnp.zeros((c,), jnp.float32)
        params[f"bn{idx}_var"] = jnp.ones((c,), jnp.float32)
        ki += 2
    return params


# ----------------------------------------------------------------------------
# Forward pass (mirrors Discriminator.forward, eval mode)
# ----------------------------------------------------------------------------
def discriminator_forward(packed, x_nchw, nc=1, ndf=64):
    N = x_nchw.shape[0]
    x = jnp.transpose(x_nchw, (0, 2, 3, 1)).astype(jnp.bfloat16)   # NCHW -> NHWC

    # Conv(nc->ndf) + LeakyReLU(0.2)            [Dropout(0.5) = identity in eval]
    x = conv_layer(x, packed["b1"], packed["s1"], ndf, "leaky", jnp.bfloat16)
    # Conv(ndf->2ndf) + BN + LeakyReLU
    x = conv_layer(x, packed["b2"], packed["s2"], ndf * 2, "leaky", jnp.bfloat16)
    # Conv(2ndf->4ndf) + BN + LeakyReLU         [Dropout(0.5) = identity]
    x = conv_layer(x, packed["b3"], packed["s3"], ndf * 4, "leaky", jnp.bfloat16)
    # Conv(4ndf->8ndf) + BN + LeakyReLU         [Dropout(0.25) = identity]
    features_nhwc = conv_layer(x, packed["b4"], packed["s4"], ndf * 8,
                               "leaky", jnp.float32)

    # feat_out = features.view(N, -1)  (PyTorch flattens in NCHW order)
    features_nchw = jnp.transpose(features_nhwc, (0, 3, 1, 2))     # (N, 8ndf, 4, 4)
    feat_out = features_nchw.reshape(N, -1)

    # Final Conv(8ndf->1, 4, 1, 0) on a 4x4 map == GEMV on the NCHW-flattened
    # features -> fused with the batch-stats kernel, followed by sigmoid.
    feat_mean, feat_var, sig = stats_and_final(feat_out, packed["wf_col"])
    sig_out = sig.reshape(N, 1, 1, 1)
    return sig_out, (feat_out, feat_mean, feat_var)


# ----------------------------------------------------------------------------
# Pure-JAX f32 reference (for a loose-tolerance correctness check)
# ----------------------------------------------------------------------------
def reference_forward(params, x):
    dn = ("NCHW", "OIHW", "NCHW")
    hp = jax.lax.Precision.HIGHEST

    def conv(h, w, s, p):
        return jax.lax.conv_general_dilated(
            h, w, (s, s), [(p, p), (p, p)], dimension_numbers=dn, precision=hp)

    def bn(h, g, b, m, v, eps=1e-5):
        sc = g / jnp.sqrt(v + eps)
        return h * sc[None, :, None, None] + (b - m * sc)[None, :, None, None]

    lrelu = lambda h: jnp.where(h >= 0, h, 0.2 * h)
    h = lrelu(conv(x, params["w1"], 2, 1))
    h = lrelu(bn(conv(h, params["w2"], 2, 1), params["bn2_gamma"],
                 params["bn2_beta"], params["bn2_mean"], params["bn2_var"]))
    h = lrelu(bn(conv(h, params["w3"], 2, 1), params["bn3_gamma"],
                 params["bn3_beta"], params["bn3_mean"], params["bn3_var"]))
    h = lrelu(bn(conv(h, params["w4"], 2, 1), params["bn4_gamma"],
                 params["bn4_beta"], params["bn4_mean"], params["bn4_var"]))
    feat = h.reshape(h.shape[0], -1)
    mean = jnp.mean(feat, axis=0)
    var = jnp.var(feat, axis=0, ddof=1)
    sig = jax.nn.sigmoid(conv(h, params["wf"], 1, 0))
    return sig, feat, mean, var


# ----------------------------------------------------------------------------
if __name__ == "__main__":
    NC, NDF = 1, 8          # small ndf for a quick synthetic run (module default 64)
    key = jax.random.PRNGKey(0)
    k_param, k_x, k_a, k_b = jax.random.split(key, 4)
    params = init_params(k_param, nc=NC, ndf=NDF)

    # Input spatial must be 64 so the 4 stride-2 stages leave a 4x4 map for the
    # final 4x4/s1/p0 conv, exactly as the PyTorch module assumes.
    x = jax.random.normal(k_x, (2, NC, 64, 64), dtype=jnp.float32)

    packed = pack_params(params)        # one-time weight packing (outside jit)
    fwd = jax.jit(functools.partial(discriminator_forward, nc=NC, ndf=NDF))
    sig, (feat, feat_mean, feat_var) = jax.block_until_ready(fwd(packed, x))

    F = NDF * 8 * 4 * 4
    assert sig.shape == (2, 1, 1, 1)
    assert feat.shape == (2, F)
    assert feat_mean.shape == (F,) and feat_var.shape == (F,)
    assert bool(jnp.all(jnp.isfinite(sig))) and bool(jnp.all(jnp.isfinite(feat)))

    # Loose-tolerance check vs a pure-JAX f32 reference (bf16 MXU inputs).
    r_sig, r_feat, r_mean, r_var = reference_forward(params, x)

    def close(a, b, frac, floor):
        tol = frac * float(jnp.max(jnp.abs(b))) + floor
        return float(jnp.max(jnp.abs(a.reshape(-1) - b.reshape(-1)))) <= tol

    assert close(sig, r_sig, 0.0, 3e-2)
    assert close(feat, r_feat, 5e-2, 1e-3)
    assert close(feat_mean, r_mean, 5e-2, 1e-3)
    assert close(feat_var, r_var, 2e-1, 1e-3)

    # Also exercise the K-tiled (resident-B + VMEM accumulator) GEMM path.
    a_t = jax.random.normal(k_a, (264, 640), dtype=jnp.float32)
    b_t = jax.random.normal(k_b, (640, 128), dtype=jnp.float32).astype(jnp.bfloat16)
    s_t = jnp.zeros((1, 128), jnp.float32)
    got = jax.jit(functools.partial(
        fused_matmul, act="leaky", out_dtype=jnp.float32, k_tile_max=256)
    )(a_t, b_t, s_t)
    got = jax.block_until_ready(got)
    ref = jnp.dot(a_t.astype(jnp.bfloat16).astype(jnp.float32),
                  b_t.astype(jnp.float32), precision=jax.lax.Precision.HIGHEST)
    ref = jnp.where(ref >= 0, ref, 0.2 * ref)
    assert float(jnp.max(jnp.abs(got - ref))) <= 1e-2

    print("KERNEL_OK")
</pallas_src>

<mosaic_0001>
module attributes {stable_mosaic.version = 11 : i64} {
  func.func @_gemm_kernel_single(%arg0: i32, %arg1: memref<1024x16xbf16, #tpu.memory_space<vmem>>, %arg2: memref<16x128xbf16, #tpu.memory_space<vmem>>, %arg3: memref<1x128xf32, #tpu.memory_space<vmem>>, %arg4: memref<1024x128xbf16, #tpu.memory_space<vmem>>) attributes {dimension_semantics = [#tpu.dimension_semantics<parallel>], iteration_bounds = array<i64: 2>, scalar_prefetch = 0 : i64, scratch_operands = 0 : i64, tpu.core_type = #tpu.core_type<tc>, window_params = [{transform_indices = @transform_0, window_bounds = array<i64: 1024, 16>}, {pipeline_mode = #tpu.pipeline_mode<synchronous>, transform_indices = @transform_1, window_bounds = array<i64: 16, 128>}, {pipeline_mode = #tpu.pipeline_mode<synchronous>, transform_indices = @transform_2, window_bounds = array<i64: 1, 128>}, {transform_indices = @transform_3, window_bounds = array<i64: 1024, 128>}]} {
    %c0 = arith.constant 0 : index
    %c0_0 = arith.constant 0 : index
    %0 = vector.load %arg1[%c0, %c0_0] : memref<1024x16xbf16, #tpu.memory_space<vmem>>, vector<1024x16xbf16>
    %c0_1 = arith.constant 0 : index
    %c0_2 = arith.constant 0 : index
    %1 = vector.load %arg2[%c0_1, %c0_2] : memref<16x128xbf16, #tpu.memory_space<vmem>>, vector<16x128xbf16>
    %cst = arith.constant dense<0.000000e+00> : vector<1024x128xf32>
    %2 = tpu.matmul %0, %1, %cst {dimension_numbers = #tpu.dot_dimension_numbers<[1], [0], [0], [1], [0, 0, 1, 1], [], []>} : vector<1024x16xbf16>, vector<16x128xbf16>, vector<1024x128xf32> -> vector<1024x128xf32>
    %c0_3 = arith.constant 0 : index
    %c0_4 = arith.constant 0 : index
    %3 = vector.load %arg3[%c0_3, %c0_4] : memref<1x128xf32, #tpu.memory_space<vmem>>, vector<1x128xf32>
    %4 = vector.broadcast %3 : vector<1x128xf32> to vector<1024x128xf32>
    %5 = arith.addf %2, %4 : vector<1024x128xf32>
    %cst_5 = arith.constant 0.000000e+00 : f32
    %6 = vector.broadcast %cst_5 : f32 to vector<1024x128xf32>
    %7 = arith.cmpf oge, %5, %6 : vector<1024x128xf32>
    %cst_6 = arith.constant 2.000000e-01 : f32
    %8 = vector.broadcast %cst_6 : f32 to vector<1024x128xf32>
    %9 = arith.mulf %8, %5 : vector<1024x128xf32>
    %10 = arith.select %7, %5, %9 : vector<1024x128xi1>, vector<1024x128xf32>
    %11 = arith.truncf %10 : vector<1024x128xf32> to vector<1024x128xbf16>
    %c0_7 = arith.constant 0 : index
    %c0_8 = arith.constant 0 : index
    %12 = vector.load %arg4[%c0_7, %c0_8] : memref<1024x128xbf16, #tpu.memory_space<vmem>>, vector<1024x128xbf16>
    tpu.vector_store %arg4[%c0_7, %c0_8], %11 {strides = array<i32>} : memref<1024x128xbf16, #tpu.memory_space<vmem>>, vector<1024x128xbf16>,
    return
  }
  func.func @transform_0(%arg0: i32) -> (i32, i32) {
    %c0_i32 = arith.constant 0 : i32
    %c0_i32_0 = arith.constant 0 : i32
    return %arg0, %c0_i32 : i32, i32
  }
  func.func @transform_1(%arg0: i32) -> (i32, i32) {
    %c0_i32 = arith.constant 0 : i32
    %c0_i32_0 = arith.constant 0 : i32
    %c0_i32_1 = arith.constant 0 : i32
    return %c0_i32, %c0_i32_0 : i32, i32
  }
  func.func @transform_2(%arg0: i32) -> (i32, i32) {
    %c0_i32 = arith.constant 0 : i32
    %c0_i32_0 = arith.constant 0 : i32
    %c0_i32_1 = arith.constant 0 : i32
    return %c0_i32, %c0_i32_0 : i32, i32
  }
  func.func @transform_3(%arg0: i32) -> (i32, i32) {
    %c0_i32 = arith.constant 0 : i32
    %c0_i32_0 = arith.constant 0 : i32
    return %arg0, %c0_i32 : i32, i32
  }
}

module attributes {stable_mosaic.version = 11 : i64} {
  func.func @_gemm_kernel_single(%arg0: i32, %arg1: memref<256x128xbf16, #tpu.memory_space<vmem>>, %arg2: memref<128x128xbf16, #tpu.memory_space<vmem>>, %arg3: memref<1x128xf32, #tpu.memory_space<vmem>>, %arg4: memref<256x128xbf16, #tpu.memory_space<vmem>>) attributes {dimension_semantics = [#tpu.dimension_semantics<parallel>], iteration_bounds = array<i64: 2>, scalar_prefetch = 0 : i64, scratch_operands = 0 : i64, tpu.core_type = #tpu.core_type<tc>, window_params = [{transform_indices = @transform_0, window_bounds = array<i64: 256, 128>}, {pipeline_mode = #tpu.pipeline_mode<synchronous>, transform_indices = @transform_1, window_bounds = array<i64: 128, 128>}, {pipeline_mode = #tpu.pipeline_mode<synchronous>, transform_indices = @transform_2, window_bounds = array<i64: 1, 128>}, {transform_indices = @transform_3, window_bounds = array<i64: 256, 128>}]} {
    %c0 = arith.constant 0 : index
    %c0_0 = arith.constant 0 : index
    %0 = vector.load %arg1[%c0, %c0_0] : memref<256x128xbf16, #tpu.memory_space<vmem>>, vector<256x128xbf16>
    %c0_1 = arith.constant 0 : index
    %c0_2 = arith.constant 0 : index
    %1 = vector.load %arg2[%c0_1, %c0_2] : memref<128x128xbf16, #tpu.memory_space<vmem>>, vector<128x128xbf16>
    %cst = arith.constant dense<0.000000e+00> : vector<256x128xf32>
    %2 = tpu.matmul %0, %1, %cst {dimension_numbers = #tpu.dot_dimension_numbers<[1], [0], [0], [1], [0, 0, 1, 1], [], []>} : vector<256x128xbf16>, vector<128x128xbf16>, vector<256x128xf32> -> vector<256x128xf32>
    %c0_3 = arith.constant 0 : index
    %c0_4 = arith.constant 0 : index
    %3 = vector.load %arg3[%c0_3, %c0_4] : memref<1x128xf32, #tpu.memory_space<vmem>>, vector<1x128xf32>
    %4 = vector.broadcast %3 : vector<1x128xf32> to vector<256x128xf32>
    %5 = arith.addf %2, %4 : vector<256x128xf32>
    %cst_5 = arith.constant 0.000000e+00 : f32
    %6 = vector.broadcast %cst_5 : f32 to vector<256x128xf32>
    %7 = arith.cmpf oge, %5, %6 : vector<256x128xf32>
    %cst_6 = arith.constant 2.000000e-01 : f32
    %8 = vector.broadcast %cst_6 : f32 to vector<256x128xf32>
    %9 = arith.mulf %8, %5 : vector<256x128xf32>
    %10 = arith.select %7, %5, %9 : vector<256x128xi1>, vector<256x128xf32>
    %11 = arith.truncf %10 : vector<256x128xf32> to vector<256x128xbf16>
    %c0_7 = arith.constant 0 : index
    %c0_8 = arith.constant 0 : index
    %12 = vector.load %arg4[%c0_7, %c0_8] : memref<256x128xbf16, #tpu.memory_space<vmem>>, vector<256x128xbf16>
    tpu.vector_store %arg4[%c0_7, %c0_8], %11 {strides = array<i32>} : memref<256x128xbf16, #tpu.memory_space<vmem>>, vector<256x128xbf16>,
    return
  }
  func.func @transform_0(%arg0: i32) -> (i32, i32) {
    %c0_i32 = arith.constant 0 : i32
    %c0_i32_0 = arith.constant 0 : i32
    return %arg0, %c0_i32 : i32, i32
  }
  func.func @transform_1(%arg0: i32) -> (i32, i32) {
    %c0_i32 = arith.constant 0 : i32
    %c0_i32_0 = arith.constant 0 : i32
    %c0_i32_1 = arith.constant 0 : i32
    return %c0_i32, %c0_i32_0 : i32, i32
  }
  func.func @transform_2(%arg0: i32) -> (i32, i32) {
    %c0_i32 = arith.constant 0 : i32
    %c0_i32_0 = arith.constant 0 : i32
    %c0_i32_1 = arith.constant 0 : i32
    return %c0_i32, %c0_i32_0 : i32, i32
  }
  func.func @transform_3(%arg0: i32) -> (i32, i32) {
    %c0_i32 = arith.constant 0 : i32
    %c0_i32_0 = arith.constant 0 : i32
    return %arg0, %c0_i32 : i32, i32
  }
}

module attributes {stable_mosaic.version = 11 : i64} {
  func.func @_gemm_kernel_single(%arg0: i32, %arg1: memref<64x256xbf16, #tpu.memory_space<vmem>>, %arg2: memref<256x128xbf16, #tpu.memory_space<vmem>>, %arg3: memref<1x128xf32, #tpu.memory_space<vmem>>, %arg4: memref<64x128xbf16, #tpu.memory_space<vmem>>) attributes {dimension_semantics = [#tpu.dimension_semantics<parallel>], iteration_bounds = array<i64: 2>, scalar_prefetch = 0 : i64, scratch_operands = 0 : i64, tpu.core_type = #tpu.core_type<tc>, window_params = [{transform_indices = @transform_0, window_bounds = array<i64: 64, 256>}, {pipeline_mode = #tpu.pipeline_mode<synchronous>, transform_indices = @transform_1, window_bounds = array<i64: 256, 128>}, {pipeline_mode = #tpu.pipeline_mode<synchronous>, transform_indices = @transform_2, window_bounds = array<i64: 1, 128>}, {transform_indices = @transform_3, window_bounds = array<i64: 64, 128>}]} {
    %c0 = arith.constant 0 : index
    %c0_0 = arith.constant 0 : index
    %0 = vector.load %arg1[%c0, %c0_0] : memref<64x256xbf16, #tpu.memory_space<vmem>>, vector<64x256xbf16>
    %c0_1 = arith.constant 0 : index
    %c0_2 = arith.constant 0 : index
    %1 = vector.load %arg2[%c0_1, %c0_2] : memref<256x128xbf16, #tpu.memory_space<vmem>>, vector<256x128xbf16>
    %cst = arith.constant dense<0.000000e+00> : vector<64x128xf32>
    %2 = tpu.matmul %0, %1, %cst {dimension_numbers = #tpu.dot_dimension_numbers<[1], [0], [0], [1], [0, 0, 1, 1], [], []>} : vector<64x256xbf16>, vector<256x128xbf16>, vector<64x128xf32> -> vector<64x128xf32>
    %c0_3 = arith.constant 0 : index
    %c0_4 = arith.constant 0 : index
    %3 = vector.load %arg3[%c0_3, %c0_4] : memref<1x128xf32, #tpu.memory_space<vmem>>, vector<1x128xf32>
    %4 = vector.broadcast %3 : vector<1x128xf32> to vector<64x128xf32>
    %5 = arith.addf %2, %4 : vector<64x128xf32>
    %cst_5 = arith.constant 0.000000e+00 : f32
    %6 = vector.broadcast %cst_5 : f32 to vector<64x128xf32>
    %7 = arith.cmpf oge, %5, %6 : vector<64x128xf32>
    %cst_6 = arith.constant 2.000000e-01 : f32
    %8 = vector.broadcast %cst_6 : f32 to vector<64x128xf32>
    %9 = arith.mulf %8, %5 : vector<64x128xf32>
    %10 = arith.select %7, %5, %9 : vector<64x128xi1>, vector<64x128xf32>
    %11 = arith.truncf %10 : vector<64x128xf32> to vector<64x128xbf16>
    %c0_7 = arith.constant 0 : index
    %c0_8 = arith.constant 0 : index
    %12 = vector.load %arg4[%c0_7, %c0_8] : memref<64x128xbf16, #tpu.memory_space<vmem>>, vector<64x128xbf16>
    tpu.vector_store %arg4[%c0_7, %c0_8], %11 {strides = array<i32>} : memref<64x128xbf16, #tpu.memory_space<vmem>>, vector<64x128xbf16>,
    return
  }
  func.func @transform_0(%arg0: i32) -> (i32, i32) {
    %c0_i32 = arith.constant 0 : i32
    %c0_i32_0 = arith.constant 0 : i32
    return %arg0, %c0_i32 : i32, i32
  }
  func.func @transform_1(%arg0: i32) -> (i32, i32) {
    %c0_i32 = arith.constant 0 : i32
    %c0_i32_0 = arith.constant 0 : i32
    %c0_i32_1 = arith.constant 0 : i32
    return %c0_i32, %c0_i32_0 : i32, i32
  }
  func.func @transform_2(%arg0: i32) -> (i32, i32) {
    %c0_i32 = arith.constant 0 : i32
    %c0_i32_0 = arith.constant 0 : i32
    %c0_i32_1 = arith.constant 0 : i32
    return %c0_i32, %c0_i32_0 : i32, i32
  }
  func.func @transform_3(%arg0: i32) -> (i32, i32) {
    %c0_i32 = arith.constant 0 : i32
    %c0_i32_0 = arith.constant 0 : i32
    return %arg0, %c0_i32 : i32, i32
  }
}

module attributes {stable_mosaic.version = 11 : i64} {
  func.func @_gemm_kernel_single(%arg0: i32, %arg1: memref<16x512xbf16, #tpu.memory_space<vmem>>, %arg2: memref<512x128xbf16, #tpu.memory_space<vmem>>, %arg3: memref<1x128xf32, #tpu.memory_space<vmem>>, %arg4: memref<16x128xf32, #tpu.memory_space<vmem>>) attributes {dimension_semantics = [#tpu.dimension_semantics<parallel>], iteration_bounds = array<i64: 2>, scalar_prefetch = 0 : i64, scratch_operands = 0 : i64, tpu.core_type = #tpu.core_type<tc>, window_params = [{transform_indices = @transform_0, window_bounds = array<i64: 16, 512>}, {pipeline_mode = #tpu.pipeline_mode<synchronous>, transform_indices = @transform_1, window_bounds = array<i64: 512, 128>}, {pipeline_mode = #tpu.pipeline_mode<synchronous>, transform_indices = @transform_2, window_bounds = array<i64: 1, 128>}, {transform_indices = @transform_3, window_bounds = array<i64: 16, 128>}]} {
    %c0 = arith.constant 0 : index
    %c0_0 = arith.constant 0 : index
    %0 = vector.load %arg1[%c0, %c0_0] : memref<16x512xbf16, #tpu.memory_space<vmem>>, vector<16x512xbf16>
    %c0_1 = arith.constant 0 : index
    %c0_2 = arith.constant 0 : index
    %1 = vector.load %arg2[%c0_1, %c0_2] : memref<512x128xbf16, #tpu.memory_space<vmem>>, vector<512x128xbf16>
    %cst = arith.constant dense<0.000000e+00> : vector<16x128xf32>
    %2 = tpu.matmul %0, %1, %cst {dimension_numbers = #tpu.dot_dimension_numbers<[1], [0], [0], [1], [0, 0, 1, 1], [], []>} : vector<16x512xbf16>, vector<512x128xbf16>, vector<16x128xf32> -> vector<16x128xf32>
    %c0_3 = arith.constant 0 : index
    %c0_4 = arith.constant 0 : index
    %3 = vector.load %arg3[%c0_3, %c0_4] : memref<1x128xf32, #tpu.memory_space<vmem>>, vector<1x128xf32>
    %4 = vector.broadcast %3 : vector<1x128xf32> to vector<16x128xf32>
    %5 = arith.addf %2, %4 : vector<16x128xf32>
    %cst_5 = arith.constant 0.000000e+00 : f32
    %6 = vector.broadcast %cst_5 : f32 to vector<16x128xf32>
    %7 = arith.cmpf oge, %5, %6 : vector<16x128xf32>
    %cst_6 = arith.constant 2.000000e-01 : f32
    %8 = vector.broadcast %cst_6 : f32 to vector<16x128xf32>
    %9 = arith.mulf %8, %5 : vector<16x128xf32>
    %10 = arith.select %7, %5, %9 : vector<16x128xi1>, vector<16x128xf32>
    %c0_7 = arith.constant 0 : index
    %c0_8 = arith.constant 0 : index
    %11 = vector.load %arg4[%c0_7, %c0_8] : memref<16x128xf32, #tpu.memory_space<vmem>>, vector<16x128xf32>
    tpu.vector_store %arg4[%c0_7, %c0_8], %10 {strides = array<i32>} : memref<16x128xf32, #tpu.memory_space<vmem>>, vector<16x128xf32>,
    return
  }
  func.func @transform_0(%arg0: i32) -> (i32, i32) {
    %c0_i32 = arith.constant 0 : i32
    %c0_i32_0 = arith.constant 0 : i32
    return %arg0, %c0_i32 : i32, i32
  }
  func.func @transform_1(%arg0: i32) -> (i32, i32) {
    %c0_i32 = arith.constant 0 : i32
    %c0_i32_0 = arith.constant 0 : i32
    %c0_i32_1 = arith.constant 0 : i32
    return %c0_i32, %c0_i32_0 : i32, i32
  }
  func.func @transform_2(%arg0: i32) -> (i32, i32) {
    %c0_i32 = arith.constant 0 : i32
    %c0_i32_0 = arith.constant 0 : i32
    %c0_i32_1 = arith.constant 0 : i32
    return %c0_i32, %c0_i32_0 : i32, i32
  }
  func.func @transform_3(%arg0: i32) -> (i32, i32) {
    %c0_i32 = arith.constant 0 : i32
    %c0_i32_0 = arith.constant 0 : i32
    return %arg0, %c0_i32 : i32, i32
  }
}

module attributes {stable_mosaic.version = 11 : i64} {
  func.func @_stats_final_kernel(%arg0: i32, %arg1: memref<2x1024xf32, #tpu.memory_space<vmem>>, %arg2: memref<1024x1xf32, #tpu.memory_space<vmem>>, %arg3: memref<1x1024xf32, #tpu.memory_space<vmem>>, %arg4: memref<1x1024xf32, #tpu.memory_space<vmem>>, %arg5: memref<2x1xf32, #tpu.memory_space<vmem>>, %arg6: memref<1x1024xf32, #tpu.memory_space<vmem>>, %arg7: memref<1x1024xf32, #tpu.memory_space<vmem>>) attributes {dimension_semantics = [#tpu.dimension_semantics<arbitrary>], iteration_bounds = array<i64: 1>, scalar_prefetch = 0 : i64, scratch_operands = 2 : i64, tpu.core_type = #tpu.core_type<tc>, window_params = [{transform_indices = @transform_0, window_bounds = array<i64: 2, 1024>}, {pipeline_mode = #tpu.pipeline_mode<synchronous>, transform_indices = @transform_1, window_bounds = array<i64: 1024, 1>}, {pipeline_mode = #tpu.pipeline_mode<synchronous>, transform_indices = @transform_2, window_bounds = array<i64: 1, 1024>}, {pipeline_mode = #tpu.pipeline_mode<synchronous>, transform_indices = @transform_3, window_bounds = array<i64: 1, 1024>}, {transform_indices = @transform_4, window_bounds = array<i64: 2, 1>}]} {
    %c0_i32 = arith.constant 0 : i32
    %0 = arith.cmpi eq, %arg0, %c0_i32 : i32
    %1 = arith.extui %0 : i1 to i32
    %c0_i32_0 = arith.constant 0 : i32
    %2 = arith.cmpi ne, %1, %c0_i32_0 : i32
    scf.if %2 {
      %cst_19 = arith.constant 0.000000e+00 : f32
      %26 = vector.broadcast %cst_19 : f32 to vector<1x1024xf32>
      %c0_20 = arith.constant 0 : index
      %c0_21 = arith.constant 0 : index
      %27 = vector.load %arg6[%c0_20, %c0_21] : memref<1x1024xf32, #tpu.memory_space<vmem>>, vector<1x1024xf32>
      tpu.vector_store %arg6[%c0_20, %c0_21], %26 {strides = array<i32>} : memref<1x1024xf32, #tpu.memory_space<vmem>>, vector<1x1024xf32>,
      %cst_22 = arith.constant 0.000000e+00 : f32
      %28 = vector.broadcast %cst_22 : f32 to vector<1x1024xf32>
      %c0_23 = arith.constant 0 : index
      %c0_24 = arith.constant 0 : index
      %29 = vector.load %arg7[%c0_23, %c0_24] : memref<1x1024xf32, #tpu.memory_space<vmem>>, vector<1x1024xf32>
      tpu.vector_store %arg7[%c0_23, %c0_24], %28 {strides = array<i32>} : memref<1x1024xf32, #tpu.memory_space<vmem>>, vector<1x1024xf32>,
    } else {
    }
    %c0 = arith.constant 0 : index
    %c0_1 = arith.constant 0 : index
    %3 = vector.load %arg1[%c0, %c0_1] : memref<2x1024xf32, #tpu.memory_space<vmem>>, vector<2x1024xf32>
    %c0_2 = arith.constant 0 : index
    %c0_3 = arith.constant 0 : index
    %4 = vector.load %arg6[%c0_2, %c0_3] : memref<1x1024xf32, #tpu.memory_space<vmem>>, vector<1x1024xf32>
    %cst = arith.constant dense<0.000000e+00> : vector<1024xf32>
    %5 = vector.multi_reduction <add>, %3, %cst [0] : vector<2x1024xf32> to vector<1024xf32>
    %6 = vector.shape_cast %5 : vector<1024xf32> to vector<1x1024xf32>
    %7 = arith.addf %4, %6 : vector<1x1024xf32>
    %c0_4 = arith.constant 0 : index
    %c0_5 = arith.constant 0 : index
    %8 = vector.load %arg6[%c0_4, %c0_5] : memref<1x1024xf32, #tpu.memory_space<vmem>>, vector<1x1024xf32>
    tpu.vector_store %arg6[%c0_4, %c0_5], %7 {strides = array<i32>} : memref<1x1024xf32, #tpu.memory_space<vmem>>, vector<1x1024xf32>,
    %c0_6 = arith.constant 0 : index
    %c0_7 = arith.constant 0 : index
    %9 = vector.load %arg7[%c0_6, %c0_7] : memref<1x1024xf32, #tpu.memory_space<vmem>>, vector<1x1024xf32>
    %10 = arith.mulf %3, %3 : vector<2x1024xf32>
    %cst_8 = arith.constant dense<0.000000e+00> : vector<1024xf32>
    %11 = vector.multi_reduction <add>, %10, %cst_8 [0] : vector<2x1024xf32> to vector<1024xf32>
    %12 = vector.shape_cast %11 : vector<1024xf32> to vector<1x1024xf32>
    %13 = arith.addf %9, %12 : vector<1x1024xf32>
    %c0_9 = arith.constant 0 : index
    %c0_10 = arith.constant 0 : index
    %14 = vector.load %arg7[%c0_9, %c0_10] : memref<1x1024xf32, #tpu.memory_space<vmem>>, vector<1x1024xf32>
    tpu.vector_store %arg7[%c0_9, %c0_10], %13 {strides = array<i32>} : memref<1x1024xf32, #tpu.memory_space<vmem>>, vector<1x1024xf32>,
    %c0_11 = arith.constant 0 : index
    %c0_12 = arith.constant 0 : index
    %15 = vector.load %arg2[%c0_11, %c0_12] : memref<1024x1xf32, #tpu.memory_space<vmem>>, vector<1024x1xf32>
    %cst_13 = arith.constant dense<0.000000e+00> : vector<2x1xf32>
    %16 = tpu.matmul %3, %15, %cst_13 {dimension_numbers = #tpu.dot_dimension_numbers<[1], [0], [0], [1], [0, 0, 1, 1], [], []>} : vector<2x1024xf32>, vector<1024x1xf32>, vector<2x1xf32> -> vector<2x1xf32>
    %17 = arith.negf %16 : vector<2x1xf32>
    %18 = math.exp %17 : vector<2x1xf32>
    %cst_14 = arith.constant 1.000000e+00 : f32
    %19 = vector.broadcast %cst_14 : f32 to vector<2x1xf32>
    %20 = arith.addf %19, %18 : vector<2x1xf32>
    %21 = arith.divf %19, %20 : vector<2x1xf32>
    %c0_15 = arith.constant 0 : index
    %c0_16 = arith.constant 0 : index
    %22 = vector.load %arg5[%c0_15, %c0_16] : memref<2x1xf32, #tpu.memory_space<vmem>>, vector<2x1xf32>
    tpu.vector_store %arg5[%c0_15, %c0_16], %21 {strides = array<i32>} : memref<2x1xf32, #tpu.memory_space<vmem>>, vector<2x1xf32>,
    %c0_i32_17 = arith.constant 0 : i32
    %23 = arith.cmpi eq, %arg0, %c0_i32_17 : i32
    %24 = arith.extui %23 : i1 to i32
    %c0_i32_18 = arith.constant 0 : i32
    %25 = arith.cmpi ne, %24, %c0_i32_18 : i32
    scf.if %25 {
      %c0_19 = arith.constant 0 : index
      %c0_20 = arith.constant 0 : index
      %26 = vector.load %arg6[%c0_19, %c0_20] : memref<1x1024xf32, #tpu.memory_space<vmem>>, vector<1x1024xf32>
      %cst_21 = arith.constant 5.000000e-01 : f32
      %27 = vector.broadcast %cst_21 : f32 to vector<1x1024xf32>
      %28 = arith.mulf %26, %27 : vector<1x1024xf32>
      %c0_22 = arith.constant 0 : index
      %c0_23 = arith.constant 0 : index
      %29 = vector.load %arg3[%c0_22, %c0_23] : memref<1x1024xf32, #tpu.memory_space<vmem>>, vector<1x1024xf32>
      tpu.vector_store %arg3[%c0_22, %c0_23], %28 {strides = array<i32>} : memref<1x1024xf32, #tpu.memory_space<vmem>>, vector<1x1024xf32>,
      %c0_24 = arith.constant 0 : index
      %c0_25 = arith.constant 0 : index
      %30 = vector.load %arg7[%c0_24, %c0_25] : memref<1x1024xf32, #tpu.memory_space<vmem>>, vector<1x1024xf32>
      %cst_26 = arith.constant 2.000000e+00 : f32
      %31 = vector.broadcast %cst_26 : f32 to vector<1x1024xf32>
      %32 = arith.mulf %31, %28 : vector<1x1024xf32>
      %33 = arith.mulf %32, %28 : vector<1x1024xf32>
      %34 = arith.subf %30, %33 : vector<1x1024xf32>
      %cst_27 = arith.constant 1.000000e+00 : f32
      %35 = vector.broadcast %cst_27 : f32 to vector<1x1024xf32>
      %36 = arith.mulf %34, %35 : vector<1x1024xf32>
      %c0_28 = arith.constant 0 : index
      %c0_29 = arith.constant 0 : index
      %37 = vector.load %arg4[%c0_28, %c0_29] : memref<1x1024xf32, #tpu.memory_space<vmem>>, vector<1x1024xf32>
      tpu.vector_store %arg4[%c0_28, %c0_29], %36 {strides = array<i32>} : memref<1x1024xf32, #tpu.memory_space<vmem>>, vector<1x1024xf32>,
    } else {
    }
    return
  }
  func.func @transform_0(%arg0: i32) -> (i32, i32) {
    %c0_i32 = arith.constant 0 : i32
    %c0_i32_0 = arith.constant 0 : i32
    return %arg0, %c0_i32 : i32, i32
  }
  func.func @transform_1(%arg0: i32) -> (i32, i32) {
    %c0_i32 = arith.constant 0 : i32
    %c0_i32_0 = arith.constant 0 : i32
    %c0_i32_1 = arith.constant 0 : i32
    return %c0_i32, %c0_i32_0 : i32, i32
  }
  func.func @transform_2(%arg0: i32) -> (i32, i32) {
    %c0_i32 = arith.constant 0 : i32
    %c0_i32_0 = arith.constant 0 : i32
    %c0_i32_1 = arith.constant 0 : i32
    return %c0_i32, %c0_i32_0 : i32, i32
  }
  func.func @transform_3(%arg0: i32) -> (i32, i32) {
    %c0_i32 = arith.constant 0 : i32
    %c0_i32_0 = arith.constant 0 : i32
    %c0_i32_1 = arith.constant 0 : i32
    return %c0_i32, %c0_i32_0 : i32, i32
  }
  func.func @transform_4(%arg0: i32) -> (i32, i32) {
    %c0_i32 = arith.constant 0 : i32
    %c0_i32_0 = arith.constant 0 : i32
    return %arg0, %c0_i32 : i32, i32
  }
}

</mosaic_0001>

<bundles_post_ra>
// kernel: discriminator_forward.5
= control target key start
LH: loop header
LB: loop body
LE: loop exit
PB: predicated region body
PF: predicated region fallthrough
CT: control target
= control target key end

     0   :  { %s3535_s12 = smov 0   ;;  %s3972_s0 = inlined_call_operand.vmem [shape: bf16[2048,16], index: 0, kind: input, shape index: {}]   ;;  %s3973_s1 = inlined_call_operand.vmem [shape: bf16[16,128], index: 1, kind: input, shape index: {}]   ;;  %s3974_s2 = inlined_call_operand.vmem [shape: f32[1,128], index: 2, kind: input, shape index: {}]   ;;  %s3975_s3 = inlined_call_operand.vmem [shape: bf16[2048,128], index: 3, kind: output, shape index: {}]  }
   0x1 LB: > { %s2456_s13 = sadd.s32 4294967295, %s3513_s12   ;;  %p2460_p0 = scmp.ge.s32.totalorder %s3513_s12, 1  ;;  %s3513_s12 = sphi %s3535_s12, %s13_s12  }
   0x2   : > { %p138_p1 = scmp.lt.s32.totalorder %s3513_s12, 3 }
   0x4   : > { %p139_p2 = pnand %p2460_p0, %p138_p1 }
   0x5   : > { %s2461_s16 = sshll.u32 (!%p139_p2), %s2456_s13, 7 }
   0x6   : > { %142 = sbr.rel (%p139_p2) target bundleno = 360 (0x168), region = 32  ;;  %p163_p3 = scmp.lt.s32.totalorder (!%p139_p2), %s2461_s16, 255 }
   0xb   : > { %v3441_v0 = vld [vmem:[%s3973_s1] sm:$0xff]   ;;  %s3977_s16 = smov (!%p163_p3, %s2461_s16), 255  ;;  %vm638_vm0 = vcmask 130048  }
   0xc   : > { %3301 = vmatprep.subr.bf16.mxu0 %v3441_v0  ;;  %3431 = vmatprep.subr.bf16.mxu1 %v3441_v0  ;;  %s2462_s17 = sshll.u32 %s3977_s16, 2 }
   0xd   : > { %3302 = vmatpush3.bf16.msra.mxu0 %v3441_v0  ;;  %3432 = vmatpush3.bf16.msra.mxu1 %v3441_v0  ;;  %s3554_s20 = scalar_lea.vmem %s3972_s0, %s2462_s17  ;;  %s3702_s25 = scalar_lea.vmem %s3975_s3, %s2462_s17 }
   0xe   : > { %v3442_v1 = vld [vmem:[%s3554_s20] sm:$0xff]   ;;  %v3444_v3 = vld [vmem:[%s3554_s20 + $0x8] sm:$0xff]   ;;  %v3446_v5 = vld [vmem:[%s3554_s20 + $0x10] sm:$0xff]  }
   0xf   : > { %v3443_v2 = vld [vmem:[%s3554_s20 + $0x100] sm:$0xff]   ;;  %3303 = vmatprep.mubr.msk.bf16.mxu0 %vm638_vm0, %v3442_v1  ;;  %v3445_v4 = vld [vmem:[%s3554_s20 + $0x108] sm:$0xff]   ;;  %v3447_v6 = vld [vmem:[%s3554_s20 + $0x110] sm:$0xff]  }
  0x10   : > { %3367 = vmatprep.mubr.msk.bf16.mxu1 %vm638_vm0, %v3443_v2  ;;  %3304 = vmatmul.mubr.msk.bf16.vlgmr.msra.gmra.mxu0 %vm638_vm0, %v3444_v3  ;;  %v3448_v7 = vld [vmem:[%s3554_s20 + $0x18] sm:$0xff]   ;;  %v3450_v9 = vld [vmem:[%s3554_s20 + $0x20] sm:$0xff]   ;;  %v3452_v11 = vld [vmem:[%s3554_s20 + $0x28] sm:$0xff]  }
  0x11   : > { %3368 = vmatmul.mubr.msk.bf16.vlgmr.msra.gmra.mxu1 %vm638_vm0, %v3445_v4  ;;  %3307 = vmatprep.mubr.msk.bf16.mxu0 %vm638_vm0, %v3446_v5  ;;  %v3449_v8 = vld [vmem:[%s3554_s20 + $0x118] sm:$0xff]   ;;  %v3451_v10 = vld [vmem:[%s3554_s20 + $0x120] sm:$0xff]   ;;  %v3453_v12 = vld [vmem:[%s3554_s20 + $0x128] sm:$0xff]  }
  0x12   : > { %3371 = vmatprep.mubr.msk.bf16.mxu1 %vm638_vm0, %v3447_v6  ;;  %v3454_v13 = vld [vmem:[%s3554_s20 + $0x30] sm:$0xff]   ;;  %v3456_v15 = vld [vmem:[%s3554_s20 + $0x38] sm:$0xff]   ;;  %v3458_v17 = vld [vmem:[%s3554_s20 + $0x40] sm:$0xff]  }
  0x13   : > { %v3455_v14 = vld [vmem:[%s3554_s20 + $0x130] sm:$0xff]   ;;  %v3457_v16 = vld [vmem:[%s3554_s20 + $0x138] sm:$0xff]   ;;  %v3459_v18 = vld [vmem:[%s3554_s20 + $0x140] sm:$0xff]  }
  0x14   : > { %v3460_v19 = vld [vmem:[%s3554_s20 + $0x48] sm:$0xff]   ;;  %v3462_v21 = vld [vmem:[%s3554_s20 + $0x50] sm:$0xff]   ;;  %v3464_v23 = vld [vmem:[%s3554_s20 + $0x58] sm:$0xff]  }
  0x15   : > { %v3461_v20 = vld [vmem:[%s3554_s20 + $0x148] sm:$0xff]   ;;  %v3463_v22 = vld [vmem:[%s3554_s20 + $0x150] sm:$0xff]   ;;  %v3465_v24 = vld [vmem:[%s3554_s20 + $0x158] sm:$0xff]  }
  0x16   : > { %v3466_v25 = vld [vmem:[%s3554_s20 + $0x60] sm:$0xff]   ;;  %v3468_v27 = vld [vmem:[%s3554_s20 + $0x68] sm:$0xff]   ;;  %v3470_v29 = vld [vmem:[%s3554_s20 + $0x70] sm:$0xff]  }
  0x17   : > { %v3467_v26 = vld [vmem:[%s3554_s20 + $0x160] sm:$0xff]   ;;  %v3469_v28 = vld [vmem:[%s3554_s20 + $0x168] sm:$0xff]   ;;  %v3471_v30 = vld [vmem:[%s3554_s20 + $0x170] sm:$0xff]  }
  0x18   : > { %3308 = vmatmul.mubr.msk.bf16.gmra.mxu0 %vm638_vm0, %v3448_v7  ;;  %v3472_v31 = vld [vmem:[%s3554_s20 + $0x78] sm:$0xff]   ;;  %v3474_v33 = vld [vmem:[%s3554_s20 + $0x80] sm:$0xff]   ;;  %v3476_v35 = vld [vmem:[%s3554_s20 + $0x88] sm:$0xff]  }
  0x19   : > { %3372 = vmatmul.mubr.msk.bf16.gmra.mxu1 %vm638_vm0, %v3449_v8  ;;  %3311 = vmatprep.mubr.msk.bf16.mxu0 %vm638_vm0, %v3450_v9  ;;  %v3473_v32 = vld [vmem:[%s3554_s20 + $0x178] sm:$0xff]   ;;  %v3475_v34 = vld [vmem:[%s3554_s20 + $0x180] sm:$0xff]   ;;  %v3477_v36 = vld [vmem:[%s3554_s20 + $0x188] sm:$0xff]  }
  0x1a   : > { %3375 = vmatprep.mubr.msk.bf16.mxu1 %vm638_vm0, %v3451_v10  ;;  %v3478_v37 = vld [vmem:[%s3554_s20 + $0x90] sm:$0xff]   ;;  %v3480_v39 = vld [vmem:[%s3554_s20 + $0x98] sm:$0xff]   ;;  %v3482_v41 = vld [vmem:[%s3554_s20 + $0xa0] sm:$0xff]  }
  0x1b   : > { %v3479_v38 = vld [vmem:[%s3554_s20 + $0x190] sm:$0xff]   ;;  %v3481_v40 = vld [vmem:[%s3554_s20 + $0x198] sm:$0xff]   ;;  %v3483_v42 = vld [vmem:[%s3554_s20 + $0x1a0] sm:$0xff]  }
  0x1c   : > { %v3484_v43 = vld [vmem:[%s3554_s20 + $0xa8] sm:$0xff]   ;;  %v3486_v45 = vld [vmem:[%s3554_s20 + $0xb0] sm:$0xff]   ;;  %v3488_v47 = vld [vmem:[%s3554_s20 + $0xb8] sm:$0xff]  }
  0x1d   : > { %v3485_v44 = vld [vmem:[%s3554_s20 + $0x1a8] sm:$0xff]   ;;  %v3487_v46 = vld [vmem:[%s3554_s20 + $0x1b0] sm:$0xff]   ;;  %v3489_v48 = vld [vmem:[%s3554_s20 + $0x1b8] sm:$0xff]  }
  0x1e   : > { %v3490_v49 = vld [vmem:[%s3554_s20 + $0xc0] sm:$0xff]   ;;  %v3492_v51 = vld [vmem:[%s3554_s20 + $0xc8] sm:$0xff]   ;;  %v3494_v53 = vld [vmem:[%s3554_s20 + $0xd0] sm:$0xff]  }
  0x1f   : > { %v3491_v50 = vld [vmem:[%s3554_s20 + $0x1c0] sm:$0xff]   ;;  %v3493_v52 = vld [vmem:[%s3554_s20 + $0x1c8] sm:$0xff]   ;;  %v3495_v54 = vld [vmem:[%s3554_s20 + $0x1d0] sm:$0xff]  }
  0x20   : > { %3312 = vmatmul.mubr.msk.bf16.gmra.mxu0 %vm638_vm0, %v3452_v11  ;;  %v3496_v55 = vld [vmem:[%s3554_s20 + $0xd8] sm:$0xff]   ;;  %v3498_v57 = vld [vmem:[%s3554_s20 + $0xe0] sm:$0xff]   ;;  %v3500_v59 = vld [vmem:[%s3554_s20 + $0xe8] sm:$0xff]  }
  0x21   : > { %3376 = vmatmul.mubr.msk.bf16.gmra.mxu1 %vm638_vm0, %v3453_v12  ;;  %3315 = vmatprep.mubr.msk.bf16.mxu0 %vm638_vm0, %v3454_v13  ;;  %v3497_v56 = vld [vmem:[%s3554_s20 + $0x1d8] sm:$0xff]   ;;  %v3499_v58 = vld [vmem:[%s3554_s20 + $0x1e0] sm:$0xff]   ;;  %v3501_v60 = vld [vmem:[%s3554_s20 + $0x1e8] sm:$0xff]  }
  0x22   : > { %3379 = vmatprep.mubr.msk.bf16.mxu1 %vm638_vm0, %v3455_v14  ;;  %v3502_v61 = vld [vmem:[%s3554_s20 + $0xf0] sm:$0xff]   ;;  %v3504_v63 = vld [vmem:[%s3554_s20 + $0xf8] sm:$0xff]   ;;  %v3687_v1 = vld [vmem:[%s3974_s2] ss:$0 sm:$0xff] }
  0x23   : > { %v3503_v62 = vld [vmem:[%s3554_s20 + $0x1f0] sm:$0xff]   ;;  %v3505_v0 = vld [vmem:[%s3554_s20 + $0x1f8] sm:$0xff]  }
  0x28   : > { %3316 = vmatmul.mubr.msk.bf16.gmra.mxu0 %vm638_vm0, %v3456_v15 }
  0x29   : > { %3380 = vmatmul.mubr.msk.bf16.gmra.mxu1 %vm638_vm0, %v3457_v16  ;;  %3319 = vmatprep.mubr.msk.bf16.mxu0 %vm638_vm0, %v3458_v17 }
  0x2a   : > { %3383 = vmatprep.mubr.msk.bf16.mxu1 %vm638_vm0, %v3459_v18 }
  0x30   : > { %3320 = vmatmul.mubr.msk.bf16.gmra.mxu0 %vm638_vm0, %v3460_v19 }
  0x31   : > { %3384 = vmatmul.mubr.msk.bf16.gmra.mxu1 %vm638_vm0, %v3461_v20  ;;  %3323 = vmatprep.mubr.msk.bf16.mxu0 %vm638_vm0, %v3462_v21 }
  0x32   : > { %3387 = vmatprep.mubr.msk.bf16.mxu1 %vm638_vm0, %v3463_v22 }
  0x38   : > { %3324 = vmatmul.mubr.msk.bf16.gmra.mxu0 %vm638_vm0, %v3464_v23 }
  0x39   : > { %3388 = vmatmul.mubr.msk.bf16.gmra.mxu1 %vm638_vm0, %v3465_v24  ;;  %3327 = vmatprep.mubr.msk.bf16.mxu0 %vm638_vm0, %v3466_v25 }
  0x3a   : > { %3391 = vmatprep.mubr.msk.bf16.mxu1 %vm638_vm0, %v3467_v26 }
  0x40   : > { %3328 = vmatmul.mubr.msk.bf16.gmra.mxu0 %vm638_vm0, %v3468_v27 }
  0x41   : > { %3392 = vmatmul.mubr.msk.bf16.gmra.mxu1 %vm638_vm0, %v3469_v28  ;;  %3331 = vmatprep.mubr.msk.bf16.mxu0 %vm638_vm0, %v3470_v29 }
  0x42   : > { %3395 = vmatprep.mubr.msk.bf16.mxu1 %vm638_vm0, %v3471_v30 }
  0x48   : > { %3332 = vmatmul.mubr.msk.bf16.gmra.mxu0 %vm638_vm0, %v3472_v31 }
  0x49   : > { %3396 = vmatmul.mubr.msk.bf16.gmra.mxu1 %vm638_vm0, %v3473_v32  ;;  %3335 = vmatprep.mubr.msk.bf16.mxu0 %vm638_vm0, %v3474_v33 }
  0x4a   : > { %3399 = vmatprep.mubr.msk.bf16.mxu1 %vm638_vm0, %v3475_v34 }
  0x50   : > { %3336 = vmatmul.mubr.msk.bf16.gmra.mxu0 %vm638_vm0, %v3476_v35 }
  0x51   : > { %3400 = vmatmul.mubr.msk.bf16.gmra.mxu1 %vm638_vm0, %v3477_v36  ;;  %3339 = vmatprep.mubr.msk.bf16.mxu0 %vm638_vm0, %v3478_v37 }
  0x52   : > { %3403 = vmatprep.mubr.msk.bf16.mxu1 %vm638_vm0, %v3479_v38 }
  0x58   : > { %3340 = vmatmul.mubr.msk.bf16.gmra.mxu0 %vm638_vm0, %v3480_v39 }
  0x59   : > { %3404 = vmatmul.mubr.msk.bf16.gmra.mxu1 %vm638_vm0, %v3481_v40  ;;  %3343 = vmatprep.mubr.msk.bf16.mxu0 %vm638_vm0, %v3482_v41 }
  0x5a   : > { %3407 = vmatprep.mubr.msk.bf16.mxu1 %vm638_vm0, %v3483_v42 }
  0x60   : > { %3344 = vmatmul.mubr.msk.bf16.gmra.mxu0 %vm638_vm0, %v3484_v43 }
  0x61   : > { %3408 = vmatmul.mubr.msk.bf16.gmra.mxu1 %vm638_vm0, %v3485_v44  ;;  %3347 = vmatprep.mubr.msk.bf16.mxu0 %vm638_vm0, %v3486_v45 }
  0x62   : > { %3411 = vmatprep.mubr.msk.bf16.mxu1 %vm638_vm0, %v3487_v46 }
  0x68   : > { %3348 = vmatmul.mubr.msk.bf16.gmra.mxu0 %vm638_vm0, %v3488_v47 }
  0x69   : > { %3412 = vmatmul.mubr.msk.bf16.gmra.mxu1 %vm638_vm0, %v3489_v48  ;;  %3351 = vmatprep.mubr.msk.bf16.mxu0 %vm638_vm0, %v3490_v49 }
  0x6a   : > { %3415 = vmatprep.mubr.msk.bf16.mxu1 %vm638_vm0, %v3491_v50 }
  0x70   : > { %3352 = vmatmul.mubr.msk.bf16.gmra.mxu0 %vm638_vm0, %v3492_v51 }
  0x71   : > { %3416 = vmatmul.mubr.msk.bf16.gmra.mxu1 %vm638_vm0, %v3493_v52  ;;  %3355 = vmatprep.mubr.msk.bf16.mxu0 %vm638_vm0, %v3494_v53 }
  0x72   : > { %3419 = vmatprep.mubr.msk.bf16.mxu1 %vm638_vm0, %v3495_v54 }
  0x78   : > { %3356 = vmatmul.mubr.msk.bf16.gmra.mxu0 %vm638_vm0, %v3496_v55 }
  0x79   : > { %3420 = vmatmul.mubr.msk.bf16.gmra.mxu1 %vm638_vm0, %v3497_v56  ;;  %3359 = vmatprep.mubr.msk.bf16.mxu0 %vm638_vm0, %v3498_v57 }
  0x7a   : > { %3423 = vmatprep.mubr.msk.bf16.mxu1 %vm638_vm0, %v3499_v58 }
  0x80   : > { %3360 = vmatmul.mubr.msk.bf16.gmra.mxu0 %vm638_vm0, %v3500_v59 }
  0x81   : > { %3424 = vmatmul.mubr.msk.bf16.gmra.mxu1 %vm638_vm0, %v3501_v60  ;;  %3363 = vmatprep.mubr.msk.bf16.mxu0 %vm638_vm0, %v3502_v61 }
  0x82   : > { %3427 = vmatprep.mubr.msk.bf16.mxu1 %vm638_vm0, %v3503_v62 }
  0x88   : > { %3364 = vmatmul.mubr.msk.bf16.gmra.mxu0 %vm638_vm0, %v3504_v63 }
  0x89   : > { %3428 = vmatmul.mubr.msk.bf16.gmra.mxu1 %vm638_vm0, %v3505_v0 }
  0xd0   : > { %v3305_v2 = vpop.f32.mrf.mxu0 }
  0xd1   : > { %v874_v3 = vadd.f32 %v3305_v2, %v3687_v1  ;;  %v3369_v4 = vpop.f32.mrf.mxu1 }
  0xd2   : > { %v1130_v5 = vadd.f32 %v3369_v4, %v3687_v1  ;;  %v865_v6 = vpop.f32.mrf.mxu0 }
  0xd3   : > { %vm1378_vm1 = vcmp.ge.f32.partialorder %v874_v3, 0.0  ;;  %v1506_v7 = vmul.f32 0.2, %v874_v3  ;;  %v866_v8 = vadd.f32 %v3687_v1, %v865_v6  ;;  %v1121_v9 = vpop.f32.mrf.mxu1 }
  0xd4   : > { %vm1442_vm2 = vcmp.ge.f32.partialorder %v1130_v5, 0.0  ;;  %v1570_v10 = vmul.f32 0.2, %v1130_v5  ;;  %v1122_v11 = vadd.f32 %v3687_v1, %v1121_v9  ;;  %v3306_v12 = vpop.f32.mrf.mxu0 }
  0xd5   : > { %v1634_v13 = vsel %vm1378_vm1, %v874_v3, %v1506_v7  ;;  %vm1376_vm3 = vcmp.ge.f32.partialorder %v866_v8, 0.0  ;;  %v1504_v14 = vmul.f32 0.2, %v866_v8  ;;  %v877_v15 = vadd.f32 %v3306_v12, %v3687_v1  ;;  %v3370_v16 = vpop.f32.mrf.mxu1 }
  0xd6   : > { %v1698_v17 = vsel %vm1442_vm2, %v1130_v5, %v1570_v10  ;;  %vm1440_vm4 = vcmp.ge.f32.partialorder %v1122_v11, 0.0  ;;  %v1568_v18 = vmul.f32 0.2, %v1122_v11  ;;  %v1133_v19 = vadd.f32 %v3370_v16, %v3687_v1  ;;  %v868_v20 = vpop.f32.mrf.mxu0 }
  0xd7   : > { %v1632_v21 = vsel %vm1376_vm3, %v866_v8, %v1504_v14  ;;  %vm1379_vm5 = vcmp.ge.f32.partialorder %v877_v15, 0.0  ;;  %v1507_v22 = vmul.f32 0.2, %v877_v15  ;;  %v869_v23 = vadd.f32 %v3687_v1, %v868_v20  ;;  %v1124_v24 = vpop.f32.mrf.mxu1 }
  0xd8   : > { %v1696_v25 = vsel %vm1440_vm4, %v1122_v11, %v1568_v18  ;;  %vm1443_vm6 = vcmp.ge.f32.partialorder %v1133_v19, 0.0  ;;  %v1571_v26 = vmul.f32 0.2, %v1133_v19  ;;  %v1125_v27 = vadd.f32 %v3687_v1, %v1124_v24  ;;  %v3309_v28 = vpop.f32.mrf.mxu0 }
  0xd9   : > { %v1635_v29 = vsel %vm1379_vm5, %v877_v15, %v1507_v22  ;;  %vm1377_vm7 = vcmp.ge.f32.partialorder %v869_v23, 0.0  ;;  %v1505_v30 = vmul.f32 0.2, %v869_v23  ;;  %v890_v31 = vadd.f32 %v3309_v28, %v3687_v1  ;;  %v3373_v32 = vpop.f32.mrf.mxu1 }
  0xda   : > { %v2861_v33 = vpack.c.bf16 %v1635_v29, %v1634_v13  ;;  %v1699_v34 = vsel %vm1443_vm6, %v1133_v19, %v1571_v26  ;;  %vm1441_vm8 = vcmp.ge.f32.partialorder %v1125_v27, 0.0  ;;  %v1569_v35 = vmul.f32 0.2, %v1125_v27  ;;  %v881_v36 = vpop.f32.mrf.mxu0 }
  0xdb   : > { %v3021_v37 = vpack.c.bf16 %v1699_v34, %v1698_v17  ;;  %v1633_v38 = vsel %vm1377_vm7, %v869_v23, %v1505_v30  ;;  %vm1382_vm9 = vcmp.ge.f32.partialorder %v890_v31, 0.0  ;;  %v1510_v39 = vmul.f32 0.2, %v890_v31  ;;  %v1137_v40 = vpop.f32.mrf.mxu1 }
  0xdc   : > { %3173 = vst [vmem:[%s3702_s25 + $0x8] sm:$0xff] %v2861_v33   ;;  %v2856_v41 = vpack.c.bf16 %v1633_v38, %v1632_v21  ;;  %v1697_v42 = vsel %vm1441_vm8, %v1125_v27, %v1569_v35  ;;  %v1146_v43 = vadd.f32 %v3373_v32, %v3687_v1  ;;  %v882_v44 = vadd.f32 %v3687_v1, %v881_v36  ;;  %v3310_v45 = vpop.f32.mrf.mxu0 }
  0xdd   : > { %3205 = vst [vmem:[%s3702_s25 + $0x108] sm:$0xff] %v3021_v37   ;;  %v3016_v46 = vpack.c.bf16 %v1697_v42, %v1696_v25  ;;  %v1638_v47 = vsel %vm1382_vm9, %v890_v31, %v1510_v39  ;;  %v1138_v48 = vadd.f32 %v3687_v1, %v1137_v40  ;;  %v893_v49 = vadd.f32 %v3310_v45, %v3687_v1  ;;  %v3374_v50 = vpop.f32.mrf.mxu1 }
  0xde   : > { %2857 = vst [vmem:[%s3702_s25] sm:$0xff] %v2856_v41   ;;  %vm1446_vm10 = vcmp.ge.f32.partialorder %v1146_v43, 0.0  ;;  %v1574_v51 = vmul.f32 0.2, %v1146_v43  ;;  %vm1380_vm11 = vcmp.ge.f32.partialorder %v882_v44, 0.0  ;;  %v1508_v52 = vmul.f32 0.2, %v882_v44  ;;  %v884_v53 = vpop.f32.mrf.mxu0 }
  0xdf   : > { %3204 = vst [vmem:[%s3702_s25 + $0x100] sm:$0xff] %v3016_v46   ;;  %vm1444_vm12 = vcmp.ge.f32.partialorder %v1138_v48, 0.0  ;;  %v1572_v54 = vmul.f32 0.2, %v1138_v48  ;;  %vm1383_vm13 = vcmp.ge.f32.partialorder %v893_v49, 0.0  ;;  %v1140_v56 = vpop.f32.mrf.mxu1  ;;  %v1149_v59 = vadd.f32 %v3374_v50, %v3687_v1 }
  0xe0   : > { %v1511_v55 = vmul.f32 0.2, %v893_v49  ;;  %v1702_v57 = vsel %vm1446_vm10, %v1146_v43, %v1574_v51  ;;  %v1636_v58 = vsel %vm1380_vm11, %v882_v44, %v1508_v52  ;;  %v885_v60 = vadd.f32 %v3687_v1, %v884_v53  ;;  %v3313_v61 = vpop.f32.mrf.mxu0 }
  0xe1   : > { %v1700_v62 = vsel %vm1444_vm12, %v1138_v48, %v1572_v54  ;;  %v1141_v0 = vadd.f32 %v3687_v1, %v1140_v56  ;;  %v906_v2 = vadd.f32 %v3313_v61, %v3687_v1  ;;  %v3377_v3 = vpop.f32.mrf.mxu1  ;;  %vm1447_vm14 = vcmp.ge.f32.partialorder %v1149_v59, 0.0 }
  0xe2   : > { %v1639_v63 = vsel %vm1383_vm13, %v893_v49, %v1511_v55  ;;  %v1575_v5 = vmul.f32 0.2, %v1149_v59  ;;  %vm1381_vm15 = vcmp.ge.f32.partialorder %v885_v60, 0.0  ;;  %v897_v6 = vpop.f32.mrf.mxu0  ;;  %v1509_v7 = vmul.f32 0.2, %v885_v60 }
  0xe3   : > { %v2871_v4 = vpack.c.bf16 %v1639_v63, %v1638_v47  ;;  %vm1445_vm0 = vcmp.ge.f32.partialorder %v1141_v0, 0.0  ;;  %v1573_v8 = vmul.f32 0.2, %v1141_v0  ;;  %vm1386_vm1 = vcmp.ge.f32.partialorder %v906_v2, 0.0  ;;  %v1153_v9 = vpop.f32.mrf.mxu1 }
  0xe4   : > { %v1703_v10 = vsel %vm1447_vm14, %v1149_v59, %v1575_v5  ;;  %v1514_v11 = vmul.f32 0.2, %v906_v2  ;;  %v1162_v12 = vadd.f32 %v3377_v3, %v3687_v1  ;;  %v898_v13 = vadd.f32 %v3687_v1, %v897_v6  ;;  %v3314_v14 = vpop.f32.mrf.mxu0 }
  0xe5   : > { %3175 = vst [vmem:[%s3702_s25 + $0x18] sm:$0xff] %v2871_v4   ;;  %v3031_v15 = vpack.c.bf16 %v1703_v10, %v1702_v57  ;;  %v1637_v16 = vsel %vm1381_vm15, %v885_v60, %v1509_v7  ;;  %v1701_v17 = vsel %vm1445_vm0, %v1141_v0, %v1573_v8  ;;  %v1154_v18 = vadd.f32 %v3687_v1, %v1153_v9  ;;  %v3378_v19 = vpop.f32.mrf.mxu1 }
  0xe6   : > { %v2866_v20 = vpack.c.bf16 %v1637_v16, %v1636_v58  ;;  %v3026_v21 = vpack.c.bf16 %v1701_v17, %v1700_v62  ;;  %v1642_v22 = vsel %vm1386_vm1, %v906_v2, %v1514_v11  ;;  %vm1450_vm2 = vcmp.ge.f32.partialorder %v1162_v12, 0.0  ;;  %v900_v23 = vpop.f32.mrf.mxu0 }
  0xe7   : > { %3207 = vst [vmem:[%s3702_s25 + $0x118] sm:$0xff] %v3031_v15   ;;  %v1578_v24 = vmul.f32 0.2, %v1162_v12  ;;  %vm1384_vm3 = vcmp.ge.f32.partialorder %v898_v13, 0.0  ;;  %v1512_v25 = vmul.f32 0.2, %v898_v13  ;;  %v1156_v26 = vpop.f32.mrf.mxu1  ;;  %v909_v28 = vadd.f32 %v3314_v14, %v3687_v1 }
  0xe8   : > { %vm1448_vm4 = vcmp.ge.f32.partialorder %v1154_v18, 0.0  ;;  %3174 = vst [vmem:[%s3702_s25 + $0x10] sm:$0xff] %v2866_v20   ;;  %3206 = vst [vmem:[%s3702_s25 + $0x110] sm:$0xff] %v3026_v21   ;;  %v1576_v27 = vmul.f32 0.2, %v1154_v18  ;;  %v1165_v29 = vadd.f32 %v3378_v19, %v3687_v1  ;;  %v901_v30 = vadd.f32 %v3687_v1, %v900_v23  ;;  %v3317_v31 = vpop.f32.mrf.mxu0 }
  0xe9   : > { %v1706_v32 = vsel %vm1450_vm2, %v1162_v12, %v1578_v24  ;;  %v1640_v33 = vsel %vm1384_vm3, %v898_v13, %v1512_v25  ;;  %v1157_v34 = vadd.f32 %v3687_v1, %v1156_v26  ;;  %v922_v35 = vadd.f32 %v3317_v31, %v3687_v1  ;;  %v3381_v36 = vpop.f32.mrf.mxu1 }
  0xea   : > { %v1704_v37 = vsel %vm1448_vm4, %v1154_v18, %v1576_v27  ;;  %vm1387_vm5 = vcmp.ge.f32.partialorder %v909_v28, 0.0  ;;  %v1515_v38 = vmul.f32 0.2, %v909_v28  ;;  %vm1451_vm6 = vcmp.ge.f32.partialorder %v1165_v29, 0.0  ;;  %v913_v39 = vpop.f32.mrf.mxu0 }
  0xeb   : > { %v1579_v40 = vmul.f32 0.2, %v1165_v29  ;;  %vm1385_vm7 = vcmp.ge.f32.partialorder %v901_v30, 0.0  ;;  %v1513_v41 = vmul.f32 0.2, %v901_v30  ;;  %vm1449_vm8 = vcmp.ge.f32.partialorder %v1157_v34, 0.0  ;;  %v1169_v42 = vpop.f32.mrf.mxu1 }
  0xec   : > { %v1643_v43 = vsel %vm1387_vm5, %v909_v28, %v1515_v38  ;;  %v1577_v44 = vmul.f32 0.2, %v1157_v34  ;;  %vm1390_vm9 = vcmp.ge.f32.partialorder %v922_v35, 0.0  ;;  %v1518_v45 = vmul.f32 0.2, %v922_v35  ;;  %v3318_v46 = vpop.f32.mrf.mxu0 }
  0xed   : > { %v2881_v47 = vpack.c.bf16 %v1643_v43, %v1642_v22  ;;  %v1707_v48 = vsel %vm1451_vm6, %v1165_v29, %v1579_v40  ;;  %v1641_v49 = vsel %vm1385_vm7, %v901_v30, %v1513_v41  ;;  %v1178_v50 = vadd.f32 %v3381_v36, %v3687_v1  ;;  %v3382_v51 = vpop.f32.mrf.mxu1 }
  0xee   : > { %v3041_v52 = vpack.c.bf16 %v1707_v48, %v1706_v32  ;;  %v2876_v53 = vpack.c.bf16 %v1641_v49, %v1640_v33  ;;  %v1705_v54 = vsel %vm1449_vm8, %v1157_v34, %v1577_v44  ;;  %v1646_v55 = vsel %vm1390_vm9, %v922_v35, %v1518_v45  ;;  %v916_v56 = vpop.f32.mrf.mxu0 }
  0xef   : > { %3177 = vst [vmem:[%s3702_s25 + $0x28] sm:$0xff] %v2881_v47   ;;  %v3036_v57 = vpack.c.bf16 %v1705_v54, %v1704_v37  ;;  %vm1454_vm10 = vcmp.ge.f32.partialorder %v1178_v50, 0.0  ;;  %v1582_v58 = vmul.f32 0.2, %v1178_v50  ;;  %v914_v59 = vadd.f32 %v3687_v1, %v913_v39  ;;  %v1172_v60 = vpop.f32.mrf.mxu1 }
  0xf0   : > { %3209 = vst [vmem:[%s3702_s25 + $0x128] sm:$0xff] %v3041_v52   ;;  %3176 = vst [vmem:[%s3702_s25 + $0x20] sm:$0xff] %v2876_v53   ;;  %v1170_v61 = vadd.f32 %v3687_v1, %v1169_v42  ;;  %v925_v62 = vadd.f32 %v3318_v46, %v3687_v1  ;;  %v1181_v63 = vadd.f32 %v3382_v51, %v3687_v1  ;;  %v3321_v2 = vpop.f32.mrf.mxu0 }
  0xf1   : > { %v917_v0 = vadd.f32 %v3687_v1, %v916_v56  ;;  %3208 = vst [vmem:[%s3702_s25 + $0x120] sm:$0xff] %v3036_v57   ;;  %v1710_v3 = vsel %vm1454_vm10, %v1178_v50, %v1582_v58  ;;  %vm1388_vm11 = vcmp.ge.f32.partialorder %v914_v59, 0.0  ;;  %v1516_v4 = vmul.f32 0.2, %v914_v59  ;;  %v3385_v6 = vpop.f32.mrf.mxu1 }
  0xf2   : > { %v1173_v5 = vadd.f32 %v3687_v1, %v1172_v60  ;;  %vm1452_vm12 = vcmp.ge.f32.partialorder %v1170_v61, 0.0  ;;  %v1580_v7 = vmul.f32 0.2, %v1170_v61  ;;  %vm1391_vm13 = vcmp.ge.f32.partialorder %v925_v62, 0.0  ;;  %v929_v9 = vpop.f32.mrf.mxu0 }
  0xf3   : > { %v1519_v8 = vmul.f32 0.2, %v925_v62  ;;  %v1644_v10 = vsel %vm1388_vm11, %v914_v59, %v1516_v4  ;;  %vm1455_vm14 = vcmp.ge.f32.partialorder %v1181_v63, 0.0  ;;  %v1583_v11 = vmul.f32 0.2, %v1181_v63  ;;  %v1185_v12 = vpop.f32.mrf.mxu1 }
  0xf4   : > { %vm1389_vm15 = vcmp.ge.f32.partialorder %v917_v0, 0.0  ;;  %v1708_v13 = vsel %vm1452_vm12, %v1170_v61, %v1580_v7  ;;  %v1517_v15 = vmul.f32 0.2, %v917_v0  ;;  %vm1453_vm0 = vcmp.ge.f32.partialorder %v1173_v5, 0.0  ;;  %v3322_v16 = vpop.f32.mrf.mxu0 }
  0xf5   : > { %v1647_v14 = vsel %vm1391_vm13, %v925_v62, %v1519_v8  ;;  %v1711_v18 = vsel %vm1455_vm14, %v1181_v63, %v1583_v11  ;;  %v1581_v19 = vmul.f32 0.2, %v1173_v5  ;;  %v938_v20 = vadd.f32 %v3321_v2, %v3687_v1  ;;  %v3386_v21 = vpop.f32.mrf.mxu1 }
  0xf6   : > { %v2891_v17 = vpack.c.bf16 %v1647_v14, %v1646_v55  ;;  %v3051_v22 = vpack.c.bf16 %v1711_v18, %v1710_v3  ;;  %v1645_v23 = vsel %vm1389_vm15, %v917_v0, %v1517_v15  ;;  %v1194_v24 = vadd.f32 %v3385_v6, %v3687_v1  ;;  %v932_v26 = vpop.f32.mrf.mxu0 }
  0xf7   : > { %v930_v25 = vadd.f32 %v3687_v1, %v929_v9  ;;  %v2886_v27 = vpack.c.bf16 %v1645_v23, %v1644_v10  ;;  %v1709_v28 = vsel %vm1453_vm0, %v1173_v5, %v1581_v19  ;;  %vm1394_vm1 = vcmp.ge.f32.partialorder %v938_v20, 0.0  ;;  %v1188_v30 = vpop.f32.mrf.mxu1 }
  0xf8   : > { %3179 = vst [vmem:[%s3702_s25 + $0x38] sm:$0xff] %v2891_v17   ;;  %v1522_v29 = vmul.f32 0.2, %v938_v20  ;;  %3211 = vst [vmem:[%s3702_s25 + $0x138] sm:$0xff] %v3051_v22   ;;  %v3046_v31 = vpack.c.bf16 %v1709_v28, %v1708_v13  ;;  %vm1458_vm2 = vcmp.ge.f32.partialorder %v1194_v24, 0.0  ;;  %v3325_v33 = vpop.f32.mrf.mxu0  ;;  %v1186_v36 = vadd.f32 %v3687_v1, %v1185_v12 }
  0xf9   : > { %v1586_v32 = vmul.f32 0.2, %v1194_v24  ;;  %vm1392_vm3 = vcmp.ge.f32.partialorder %v930_v25, 0.0  ;;  %3178 = vst [vmem:[%s3702_s25 + $0x30] sm:$0xff] %v2886_v27   ;;  %v1520_v35 = vmul.f32 0.2, %v930_v25  ;;  %v941_v37 = vadd.f32 %v3322_v16, %v3687_v1  ;;  %v3389_v38 = vpop.f32.mrf.mxu1 }
  0xfa   : > { %v1650_v34 = vsel %vm1394_vm1, %v938_v20, %v1522_v29  ;;  %3210 = vst [vmem:[%s3702_s25 + $0x130] sm:$0xff] %v3046_v31   ;;  %v1197_v40 = vadd.f32 %v3386_v21, %v3687_v1  ;;  %v933_v41 = vadd.f32 %v3687_v1, %v932_v26  ;;  %v1189_v42 = vadd.f32 %v3687_v1, %v1188_v30  ;;  %v945_v43 = vpop.f32.mrf.mxu0 }
  0xfb   : > { %v1714_v39 = vsel %vm1458_vm2, %v1194_v24, %v1586_v32  ;;  %v1648_v44 = vsel %vm1392_vm3, %v930_v25, %v1520_v35  ;;  %vm1456_vm4 = vcmp.ge.f32.partialorder %v1186_v36, 0.0  ;;  %v1584_v45 = vmul.f32 0.2, %v1186_v36  ;;  %v1201_v46 = vpop.f32.mrf.mxu1 }
  0xfc   : > { %vm1395_vm5 = vcmp.ge.f32.partialorder %v941_v37, 0.0  ;;  %v1523_v47 = vmul.f32 0.2, %v941_v37  ;;  %vm1459_vm6 = vcmp.ge.f32.partialorder %v1197_v40, 0.0  ;;  %v1587_v48 = vmul.f32 0.2, %v1197_v40  ;;  %v3326_v49 = vpop.f32.mrf.mxu0 }
  0xfd   : > { %vm1393_vm7 = vcmp.ge.f32.partialorder %v933_v41, 0.0  ;;  %v1712_v50 = vsel %vm1456_vm4, %v1186_v36, %v1584_v45  ;;  %v1521_v51 = vmul.f32 0.2, %v933_v41  ;;  %vm1457_vm8 = vcmp.ge.f32.partialorder %v1189_v42, 0.0  ;;  %v3390_v53 = vpop.f32.mrf.mxu1 }
  0xfe   : > { %v1585_v52 = vmul.f32 0.2, %v1189_v42  ;;  %v1651_v54 = vsel %vm1395_vm5, %v941_v37, %v1523_v47  ;;  %v1715_v55 = vsel %vm1459_vm6, %v1197_v40, %v1587_v48  ;;  %v954_v56 = vadd.f32 %v3325_v33, %v3687_v1  ;;  %v948_v58 = vpop.f32.mrf.mxu0 }
  0xff   : > { %v1210_v57 = vadd.f32 %v3389_v38, %v3687_v1  ;;  %v2901_v59 = vpack.c.bf16 %v1651_v54, %v1650_v34  ;;  %v3061_v60 = vpack.c.bf16 %v1715_v55, %v1714_v39  ;;  %v1649_v61 = vsel %vm1393_vm7, %v933_v41, %v1521_v51  ;;  %v1204_v63 = vpop.f32.mrf.mxu1 }
 0x100   : > { %v1713_v62 = vsel %vm1457_vm8, %v1189_v42, %v1585_v52  ;;  %v2896_v0 = vpack.c.bf16 %v1649_v61, %v1648_v44  ;;  %vm1398_vm9 = vcmp.ge.f32.partialorder %v954_v56, 0.0  ;;  %v1526_v3 = vmul.f32 0.2, %v954_v56  ;;  %v3329_v4 = vpop.f32.mrf.mxu0 }
 0x101   : > { %v3056_v2 = vpack.c.bf16 %v1713_v62, %v1712_v50  ;;  %3181 = vst [vmem:[%s3702_s25 + $0x48] sm:$0xff] %v2901_v59   ;;  %3213 = vst [vmem:[%s3702_s25 + $0x148] sm:$0xff] %v3061_v60   ;;  %vm1462_vm10 = vcmp.ge.f32.partialorder %v1210_v57, 0.0  ;;  %v1590_v5 = vmul.f32 0.2, %v1210_v57  ;;  %v946_v6 = vadd.f32 %v3687_v1, %v945_v43  ;;  %v3393_v8 = vpop.f32.mrf.mxu1 }
 0x102   : > { %v1202_v7 = vadd.f32 %v3687_v1, %v1201_v46  ;;  %3180 = vst [vmem:[%s3702_s25 + $0x40] sm:$0xff] %v2896_v0   ;;  %v1654_v9 = vsel %vm1398_vm9, %v954_v56, %v1526_v3  ;;  %v957_v10 = vadd.f32 %v3326_v49, %v3687_v1  ;;  %v1213_v11 = vadd.f32 %v3390_v53, %v3687_v1  ;;  %v961_v13 = vpop.f32.mrf.mxu0 }
 0x103   : > { %3212 = vst [vmem:[%s3702_s25 + $0x140] sm:$0xff] %v3056_v2   ;;  %v949_v12 = vadd.f32 %v3687_v1, %v948_v58  ;;  %v1718_v14 = vsel %vm1462_vm10, %v1210_v57, %v1590_v5  ;;  %vm1396_vm11 = vcmp.ge.f32.partialorder %v946_v6, 0.0  ;;  %v1524_v15 = vmul.f32 0.2, %v946_v6  ;;  %v1217_v16 = vpop.f32.mrf.mxu1 }
 0x104   : > { %vm1460_vm12 = vcmp.ge.f32.partialorder %v1202_v7, 0.0  ;;  %v1588_v17 = vmul.f32 0.2, %v1202_v7  ;;  %vm1399_vm13 = vcmp.ge.f32.partialorder %v957_v10, 0.0  ;;  %v1527_v18 = vmul.f32 0.2, %v957_v10  ;;  %v3330_v19 = vpop.f32.mrf.mxu0 }
 0x105   : > { %vm1463_vm14 = vcmp.ge.f32.partialorder %v1213_v11, 0.0  ;;  %v1652_v20 = vsel %vm1396_vm11, %v946_v6, %v1524_v15  ;;  %v1591_v21 = vmul.f32 0.2, %v1213_v11  ;;  %vm1397_vm15 = vcmp.ge.f32.partialorder %v949_v12, 0.0  ;;  %v3394_v23 = vpop.f32.mrf.mxu1 }
 0x106   : > { %v1525_v22 = vmul.f32 0.2, %v949_v12  ;;  %v1716_v24 = vsel %vm1460_vm12, %v1202_v7, %v1588_v17  ;;  %v1655_v25 = vsel %vm1399_vm13, %v957_v10, %v1527_v18  ;;  %v1205_v26 = vadd.f32 %v3687_v1, %v1204_v63  ;;  %v964_v28 = vpop.f32.mrf.mxu0 }
 0x107   : > { %v970_v27 = vadd.f32 %v3329_v4, %v3687_v1  ;;  %v2911_v29 = vpack.c.bf16 %v1655_v25, %v1654_v9  ;;  %v1719_v30 = vsel %vm1463_vm14, %v1213_v11, %v1591_v21  ;;  %v1226_v32 = vadd.f32 %v3393_v8, %v3687_v1  ;;  %v1220_v33 = vpop.f32.mrf.mxu1 }
 0x108   : > { %v1653_v31 = vsel %vm1397_vm15, %v949_v12, %v1525_v22  ;;  %v3071_v34 = vpack.c.bf16 %v1719_v30, %v1718_v14  ;;  %vm1461_vm0 = vcmp.ge.f32.partialorder %v1205_v26, 0.0  ;;  %v1589_v36 = vmul.f32 0.2, %v1205_v26  ;;  %v3333_v37 = vpop.f32.mrf.mxu0 }
 0x109   : > { %v2906_v35 = vpack.c.bf16 %v1653_v31, %v1652_v20  ;;  %3183 = vst [vmem:[%s3702_s25 + $0x58] sm:$0xff] %v2911_v29   ;;  %vm1402_vm1 = vcmp.ge.f32.partialorder %v970_v27, 0.0  ;;  %v1530_v38 = vmul.f32 0.2, %v970_v27  ;;  %vm1466_vm2 = vcmp.ge.f32.partialorder %v1226_v32, 0.0  ;;  %v3397_v40 = vpop.f32.mrf.mxu1 }
 0x10a   : > { %v1594_v39 = vmul.f32 0.2, %v1226_v32  ;;  %3215 = vst [vmem:[%s3702_s25 + $0x158] sm:$0xff] %v3071_v34   ;;  %v1717_v41 = vsel %vm1461_vm0, %v1205_v26, %v1589_v36  ;;  %v962_v42 = vadd.f32 %v3687_v1, %v961_v13  ;;  %v1218_v43 = vadd.f32 %v3687_v1, %v1217_v16  ;;  %v977_v45 = vpop.f32.mrf.mxu0 }
 0x10b   : > { %3182 = vst [vmem:[%s3702_s25 + $0x50] sm:$0xff] %v2906_v35   ;;  %v973_v44 = vadd.f32 %v3330_v19, %v3687_v1  ;;  %v3066_v46 = vpack.c.bf16 %v1717_v41, %v1716_v24  ;;  %v1658_v47 = vsel %vm1402_vm1, %v970_v27, %v1530_v38  ;;  %v1229_v49 = vadd.f32 %v3394_v23, %v3687_v1  ;;  %v1233_v50 = vpop.f32.mrf.mxu1 }
 0x10c   : > { %v1722_v48 = vsel %vm1466_vm2, %v1226_v32, %v1594_v39  ;;  %vm1400_vm3 = vcmp.ge.f32.partialorder %v962_v42, 0.0  ;;  %v1528_v51 = vmul.f32 0.2, %v962_v42  ;;  %vm1464_vm4 = vcmp.ge.f32.partialorder %v1218_v43, 0.0  ;;  %v3334_v53 = vpop.f32.mrf.mxu0 }
 0x10d   : > { %v1592_v52 = vmul.f32 0.2, %v1218_v43  ;;  %3214 = vst [vmem:[%s3702_s25 + $0x150] sm:$0xff] %v3066_v46   ;;  %vm1403_vm5 = vcmp.ge.f32.partialorder %v973_v44, 0.0  ;;  %v1531_v54 = vmul.f32 0.2, %v973_v44  ;;  %v3398_v56 = vpop.f32.mrf.mxu1  ;;  %v965_v59 = vadd.f32 %v3687_v1, %v964_v28 }
 0x10e   : > { %vm1467_vm6 = vcmp.ge.f32.partialorder %v1229_v49, 0.0  ;;  %v1595_v55 = vmul.f32 0.2, %v1229_v49  ;;  %v1656_v57 = vsel %vm1400_vm3, %v962_v42, %v1528_v51  ;;  %v1221_v60 = vadd.f32 %v3687_v1, %v1220_v33  ;;  %v980_v61 = vpop.f32.mrf.mxu0 }
 0x10f   : > { %v1720_v58 = vsel %vm1464_vm4, %v1218_v43, %v1592_v52  ;;  %v1659_v62 = vsel %vm1403_vm5, %v973_v44, %v1531_v54  ;;  %v986_v0 = vadd.f32 %v3333_v37, %v3687_v1  ;;  %v1242_v2 = vadd.f32 %v3397_v40, %v3687_v1  ;;  %v1236_v3 = vpop.f32.mrf.mxu1 }
 0x110   : > { %v1723_v63 = vsel %vm1467_vm6, %v1229_v49, %v1595_v55  ;;  %v2921_v4 = vpack.c.bf16 %v1659_v62, %v1658_v47  ;;  %vm1401_vm7 = vcmp.ge.f32.partialorder %v965_v59, 0.0  ;;  %v1529_v6 = vmul.f32 0.2, %v965_v59  ;;  %v3337_v7 = vpop.f32.mrf.mxu0 }
 0x111   : > { %v3081_v5 = vpack.c.bf16 %v1723_v63, %v1722_v48  ;;  %vm1465_vm8 = vcmp.ge.f32.partialorder %v1221_v60, 0.0  ;;  %v1593_v8 = vmul.f32 0.2, %v1221_v60  ;;  %vm1406_vm9 = vcmp.ge.f32.partialorder %v986_v0, 0.0  ;;  %v3401_v10 = vpop.f32.mrf.mxu1 }
 0x112   : > { %v1534_v9 = vmul.f32 0.2, %v986_v0  ;;  %3185 = vst [vmem:[%s3702_s25 + $0x68] sm:$0xff] %v2921_v4   ;;  %v1657_v11 = vsel %vm1401_vm7, %v965_v59, %v1529_v6  ;;  %vm1470_vm10 = vcmp.ge.f32.partialorder %v1242_v2, 0.0  ;;  %v1598_v12 = vmul.f32 0.2, %v1242_v2  ;;  %v993_v14 = vpop.f32.mrf.mxu0 }
 0x113   : > { %3217 = vst [vmem:[%s3702_s25 + $0x168] sm:$0xff] %v3081_v5   ;;  %v978_v13 = vadd.f32 %v3687_v1, %v977_v45  ;;  %v2916_v15 = vpack.c.bf16 %v1657_v11, %v1656_v57  ;;  %v1721_v16 = vsel %vm1465_vm8, %v1221_v60, %v1593_v8  ;;  %v1234_v18 = vadd.f32 %v3687_v1, %v1233_v50  ;;  %v1249_v19 = vpop.f32.mrf.mxu1 }
 0x114   : > { %v1662_v17 = vsel %vm1406_vm9, %v986_v0, %v1534_v9  ;;  %v3076_v20 = vpack.c.bf16 %v1721_v16, %v1720_v58  ;;  %v1726_v21 = vsel %vm1470_vm10, %v1242_v2, %v1598_v12  ;;  %v3338_v23 = vpop.f32.mrf.mxu0  ;;  %v989_v25 = vadd.f32 %v3334_v53, %v3687_v1 }
 0x115   : > { %vm1404_vm11 = vcmp.ge.f32.partialorder %v978_v13, 0.0  ;;  %v1532_v22 = vmul.f32 0.2, %v978_v13  ;;  %3184 = vst [vmem:[%s3702_s25 + $0x60] sm:$0xff] %v2916_v15   ;;  %vm1468_vm12 = vcmp.ge.f32.partialorder %v1234_v18, 0.0  ;;  %v1245_v26 = vadd.f32 %v3398_v56, %v3687_v1  ;;  %v3402_v27 = vpop.f32.mrf.mxu1 }
 0x116   : > { %v1596_v24 = vmul.f32 0.2, %v1234_v18  ;;  %3216 = vst [vmem:[%s3702_s25 + $0x160] sm:$0xff] %v3076_v20   ;;  %v981_v29 = vadd.f32 %v3687_v1, %v980_v61  ;;  %v1237_v30 = vadd.f32 %v3687_v1, %v1236_v3  ;;  %v1002_v31 = vadd.f32 %v3337_v7, %v3687_v1  ;;  %v996_v32 = vpop.f32.mrf.mxu0 }
 0x117   : > { %v1660_v28 = vsel %vm1404_vm11, %v978_v13, %v1532_v22  ;;  %vm1407_vm13 = vcmp.ge.f32.partialorder %v989_v25, 0.0  ;;  %v1535_v34 = vmul.f32 0.2, %v989_v25  ;;  %vm1471_vm14 = vcmp.ge.f32.partialorder %v1245_v26, 0.0  ;;  %v1252_v35 = vpop.f32.mrf.mxu1 }
 0x118   : > { %v1724_v33 = vsel %vm1468_vm12, %v1234_v18, %v1596_v24  ;;  %v1599_v36 = vmul.f32 0.2, %v1245_v26  ;;  %vm1405_vm15 = vcmp.ge.f32.partialorder %v981_v29, 0.0  ;;  %v1533_v37 = vmul.f32 0.2, %v981_v29  ;;  %v3341_v38 = vpop.f32.mrf.mxu0 }
 0x119   : > { %vm1469_vm0 = vcmp.ge.f32.partialorder %v1237_v30, 0.0  ;;  %v1663_v39 = vsel %vm1407_vm13, %v989_v25, %v1535_v34  ;;  %v1597_v40 = vmul.f32 0.2, %v1237_v30  ;;  %vm1410_vm1 = vcmp.ge.f32.partialorder %v1002_v31, 0.0  ;;  %v3405_v42 = vpop.f32.mrf.mxu1 }
 0x11a   : > { %v1538_v41 = vmul.f32 0.2, %v1002_v31  ;;  %v2931_v43 = vpack.c.bf16 %v1663_v39, %v1662_v17  ;;  %v1727_v44 = vsel %vm1471_vm14, %v1245_v26, %v1599_v36  ;;  %v1661_v45 = vsel %vm1405_vm15, %v981_v29, %v1533_v37  ;;  %v1009_v47 = vpop.f32.mrf.mxu0 }
 0x11b   : > { %v1258_v46 = vadd.f32 %v3401_v10, %v3687_v1  ;;  %v3091_v48 = vpack.c.bf16 %v1727_v44, %v1726_v21  ;;  %v2926_v49 = vpack.c.bf16 %v1661_v45, %v1660_v28  ;;  %v1725_v50 = vsel %vm1469_vm0, %v1237_v30, %v1597_v40  ;;  %v1265_v52 = vpop.f32.mrf.mxu1 }
 0x11c   : > { %v1666_v51 = vsel %vm1410_vm1, %v1002_v31, %v1538_v41  ;;  %3187 = vst [vmem:[%s3702_s25 + $0x78] sm:$0xff] %v2931_v43   ;;  %v3086_v53 = vpack.c.bf16 %v1725_v50, %v1724_v33  ;;  %v994_v55 = vadd.f32 %v3687_v1, %v993_v14  ;;  %v3342_v56 = vpop.f32.mrf.mxu0  ;;  %v1250_v57 = vadd.f32 %v3687_v1, %v1249_v19 }
 0x11d   : > { %vm1474_vm2 = vcmp.ge.f32.partialorder %v1258_v46, 0.0  ;;  %v1602_v54 = vmul.f32 0.2, %v1258_v46  ;;  %3219 = vst [vmem:[%s3702_s25 + $0x178] sm:$0xff] %v3091_v48   ;;  %3186 = vst [vmem:[%s3702_s25 + $0x70] sm:$0xff] %v2926_v49   ;;  %v1005_v58 = vadd.f32 %v3338_v23, %v3687_v1  ;;  %v1261_v59 = vadd.f32 %v3402_v27, %v3687_v1  ;;  %v3406_v61 = vpop.f32.mrf.mxu1 }
 0x11e   : > { %v997_v60 = vadd.f32 %v3687_v1, %v996_v32  ;;  %3218 = vst [vmem:[%s3702_s25 + $0x170] sm:$0xff] %v3086_v53   ;;  %vm1408_vm3 = vcmp.ge.f32.partialorder %v994_v55, 0.0  ;;  %v1536_v63 = vmul.f32 0.2, %v994_v55  ;;  %v1253_v0 = vadd.f32 %v3687_v1, %v1252_v35  ;;  %v1012_v2 = vpop.f32.mrf.mxu0 }
 0x11f   : > { %v1730_v62 = vsel %vm1474_vm2, %v1258_v46, %v1602_v54  ;;  %vm1472_vm4 = vcmp.ge.f32.partialorder %v1250_v57, 0.0  ;;  %v1600_v3 = vmul.f32 0.2, %v1250_v57  ;;  %vm1411_vm5 = vcmp.ge.f32.partialorder %v1005_v58, 0.0  ;;  %v1268_v5 = vpop.f32.mrf.mxu1 }
 0x120   : > { %v1539_v4 = vmul.f32 0.2, %v1005_v58  ;;  %v1664_v6 = vsel %vm1408_vm3, %v994_v55, %v1536_v63  ;;  %vm1475_vm6 = vcmp.ge.f32.partialorder %v1261_v59, 0.0  ;;  %v1603_v7 = vmul.f32 0.2, %v1261_v59  ;;  %v3345_v8 = vpop.f32.mrf.mxu0 }
 0x121   : > { %vm1409_vm7 = vcmp.ge.f32.partialorder %v997_v60, 0.0  ;;  %v1728_v9 = vsel %vm1472_vm4, %v1250_v57, %v1600_v3  ;;  %v1537_v11 = vmul.f32 0.2, %v997_v60  ;;  %vm1473_vm8 = vcmp.ge.f32.partialorder %v1253_v0, 0.0  ;;  %v3409_v12 = vpop.f32.mrf.mxu1 }
 0x122   : > { %v1667_v10 = vsel %vm1411_vm5, %v1005_v58, %v1539_v4  ;;  %v1731_v14 = vsel %vm1475_vm6, %v1261_v59, %v1603_v7  ;;  %v1601_v15 = vmul.f32 0.2, %v1253_v0  ;;  %v1018_v16 = vadd.f32 %v3341_v38, %v3687_v1  ;;  %v3801_v17 = vpop.f32.mrf.mxu0 }
 0x123   : > { %v2941_v13 = vpack.c.bf16 %v1667_v10, %v1666_v51  ;;  %v3101_v18 = vpack.c.bf16 %v1731_v14, %v1730_v62  ;;  %v1665_v19 = vsel %vm1409_vm7, %v997_v60, %v1537_v11  ;;  %v1274_v20 = vadd.f32 %v3405_v42, %v3687_v1  ;;  %v1281_v22 = vpop.f32.mrf.mxu1 }
 0x124   : > { %v1010_v21 = vadd.f32 %v3687_v1, %v1009_v47  ;;  %v2936_v23 = vpack.c.bf16 %v1665_v19, %v1664_v6  ;;  %v1729_v24 = vsel %vm1473_vm8, %v1253_v0, %v1601_v15  ;;  %vm1414_vm9 = vcmp.ge.f32.partialorder %v1018_v16, 0.0  ;;  %v3346_v26 = vpop.f32.mrf.mxu0 }
 0x125   : > { %3189 = vst [vmem:[%s3702_s25 + $0x88] sm:$0xff] %v2941_v13   ;;  %v1542_v25 = vmul.f32 0.2, %v1018_v16  ;;  %3221 = vst [vmem:[%s3702_s25 + $0x188] sm:$0xff] %v3101_v18   ;;  %v3096_v27 = vpack.c.bf16 %v1729_v24, %v1728_v9  ;;  %vm1478_vm10 = vcmp.ge.f32.partialorder %v1274_v20, 0.0  ;;  %v3410_v29 = vpop.f32.mrf.mxu1  ;;  %v1266_v32 = vadd.f32 %v3687_v1, %v1265_v52 }
 0x126   : > { %v1606_v28 = vmul.f32 0.2, %v1274_v20  ;;  %vm1412_vm11 = vcmp.ge.f32.partialorder %v1010_v21, 0.0  ;;  %3188 = vst [vmem:[%s3702_s25 + $0x80] sm:$0xff] %v2936_v23   ;;  %v1540_v31 = vmul.f32 0.2, %v1010_v21  ;;  %v1021_v33 = vadd.f32 %v3342_v56, %v3687_v1  ;;  %v1028_v34 = vpop.f32.mrf.mxu0 }
 0x127   : > { %v1670_v30 = vsel %vm1414_vm9, %v1018_v16, %v1542_v25  ;;  %3220 = vst [vmem:[%s3702_s25 + $0x180] sm:$0xff] %v3096_v27   ;;  %v1277_v36 = vadd.f32 %v3406_v61, %v3687_v1  ;;  %v1013_v37 = vadd.f32 %v3687_v1, %v1012_v2  ;;  %v1269_v38 = vadd.f32 %v3687_v1, %v1268_v5  ;;  %v3814_v39 = vpop.f32.mrf.mxu1 }
 0x128   : > { %v1734_v35 = vsel %vm1478_vm10, %v1274_v20, %v1606_v28  ;;  %v1668_v40 = vsel %vm1412_vm11, %v1010_v21, %v1540_v31  ;;  %vm1476_vm12 = vcmp.ge.f32.partialorder %v1266_v32, 0.0  ;;  %v1604_v41 = vmul.f32 0.2, %v1266_v32  ;;  %v3349_v42 = vpop.f32.mrf.mxu0  ;;  %v3845_v21 = vld [vmem:[%s3974_s2] ss:$0 sm:$0xff] }
 0x129   : > { %vm1415_vm13 = vcmp.ge.f32.partialorder %v1021_v33, 0.0  ;;  %v1543_v43 = vmul.f32 0.2, %v1021_v33  ;;  %vm1479_vm14 = vcmp.ge.f32.partialorder %v1277_v36, 0.0  ;;  %v1607_v44 = vmul.f32 0.2, %v1277_v36  ;;  %v3413_v45 = vpop.f32.mrf.mxu1 }
 0x12a   : > { %vm1413_vm15 = vcmp.ge.f32.partialorder %v1013_v37, 0.0  ;;  %v1732_v46 = vsel %vm1476_vm12, %v1266_v32, %v1604_v41  ;;  %v1541_v47 = vmul.f32 0.2, %v1013_v37  ;;  %vm1477_vm0 = vcmp.ge.f32.partialorder %v1269_v38, 0.0  ;;  %v3816_v49 = vpop.f32.mrf.mxu0 }
 0x12b   : > { %v1605_v48 = vmul.f32 0.2, %v1269_v38  ;;  %v1671_v50 = vsel %vm1415_vm13, %v1021_v33, %v1543_v43  ;;  %v1735_v51 = vsel %vm1479_vm14, %v1277_v36, %v1607_v44  ;;  %v1034_v52 = vadd.f32 %v3345_v8, %v3687_v1  ;;  %v3820_v54 = vpop.f32.mrf.mxu1 }
 0x12c   : > { %v1290_v53 = vadd.f32 %v3409_v12, %v3687_v1  ;;  %v2951_v55 = vpack.c.bf16 %v1671_v50, %v1670_v30  ;;  %v3111_v56 = vpack.c.bf16 %v1735_v51, %v1734_v35  ;;  %v1669_v57 = vsel %vm1413_vm15, %v1013_v37, %v1541_v47  ;;  %v3350_v59 = vpop.f32.mrf.mxu0 }
 0x12d   : > { %v1733_v58 = vsel %vm1477_vm0, %v1269_v38, %v1605_v48  ;;  %v2946_v60 = vpack.c.bf16 %v1669_v57, %v1668_v40  ;;  %vm1418_vm1 = vcmp.ge.f32.partialorder %v1034_v52, 0.0  ;;  %v1546_v62 = vmul.f32 0.2, %v1034_v52  ;;  %v3822_v63 = vpop.f32.mrf.mxu1 }
 0x12e   : > { %v3106_v61 = vpack.c.bf16 %v1733_v58, %v1732_v46  ;;  %3191 = vst [vmem:[%s3702_s25 + $0x98] sm:$0xff] %v2951_v55   ;;  %3223 = vst [vmem:[%s3702_s25 + $0x198] sm:$0xff] %v3111_v56   ;;  %vm1482_vm2 = vcmp.ge.f32.partialorder %v1290_v53, 0.0  ;;  %v1610_v0 = vmul.f32 0.2, %v1290_v53  ;;  %v1026_v2 = vadd.f32 %v3687_v1, %v3801_v17  ;;  %v3829_v4 = vpop.f32.mrf.mxu0 }
 0x12f   : > { %v1282_v3 = vadd.f32 %v3687_v1, %v1281_v22  ;;  %3190 = vst [vmem:[%s3702_s25 + $0x90] sm:$0xff] %v2946_v60   ;;  %v1674_v5 = vsel %vm1418_vm1, %v1034_v52, %v1546_v62  ;;  %v1037_v6 = vadd.f32 %v3346_v26, %v3687_v1  ;;  %v1293_v7 = vadd.f32 %v3410_v29, %v3687_v1  ;;  %v3836_v9 = vpop.f32.mrf.mxu1 }
 0x130   : > { %3222 = vst [vmem:[%s3702_s25 + $0x190] sm:$0xff] %v3106_v61   ;;  %v1029_v8 = vadd.f32 %v3687_v1, %v1028_v34  ;;  %v1738_v10 = vsel %vm1482_vm2, %v1290_v53, %v1610_v0  ;;  %vm1416_vm3 = vcmp.ge.f32.partialorder %v1026_v2, 0.0  ;;  %v1544_v11 = vmul.f32 0.2, %v1026_v2  ;;  %v3838_v12 = vpop.f32.mrf.mxu0 }
 0x131   : > { %vm1480_vm4 = vcmp.ge.f32.partialorder %v1282_v3, 0.0  ;;  %v1608_v13 = vmul.f32 0.2, %v1282_v3  ;;  %vm1419_vm5 = vcmp.ge.f32.partialorder %v1037_v6, 0.0  ;;  %v1547_v14 = vmul.f32 0.2, %v1037_v6  ;;  %v3417_v15 = vpop.f32.mrf.mxu1 }
 0x132   : > { %vm1483_vm6 = vcmp.ge.f32.partialorder %v1293_v7, 0.0  ;;  %v1672_v16 = vsel %vm1416_vm3, %v1026_v2, %v1544_v11  ;;  %v1611_v17 = vmul.f32 0.2, %v1293_v7  ;;  %vm1417_vm7 = vcmp.ge.f32.partialorder %v1029_v8, 0.0  ;;  %v3840_v19 = vpop.f32.mrf.mxu0 }
 0x133   : > { %v1545_v18 = vmul.f32 0.2, %v1029_v8  ;;  %v1736_v1 = vsel %vm1480_vm4, %v1282_v3, %v1608_v13  ;;  %v1675_v20 = vsel %vm1419_vm5, %v1037_v6, %v1547_v14  ;;  %v1285_v22 = vadd.f32 %v3845_v21, %v3814_v39  ;;  %v3850_v24 = vpop.f32.mrf.mxu1 }
 0x134   : > { %v1050_v23 = vadd.f32 %v3845_v21, %v3349_v42  ;;  %v2961_v25 = vpack.c.bf16 %v1675_v20, %v1674_v5  ;;  %v1739_v26 = vsel %vm1483_vm6, %v1293_v7, %v1611_v17  ;;  %v1306_v28 = vadd.f32 %v3845_v21, %v3413_v45  ;;  %v3853_v29 = vpop.f32.mrf.mxu0 }
 0x135   : > { %v1673_v27 = vsel %vm1417_vm7, %v1029_v8, %v1545_v18  ;;  %v3121_v30 = vpack.c.bf16 %v1739_v26, %v1738_v10  ;;  %vm1481_vm8 = vcmp.ge.f32.partialorder %v1285_v22, 0.0  ;;  %v1609_v32 = vmul.f32 0.2, %v1285_v22  ;;  %v3855_v33 = vpop.f32.mrf.mxu1 }
 0x136   : > { %v2956_v31 = vpack.c.bf16 %v1673_v27, %v1672_v16  ;;  %3193 = vst [vmem:[%s3702_s25 + $0xa8] sm:$0xff] %v2961_v25   ;;  %vm1422_vm9 = vcmp.ge.f32.partialorder %v1050_v23, 0.0  ;;  %v1550_v34 = vmul.f32 0.2, %v1050_v23  ;;  %vm1486_vm10 = vcmp.ge.f32.partialorder %v1306_v28, 0.0  ;;  %v3858_v36 = vpop.f32.mrf.mxu0 }
 0x137   : > { %v1614_v35 = vmul.f32 0.2, %v1306_v28  ;;  %3225 = vst [vmem:[%s3702_s25 + $0x1a8] sm:$0xff] %v3121_v30   ;;  %v1737_v37 = vsel %vm1481_vm8, %v1285_v22, %v1609_v32  ;;  %v1042_v38 = vadd.f32 %v3845_v21, %v3816_v49  ;;  %v1298_v39 = vadd.f32 %v3845_v21, %v3820_v54  ;;  %v3867_v41 = vpop.f32.mrf.mxu1 }
 0x138   : > { %3192 = vst [vmem:[%s3702_s25 + $0xa0] sm:$0xff] %v2956_v31   ;;  %v1053_v40 = vadd.f32 %v3845_v21, %v3350_v59  ;;  %v3116_v42 = vpack.c.bf16 %v1737_v37, %v1736_v1  ;;  %v1678_v43 = vsel %vm1422_vm9, %v1050_v23, %v1550_v34  ;;  %v1309_v45 = vadd.f32 %v3845_v21, %v3822_v63  ;;  %v3357_v46 = vpop.f32.mrf.mxu0 }
 0x139   : > { %v1742_v44 = vsel %vm1486_vm10, %v1306_v28, %v1614_v35  ;;  %vm1420_vm11 = vcmp.ge.f32.partialorder %v1042_v38, 0.0  ;;  %v1548_v47 = vmul.f32 0.2, %v1042_v38  ;;  %vm1484_vm12 = vcmp.ge.f32.partialorder %v1298_v39, 0.0  ;;  %v3871_v50 = vpop.f32.mrf.mxu1 }
 0x13a   : > { %v1612_v48 = vmul.f32 0.2, %v1298_v39  ;;  %3224 = vst [vmem:[%s3702_s25 + $0x1a0] sm:$0xff] %v3116_v42   ;;  %vm1423_vm13 = vcmp.ge.f32.partialorder %v1053_v40, 0.0  ;;  %v1551_v49 = vmul.f32 0.2, %v1053_v40  ;;  %v3874_v52 = vpop.f32.mrf.mxu0  ;;  %v1045_v55 = vadd.f32 %v3845_v21, %v3829_v4 }
 0x13b   : > { %vm1487_vm14 = vcmp.ge.f32.partialorder %v1309_v45, 0.0  ;;  %v1615_v51 = vmul.f32 0.2, %v1309_v45  ;;  %v1676_v53 = vsel %vm1420_vm11, %v1042_v38, %v1548_v47  ;;  %v1301_v56 = vadd.f32 %v3845_v21, %v3836_v9  ;;  %v3880_v57 = vpop.f32.mrf.mxu1 }
 0x13c   : > { %v1740_v54 = vsel %vm1484_vm12, %v1298_v39, %v1612_v48  ;;  %v1679_v58 = vsel %vm1423_vm13, %v1053_v40, %v1551_v49  ;;  %v1066_v60 = vadd.f32 %v3845_v21, %v3838_v12  ;;  %v1322_v61 = vadd.f32 %v3845_v21, %v3417_v15  ;;  %v3885_v62 = vpop.f32.mrf.mxu0 }
 0x13d   : > { %v1743_v59 = vsel %vm1487_vm14, %v1309_v45, %v1615_v51  ;;  %v2971_v63 = vpack.c.bf16 %v1679_v58, %v1678_v43  ;;  %vm1421_vm15 = vcmp.ge.f32.partialorder %v1045_v55, 0.0  ;;  %v1549_v2 = vmul.f32 0.2, %v1045_v55  ;;  %v3887_v3 = vpop.f32.mrf.mxu1 }
 0x13e   : > { %v3131_v0 = vpack.c.bf16 %v1743_v59, %v1742_v44  ;;  %vm1485_vm0 = vcmp.ge.f32.partialorder %v1301_v56, 0.0  ;;  %v1613_v4 = vmul.f32 0.2, %v1301_v56  ;;  %vm1426_vm1 = vcmp.ge.f32.partialorder %v1066_v60, 0.0  ;;  %v3889_v6 = vpop.f32.mrf.mxu0 }
 0x13f   : > { %v1554_v5 = vmul.f32 0.2, %v1066_v60  ;;  %3195 = vst [vmem:[%s3702_s25 + $0xb8] sm:$0xff] %v2971_v63   ;;  %v1677_v7 = vsel %vm1421_vm15, %v1045_v55, %v1549_v2  ;;  %vm1490_vm2 = vcmp.ge.f32.partialorder %v1322_v61, 0.0  ;;  %v1618_v8 = vmul.f32 0.2, %v1322_v61  ;;  %v1332_v10 = vpop.f32.mrf.mxu1 }
 0x140   : > { %3227 = vst [vmem:[%s3702_s25 + $0x1b8] sm:$0xff] %v3131_v0   ;;  %v1058_v9 = vadd.f32 %v3845_v21, %v3840_v19  ;;  %v2966_v11 = vpack.c.bf16 %v1677_v7, %v1676_v53  ;;  %v1741_v12 = vsel %vm1485_vm0, %v1301_v56, %v1613_v4  ;;  %v1314_v14 = vadd.f32 %v3845_v21, %v3850_v24  ;;  %v3897_v15 = vpop.f32.mrf.mxu0 }
 0x141   : > { %v1682_v13 = vsel %vm1426_vm1, %v1066_v60, %v1554_v5  ;;  %v3126_v16 = vpack.c.bf16 %v1741_v12, %v1740_v54  ;;  %v1746_v17 = vsel %vm1490_vm2, %v1322_v61, %v1618_v8  ;;  %v3899_v1 = vpop.f32.mrf.mxu1  ;;  %v1069_v19 = vadd.f32 %v3845_v21, %v3853_v29 }
 0x142   : > { %vm1424_vm3 = vcmp.ge.f32.partialorder %v1058_v9, 0.0  ;;  %v1552_v18 = vmul.f32 0.2, %v1058_v9  ;;  %3194 = vst [vmem:[%s3702_s25 + $0xb0] sm:$0xff] %v2966_v11   ;;  %vm1488_vm4 = vcmp.ge.f32.partialorder %v1314_v14, 0.0  ;;  %v1325_v22 = vadd.f32 %v3845_v21, %v3855_v33  ;;  %v3906_v23 = vpop.f32.mrf.mxu0 }
 0x143   : > { %v1616_v20 = vmul.f32 0.2, %v1314_v14  ;;  %3226 = vst [vmem:[%s3702_s25 + $0x1b0] sm:$0xff] %v3126_v16   ;;  %v1061_v25 = vadd.f32 %v3845_v21, %v3858_v36  ;;  %v1317_v26 = vadd.f32 %v3845_v21, %v3867_v41  ;;  %v1082_v27 = vadd.f32 %v3845_v21, %v3357_v46  ;;  %v3914_v32 = vpop.f32.mrf.mxu1 }
 0x144   : > { %v1680_v24 = vsel %vm1424_vm3, %v1058_v9, %v1552_v18  ;;  %vm1427_vm5 = vcmp.ge.f32.partialorder %v1069_v19, 0.0  ;;  %v1555_v30 = vmul.f32 0.2, %v1069_v19  ;;  %vm1491_vm6 = vcmp.ge.f32.partialorder %v1325_v22, 0.0  ;;  %v3916_v33 = vpop.f32.mrf.mxu0 }
 0x145   : > { %v1744_v28 = vsel %vm1488_vm4, %v1314_v14, %v1616_v20  ;;  %v1619_v29 = vmul.f32 0.2, %v1325_v22  ;;  %vm1425_vm7 = vcmp.ge.f32.partialorder %v1061_v25, 0.0  ;;  %v1553_v31 = vmul.f32 0.2, %v1061_v25  ;;  %v3426_v48 = vpop.f32.mrf.mxu1 }
 0x146   : > { %vm1489_vm8 = vcmp.ge.f32.partialorder %v1317_v26, 0.0  ;;  %v1683_v34 = vsel %vm1427_vm5, %v1069_v19, %v1555_v30  ;;  %v1617_v35 = vmul.f32 0.2, %v1317_v26  ;;  %vm1430_vm9 = vcmp.ge.f32.partialorder %v1082_v27, 0.0  ;;  %v1092_v49 = vpop.f32.mrf.mxu0 }
 0x147   : > { %v1558_v36 = vmul.f32 0.2, %v1082_v27  ;;  %v2981_v37 = vpack.c.bf16 %v1683_v34, %v1682_v13  ;;  %v1747_v38 = vsel %vm1491_vm6, %v1325_v22, %v1619_v29  ;;  %v1681_v39 = vsel %vm1425_vm7, %v1061_v25, %v1553_v31  ;;  %v1348_v61 = vpop.f32.mrf.mxu1 }
 0x148   : > { %v1338_v40 = vadd.f32 %v3845_v21, %v3871_v50  ;;  %v3141_v41 = vpack.c.bf16 %v1747_v38, %v1746_v17  ;;  %v2976_v42 = vpack.c.bf16 %v1681_v39, %v1680_v24  ;;  %v1745_v43 = vsel %vm1489_vm8, %v1317_v26, %v1617_v35 }
 0x149   : > { %v1686_v44 = vsel %vm1430_vm9, %v1082_v27, %v1558_v36  ;;  %3197 = vst [vmem:[%s3702_s25 + $0xc8] sm:$0xff] %v2981_v37   ;;  %v3136_v45 = vpack.c.bf16 %v1745_v43, %v1744_v28  ;;  %v1074_v47 = vadd.f32 %v3845_v21, %v3874_v52  ;;  %v1330_v51 = vadd.f32 %v3845_v21, %v3880_v57  ;;  %v3429_v14 = vpop.f32.mrf.mxu1 }
 0x14a   : > { %vm1494_vm10 = vcmp.ge.f32.partialorder %v1338_v40, 0.0  ;;  %v1622_v46 = vmul.f32 0.2, %v1338_v40  ;;  %3229 = vst [vmem:[%s3702_s25 + $0x1c8] sm:$0xff] %v3141_v41   ;;  %3196 = vst [vmem:[%s3702_s25 + $0xc0] sm:$0xff] %v2976_v42   ;;  %v1085_v50 = vadd.f32 %v3845_v21, %v3885_v62  ;;  %v1341_v53 = vadd.f32 %v3845_v21, %v3887_v3  ;;  %v3365_v62 = vpop.f32.mrf.mxu0 }
 0x14b   : > { %v1077_v54 = vadd.f32 %v3845_v21, %v3889_v6  ;;  %3228 = vst [vmem:[%s3702_s25 + $0x1c0] sm:$0xff] %v3136_v45   ;;  %vm1428_vm11 = vcmp.ge.f32.partialorder %v1074_v47, 0.0  ;;  %v1556_v52 = vmul.f32 0.2, %v1074_v47  ;;  %v1333_v56 = vadd.f32 %v3845_v21, %v1332_v10  ;;  %v1361_v28 = vpop.f32.mrf.mxu1 }
 0x14c   : > { %v1750_v55 = vsel %vm1494_vm10, %v1338_v40, %v1622_v46  ;;  %vm1492_vm12 = vcmp.ge.f32.partialorder %v1330_v51, 0.0  ;;  %v1620_v58 = vmul.f32 0.2, %v1330_v51  ;;  %vm1431_vm13 = vcmp.ge.f32.partialorder %v1085_v50, 0.0  ;;  %v1105_v16 = vpop.f32.mrf.mxu0 }
 0x14d   : > { %v1559_v59 = vmul.f32 0.2, %v1085_v50  ;;  %v1684_v57 = vsel %vm1428_vm11, %v1074_v47, %v1556_v52  ;;  %vm1495_vm14 = vcmp.ge.f32.partialorder %v1341_v53, 0.0  ;;  %v1623_v60 = vmul.f32 0.2, %v1341_v53  ;;  %v3430_v43 = vpop.f32.mrf.mxu1 }
 0x14e   : > { %vm1429_vm15 = vcmp.ge.f32.partialorder %v1077_v54, 0.0  ;;  %v1748_v63 = vsel %vm1492_vm12, %v1330_v51, %v1620_v58  ;;  %v1557_v2 = vmul.f32 0.2, %v1077_v54  ;;  %vm1493_vm0 = vcmp.ge.f32.partialorder %v1333_v56, 0.0  ;;  %v3366_v30 = vpop.f32.mrf.mxu0 }
 0x14f   : > { %v1687_v0 = vsel %vm1431_vm13, %v1085_v50, %v1559_v59  ;;  %v1751_v4 = vsel %vm1495_vm14, %v1341_v53, %v1623_v60  ;;  %v1621_v5 = vmul.f32 0.2, %v1333_v56  ;;  %v1098_v6 = vadd.f32 %v3845_v21, %v3897_v15 }
 0x150   : > { %v2991_v3 = vpack.c.bf16 %v1687_v0, %v1686_v44  ;;  %v3151_v7 = vpack.c.bf16 %v1751_v4, %v1750_v55  ;;  %v1685_v8 = vsel %vm1429_vm15, %v1077_v54, %v1557_v2  ;;  %v1354_v9 = vadd.f32 %v3845_v21, %v3899_v1  ;;  %v1108_v44 = vpop.f32.mrf.mxu0 }
 0x151   : > { %v1090_v10 = vadd.f32 %v3845_v21, %v3906_v23  ;;  %v2986_v11 = vpack.c.bf16 %v1685_v8, %v1684_v57  ;;  %v1749_v12 = vsel %vm1493_vm0, %v1333_v56, %v1621_v5  ;;  %vm1434_vm1 = vcmp.ge.f32.partialorder %v1098_v6, 0.0  ;;  %v1364_v56 = vpop.f32.mrf.mxu1 }
 0x152   : > { %3199 = vst [vmem:[%s3702_s25 + $0xd8] sm:$0xff] %v2991_v3   ;;  %v1562_v13 = vmul.f32 0.2, %v1098_v6  ;;  %3231 = vst [vmem:[%s3702_s25 + $0x1d8] sm:$0xff] %v3151_v7   ;;  %v3146_v17 = vpack.c.bf16 %v1749_v12, %v1748_v63  ;;  %vm1498_vm2 = vcmp.ge.f32.partialorder %v1354_v9, 0.0  ;;  %v1346_v1 = vadd.f32 %v3845_v21, %v3914_v32 }
 0x153   : > { %v1626_v15 = vmul.f32 0.2, %v1354_v9  ;;  %vm1432_vm3 = vcmp.ge.f32.partialorder %v1090_v10, 0.0  ;;  %3198 = vst [vmem:[%s3702_s25 + $0xd0] sm:$0xff] %v2986_v11   ;;  %v1560_v20 = vmul.f32 0.2, %v1090_v10  ;;  %v1101_v19 = vadd.f32 %v3845_v21, %v3916_v33 }
 0x154   : > { %v1690_v18 = vsel %vm1434_vm1, %v1098_v6, %v1562_v13  ;;  %3230 = vst [vmem:[%s3702_s25 + $0x1d0] sm:$0xff] %v3146_v17   ;;  %v1357_v23 = vadd.f32 %v3845_v21, %v3426_v48  ;;  %v1093_v24 = vadd.f32 %v3845_v21, %v1092_v49  ;;  %v1349_v25 = vadd.f32 %v3845_v21, %v1348_v61 }
 0x155   : > { %v1754_v22 = vsel %vm1498_vm2, %v1354_v9, %v1626_v15  ;;  %v1688_v26 = vsel %vm1432_vm3, %v1090_v10, %v1560_v20  ;;  %vm1496_vm4 = vcmp.ge.f32.partialorder %v1346_v1, 0.0  ;;  %v1624_v27 = vmul.f32 0.2, %v1346_v1 }
 0x156   : > { %vm1435_vm5 = vcmp.ge.f32.partialorder %v1101_v19, 0.0  ;;  %v1563_v29 = vmul.f32 0.2, %v1101_v19  ;;  %vm1499_vm6 = vcmp.ge.f32.partialorder %v1357_v23, 0.0  ;;  %v1627_v31 = vmul.f32 0.2, %v1357_v23 }
 0x157   : > { %vm1433_vm7 = vcmp.ge.f32.partialorder %v1093_v24, 0.0  ;;  %v1752_v32 = vsel %vm1496_vm4, %v1346_v1, %v1624_v27  ;;  %v1561_v33 = vmul.f32 0.2, %v1093_v24  ;;  %vm1497_vm8 = vcmp.ge.f32.partialorder %v1349_v25, 0.0 }
 0x158   : > { %v1625_v34 = vmul.f32 0.2, %v1349_v25  ;;  %v1691_v35 = vsel %vm1435_vm5, %v1101_v19, %v1563_v29  ;;  %v1755_v36 = vsel %vm1499_vm6, %v1357_v23, %v1627_v31  ;;  %v1114_v37 = vadd.f32 %v3845_v21, %v3365_v62 }
 0x159   : > { %v1370_v38 = vadd.f32 %v3845_v21, %v3429_v14  ;;  %v3001_v39 = vpack.c.bf16 %v1691_v35, %v1690_v18  ;;  %v3161_v40 = vpack.c.bf16 %v1755_v36, %v1754_v22  ;;  %v1689_v41 = vsel %vm1433_vm7, %v1093_v24, %v1561_v33 }
 0x15a   : > { %v1753_v42 = vsel %vm1497_vm8, %v1349_v25, %v1625_v34  ;;  %v2996_v45 = vpack.c.bf16 %v1689_v41, %v1688_v26  ;;  %vm1438_vm9 = vcmp.ge.f32.partialorder %v1114_v37, 0.0  ;;  %v1566_v47 = vmul.f32 0.2, %v1114_v37 }
 0x15b   : > { %v3156_v46 = vpack.c.bf16 %v1753_v42, %v1752_v32  ;;  %3201 = vst [vmem:[%s3702_s25 + $0xe8] sm:$0xff] %v3001_v39   ;;  %3233 = vst [vmem:[%s3702_s25 + $0x1e8] sm:$0xff] %v3161_v40   ;;  %vm1502_vm10 = vcmp.ge.f32.partialorder %v1370_v38, 0.0  ;;  %v1630_v48 = vmul.f32 0.2, %v1370_v38  ;;  %v1106_v49 = vadd.f32 %v3845_v21, %v1105_v16 }
 0x15c   : > { %3200 = vst [vmem:[%s3702_s25 + $0xe0] sm:$0xff] %v2996_v45   ;;  %v1362_v51 = vadd.f32 %v3845_v21, %v1361_v28  ;;  %v1117_v50 = vadd.f32 %v3845_v21, %v3366_v30  ;;  %v1373_v53 = vadd.f32 %v3845_v21, %v3430_v43  ;;  %v1109_v54 = vadd.f32 %v3845_v21, %v1108_v44 }
 0x15d   : > { %3232 = vst [vmem:[%s3702_s25 + $0x1e0] sm:$0xff] %v3156_v46   ;;  %v1694_v55 = vsel %vm1438_vm9, %v1114_v37, %v1566_v47  ;;  %v1564_v52 = vmul.f32 0.2, %v1106_v49  ;;  %vm1436_vm11 = vcmp.ge.f32.partialorder %v1106_v49, 0.0  ;;  %v1758_v59 = vsel %vm1502_vm10, %v1370_v38, %v1630_v48 }
 0x15e   : > { %vm1439_vm12 = vcmp.ge.f32.partialorder %v1117_v50, 0.0  ;;  %v1567_v58 = vmul.f32 0.2, %v1117_v50  ;;  %vm1503_vm13 = vcmp.ge.f32.partialorder %v1373_v53, 0.0  ;;  %v1631_v57 = vmul.f32 0.2, %v1373_v53 }
 0x15f   : > { %vm1437_vm14 = vcmp.ge.f32.partialorder %v1109_v54, 0.0  ;;  %v1565_v60 = vmul.f32 0.2, %v1109_v54  ;;  %vm1500_vm15 = vcmp.ge.f32.partialorder %v1362_v51, 0.0  ;;  %v1628_v61 = vmul.f32 0.2, %v1362_v51 }
 0x160   : > { %v1695_v62 = vsel %vm1439_vm12, %v1117_v50, %v1567_v58  ;;  %v1365_v63 = vadd.f32 %v3845_v21, %v1364_v56  ;;  %v1692_v0 = vsel %vm1436_vm11, %v1106_v49, %v1564_v52  ;;  %v1759_v3 = vsel %vm1503_vm13, %v1373_v53, %v1631_v57 }
 0x161   : > { %v3011_v2 = vpack.c.bf16 %v1695_v62, %v1694_v55  ;;  %v1693_v4 = vsel %vm1437_vm14, %v1109_v54, %v1565_v60  ;;  %v3171_v5 = vpack.c.bf16 %v1759_v3, %v1758_v59  ;;  %v1756_v8 = vsel %vm1500_vm15, %v1362_v51, %v1628_v61 }
 0x162   : > { %v3006_v6 = vpack.c.bf16 %v1693_v4, %v1692_v0  ;;  %vm1501_vm0 = vcmp.ge.f32.partialorder %v1365_v63, 0.0  ;;  %v1629_v7 = vmul.f32 0.2, %v1365_v63 }
 0x163   : > { %3203 = vst [vmem:[%s3702_s25 + $0xf8] sm:$0xff] %v3011_v2   ;;  %3235 = vst [vmem:[%s3702_s25 + $0x1f8] sm:$0xff] %v3171_v5  }
 0x164   : > { %3202 = vst [vmem:[%s3702_s25 + $0xf0] sm:$0xff] %v3006_v6   ;;  %v1757_v9 = vsel %vm1501_vm0, %v1365_v63, %v1629_v7 }
 0x165   : > { %v3166_v10 = vpack.c.bf16 %v1757_v9, %v1756_v8 }
 0x167   : > { %3234 = vst [vmem:[%s3702_s25 + $0x1f0] sm:$0xff] %v3166_v10  }
 0x168 PF: > { %s13_s12 = sadd.s32 1, %s3513_s12  }
 0x169   : > { %p10_p4 = scmp.ge.s32.totalorder %s13_s12, 4  }
 0x16b   :  { %12 = sbr.rel (!%p10_p4) target bundleno = 1 (0x1), region = 62 }

// kernel: discriminator_forward.6
= control target key start
LH: loop header
LB: loop body
LE: loop exit
PB: predicated region body
PF: predicated region fallthrough
CT: control target
= control target key end

     0   :  { %s1190_s12 = smov 0   ;;  %s1315_s0 = inlined_call_operand.vmem [shape: bf16[512,128], index: 0, kind: input, shape index: {}]   ;;  %s1316_s1 = inlined_call_operand.vmem [shape: bf16[128,128], index: 1, kind: input, shape index: {}]   ;;  %s1317_s2 = inlined_call_operand.vmem [shape: f32[1,128], index: 2, kind: input, shape index: {}]   ;;  %s1318_s3 = inlined_call_operand.vmem [shape: bf16[512,128], index: 3, kind: output, shape index: {}]  }
   0x1 LB: > { %s847_s13 = sadd.s32 4294967295, %s1168_s12   ;;  %p851_p0 = scmp.ge.s32.totalorder %s1168_s12, 1  ;;  %s1168_s12 = sphi %s1190_s12, %s13_s12  }
   0x2   : > { %p138_p1 = scmp.lt.s32.totalorder %s1168_s12, 3 }
   0x4   : > { %p139_p2 = pnand %p851_p0, %p138_p1 }
   0x5   : > { %s852_s16 = sshll.u32 (!%p139_p2), %s847_s13, 5 }
   0x6   : > { %142 = sbr.rel (%p139_p2) target bundleno = 279 (0x117), region = 32  ;;  %p163_p3 = scmp.lt.s32.totalorder (!%p139_p2), %s852_s16, 63 }
   0xb   : > { %v1138_v0 = vld [vmem:[%s1316_s1 + $0x38] sm:$0xff]   ;;  %v1139_v1 = vld [vmem:[%s1316_s1 + $0x30] sm:$0xff]   ;;  %s1320_s16 = smov (!%p163_p3, %s852_s16), 63  ;;  %v1140_v2 = vld [vmem:[%s1316_s1 + $0x28] sm:$0xff]  }
   0xc   : > { %1066 = vmatprep.subr.bf16.mxu0 %v1138_v0  ;;  %1114 = vmatprep.subr.bf16.mxu1 %v1138_v0  ;;  %s853_s21 = sshll.u32 %s1320_s16, 2  ;;  %v1141_v3 = vld [vmem:[%s1316_s1 + $0x20] sm:$0xff]   ;;  %v1142_v6 = vld [vmem:[%s1316_s1 + $0x18] sm:$0xff]   ;;  %v1143_v7 = vld [vmem:[%s1316_s1 + $0x10] sm:$0xff]  }
   0xd   : > { %1067 = vmatpush3.bf16.msra.mxu0 %v1138_v0  ;;  %1122 = vmatpush3.bf16.msra.mxu1 %v1138_v0  ;;  %s1215_s24 = scalar_lea.vmem %s1315_s0, %s853_s21  ;;  %v1144_v8 = vld [vmem:[%s1316_s1 + $0x8] sm:$0xff]   ;;  %v1145_v9 = vld [vmem:[%s1316_s1] sm:$0xff]   ;;  %s1266_s13 = scalar_lea.vmem %s1318_s3, %s853_s21 }
   0xe   : > { %1068 = vmatprep.subr.bf16.mxu0 %v1139_v1  ;;  %1115 = vmatprep.subr.bf16.mxu1 %v1139_v1  ;;  %v1146_v4 = vld [vmem:[%s1215_s24] sm:$0xff]   ;;  %v1148_v10 = vld [vmem:[%s1215_s24 + $0x8] sm:$0xff]   ;;  %v1150_v12 = vld [vmem:[%s1215_s24 + $0x10] sm:$0xff]  }
   0xf   : > { %v1147_v5 = vld [vmem:[%s1215_s24 + $0x40] sm:$0xff]   ;;  %1082 = vmatprep.mubr.bf16.mxu0 %v1146_v4  ;;  %v1149_v11 = vld [vmem:[%s1215_s24 + $0x48] sm:$0xff]   ;;  %v1151_v13 = vld [vmem:[%s1215_s24 + $0x50] sm:$0xff]  }
  0x10   : > { %1098 = vmatprep.mubr.bf16.mxu1 %v1147_v5  ;;  %v1152_v14 = vld [vmem:[%s1215_s24 + $0x18] sm:$0xff]   ;;  %v1154_v16 = vld [vmem:[%s1215_s24 + $0x20] sm:$0xff]   ;;  %v1156_v18 = vld [vmem:[%s1215_s24 + $0x28] sm:$0xff]  }
  0x11   : > { %1069 = vmatpush3.bf16.msra.mxu0 %v1139_v1  ;;  %1123 = vmatpush3.bf16.msra.mxu1 %v1139_v1  ;;  %v1153_v15 = vld [vmem:[%s1215_s24 + $0x58] sm:$0xff]   ;;  %v1155_v17 = vld [vmem:[%s1215_s24 + $0x60] sm:$0xff]   ;;  %v1157_v19 = vld [vmem:[%s1215_s24 + $0x68] sm:$0xff]  }
  0x12   : > { %1070 = vmatprep.subr.bf16.mxu0 %v1140_v2  ;;  %1116 = vmatprep.subr.bf16.mxu1 %v1140_v2  ;;  %v1158_v20 = vld [vmem:[%s1215_s24 + $0x30] sm:$0xff]   ;;  %v1160_v22 = vld [vmem:[%s1215_s24 + $0x38] sm:$0xff]   ;;  %v1251_v24 = vld [vmem:[%s1317_s2] ss:$0 sm:$0xff] }
  0x13   : > { %v1159_v21 = vld [vmem:[%s1215_s24 + $0x70] sm:$0xff]   ;;  %v1161_v23 = vld [vmem:[%s1215_s24 + $0x78] sm:$0xff]  }
  0x15   : > { %1071 = vmatpush3.bf16.msra.mxu0 %v1140_v2  ;;  %1124 = vmatpush3.bf16.msra.mxu1 %v1140_v2 }
  0x16   : > { %1072 = vmatprep.subr.bf16.mxu0 %v1141_v3  ;;  %1117 = vmatprep.subr.bf16.mxu1 %v1141_v3 }
  0x19   : > { %1073 = vmatpush3.bf16.msra.mxu0 %v1141_v3  ;;  %1125 = vmatpush3.bf16.msra.mxu1 %v1141_v3 }
  0x1a   : > { %1074 = vmatprep.subr.bf16.mxu0 %v1142_v6  ;;  %1118 = vmatprep.subr.bf16.mxu1 %v1142_v6 }
  0x1d   : > { %1075 = vmatpush3.bf16.msra.mxu0 %v1142_v6  ;;  %1126 = vmatpush3.bf16.msra.mxu1 %v1142_v6 }
  0x1e   : > { %1076 = vmatprep.subr.bf16.mxu0 %v1143_v7  ;;  %1119 = vmatprep.subr.bf16.mxu1 %v1143_v7 }
  0x21   : > { %1077 = vmatpush3.bf16.msra.mxu0 %v1143_v7  ;;  %1127 = vmatpush3.bf16.msra.mxu1 %v1143_v7 }
  0x22   : > { %1078 = vmatprep.subr.bf16.mxu0 %v1144_v8  ;;  %1120 = vmatprep.subr.bf16.mxu1 %v1144_v8 }
  0x25   : > { %1079 = vmatpush3.bf16.msra.mxu0 %v1144_v8  ;;  %1128 = vmatpush3.bf16.msra.mxu1 %v1144_v8 }
  0x26   : > { %1080 = vmatprep.subr.bf16.mxu0 %v1145_v9  ;;  %1121 = vmatprep.subr.bf16.mxu1 %v1145_v9 }
  0x29   : > { %1081 = vmatpush3.bf16.msra.mxu0 %v1145_v9  ;;  %1129 = vmatpush3.bf16.msra.mxu1 %v1145_v9 }
  0x2c   : > { %1083 = vmatmul.mubr.bf16.vlgmr.msra.gmra.mxu0 %v1148_v10  ;;  %1099 = vmatmul.mubr.bf16.vlgmr.msra.gmra.mxu1 %v1149_v11 }
  0x2d   : > { %1086 = vmatprep.mubr.bf16.mxu0 %v1150_v12  ;;  %1102 = vmatprep.mubr.bf16.mxu1 %v1151_v13 }
  0x34   : > { %1087 = vmatmul.mubr.bf16.gmra.mxu0 %v1152_v14  ;;  %1103 = vmatmul.mubr.bf16.gmra.mxu1 %v1153_v15 }
  0x35   : > { %1090 = vmatprep.mubr.bf16.mxu0 %v1154_v16  ;;  %1106 = vmatprep.mubr.bf16.mxu1 %v1155_v17 }
  0x3c   : > { %1091 = vmatmul.mubr.bf16.gmra.mxu0 %v1156_v18  ;;  %1107 = vmatmul.mubr.bf16.gmra.mxu1 %v1157_v19 }
  0x3d   : > { %1094 = vmatprep.mubr.bf16.mxu0 %v1158_v20  ;;  %1110 = vmatprep.mubr.bf16.mxu1 %v1159_v21 }
  0x44   : > { %1095 = vmatmul.mubr.bf16.gmra.mxu0 %v1160_v22  ;;  %1111 = vmatmul.mubr.bf16.gmra.mxu1 %v1161_v23 }
  0xec   : > { %v1084_v25 = vpop.f32.mrf.mxu0  ;;  %v1100_v26 = vpop.f32.mrf.mxu1 }
  0xed   : > { %v417_v27 = vadd.f32 %v1084_v25, %v1251_v24  ;;  %v481_v28 = vadd.f32 %v1100_v26, %v1251_v24 }
  0xee   : > { %v408_v29 = vpop.f32.mrf.mxu0  ;;  %v472_v30 = vpop.f32.mrf.mxu1 }
  0xef   : > { %vm537_vm0 = vcmp.ge.f32.partialorder %v417_v27, 0.0  ;;  %v569_v31 = vmul.f32 0.2, %v417_v27  ;;  %vm553_vm1 = vcmp.ge.f32.partialorder %v481_v28, 0.0  ;;  %v585_v32 = vmul.f32 0.2, %v481_v28 }
  0xf0   : > { %v409_v33 = vadd.f32 %v1251_v24, %v408_v29  ;;  %v473_v34 = vadd.f32 %v1251_v24, %v472_v30  ;;  %v1085_v35 = vpop.f32.mrf.mxu0  ;;  %v1101_v36 = vpop.f32.mrf.mxu1 }
  0xf1   : > { %v601_v37 = vsel %vm537_vm0, %v417_v27, %v569_v31  ;;  %v420_v38 = vadd.f32 %v1085_v35, %v1251_v24  ;;  %v484_v39 = vadd.f32 %v1101_v36, %v1251_v24  ;;  %v617_v40 = vsel %vm553_vm1, %v481_v28, %v585_v32 }
  0xf2   : > { %vm535_vm2 = vcmp.ge.f32.partialorder %v409_v33, 0.0  ;;  %v567_v41 = vmul.f32 0.2, %v409_v33  ;;  %vm551_vm3 = vcmp.ge.f32.partialorder %v473_v34, 0.0  ;;  %v411_v42 = vpop.f32.mrf.mxu0  ;;  %v475_v43 = vpop.f32.mrf.mxu1  ;;  %v583_v47 = vmul.f32 0.2, %v473_v34 }
  0xf3   : > { %vm538_vm4 = vcmp.ge.f32.partialorder %v420_v38, 0.0  ;;  %v570_v44 = vmul.f32 0.2, %v420_v38  ;;  %vm554_vm5 = vcmp.ge.f32.partialorder %v484_v39, 0.0  ;;  %v586_v45 = vmul.f32 0.2, %v484_v39 }
  0xf4   : > { %v599_v46 = vsel %vm535_vm2, %v409_v33, %v567_v41  ;;  %v412_v48 = vadd.f32 %v1251_v24, %v411_v42  ;;  %v476_v49 = vadd.f32 %v1251_v24, %v475_v43  ;;  %v1088_v50 = vpop.f32.mrf.mxu0  ;;  %v1104_v51 = vpop.f32.mrf.mxu1  ;;  %v615_v63 = vsel %vm551_vm3, %v473_v34, %v583_v47 }
  0xf5   : > { %v602_v52 = vsel %vm538_vm4, %v420_v38, %v570_v44  ;;  %v618_v53 = vsel %vm554_vm5, %v484_v39, %v586_v45  ;;  %v433_v54 = vadd.f32 %v1088_v50, %v1251_v24  ;;  %v497_v55 = vadd.f32 %v1104_v51, %v1251_v24 }
  0xf6   : > { %v955_v56 = vpack.c.bf16 %v602_v52, %v601_v37  ;;  %v995_v57 = vpack.c.bf16 %v618_v53, %v617_v40  ;;  %vm536_vm6 = vcmp.ge.f32.partialorder %v412_v48, 0.0  ;;  %v568_v58 = vmul.f32 0.2, %v412_v48  ;;  %v424_v59 = vpop.f32.mrf.mxu0  ;;  %v488_v60 = vpop.f32.mrf.mxu1 }
  0xf7   : > { %vm552_vm7 = vcmp.ge.f32.partialorder %v476_v49, 0.0  ;;  %v584_v61 = vmul.f32 0.2, %v476_v49  ;;  %vm541_vm8 = vcmp.ge.f32.partialorder %v433_v54, 0.0  ;;  %v573_v62 = vmul.f32 0.2, %v433_v54 }
  0xf8   : > { %1027 = vst [vmem:[%s1266_s13 + $0x8] sm:$0xff] %v955_v56   ;;  %1035 = vst [vmem:[%s1266_s13 + $0x48] sm:$0xff] %v995_v57   ;;  %v600_v0 = vsel %vm536_vm6, %v412_v48, %v568_v58  ;;  %v589_v1 = vmul.f32 0.2, %v497_v55  ;;  %v425_v2 = vadd.f32 %v1251_v24, %v424_v59  ;;  %v1089_v3 = vpop.f32.mrf.mxu0  ;;  %v1105_v4 = vpop.f32.mrf.mxu1  ;;  %vm557_vm9 = vcmp.ge.f32.partialorder %v497_v55, 0.0 }
  0xf9   : > { %v950_v5 = vpack.c.bf16 %v600_v0, %v599_v46  ;;  %v616_v6 = vsel %vm552_vm7, %v476_v49, %v584_v61  ;;  %v489_v7 = vadd.f32 %v1251_v24, %v488_v60  ;;  %v605_v9 = vsel %vm541_vm8, %v433_v54, %v573_v62 }
  0xfa   : > { %v990_v8 = vpack.c.bf16 %v616_v6, %v615_v63  ;;  %vm539_vm10 = vcmp.ge.f32.partialorder %v425_v2, 0.0  ;;  %v571_v10 = vmul.f32 0.2, %v425_v2  ;;  %v427_v11 = vpop.f32.mrf.mxu0  ;;  %v491_v12 = vpop.f32.mrf.mxu1  ;;  %v436_v14 = vadd.f32 %v1089_v3, %v1251_v24 }
  0xfb   : > { %951 = vst [vmem:[%s1266_s13] sm:$0xff] %v950_v5   ;;  %vm555_vm11 = vcmp.ge.f32.partialorder %v489_v7, 0.0  ;;  %v587_v13 = vmul.f32 0.2, %v489_v7  ;;  %v500_v15 = vadd.f32 %v1105_v4, %v1251_v24  ;;  %v621_v16 = vsel %vm557_vm9, %v497_v55, %v589_v1 }
  0xfc   : > { %1034 = vst [vmem:[%s1266_s13 + $0x40] sm:$0xff] %v990_v8   ;;  %v603_v17 = vsel %vm539_vm10, %v425_v2, %v571_v10  ;;  %v428_v18 = vadd.f32 %v1251_v24, %v427_v11  ;;  %v492_v19 = vadd.f32 %v1251_v24, %v491_v12  ;;  %v1092_v20 = vpop.f32.mrf.mxu0  ;;  %v1108_v21 = vpop.f32.mrf.mxu1  ;;  %vm542_vm12 = vcmp.ge.f32.partialorder %v436_v14, 0.0 }
  0xfd   : > { %v619_v22 = vsel %vm555_vm11, %v489_v7, %v587_v13  ;;  %v574_v23 = vmul.f32 0.2, %v436_v14  ;;  %vm558_vm13 = vcmp.ge.f32.partialorder %v500_v15, 0.0  ;;  %v590_v25 = vmul.f32 0.2, %v500_v15 }
  0xfe   : > { %vm540_vm14 = vcmp.ge.f32.partialorder %v428_v18, 0.0  ;;  %v572_v26 = vmul.f32 0.2, %v428_v18  ;;  %vm556_vm15 = vcmp.ge.f32.partialorder %v492_v19, 0.0  ;;  %v440_v27 = vpop.f32.mrf.mxu0  ;;  %v504_v28 = vpop.f32.mrf.mxu1  ;;  %v588_v30 = vmul.f32 0.2, %v492_v19 }
  0xff   : > { %v606_v29 = vsel %vm542_vm12, %v436_v14, %v574_v23  ;;  %v449_v31 = vadd.f32 %v1092_v20, %v1251_v24  ;;  %v513_v32 = vadd.f32 %v1108_v21, %v1251_v24  ;;  %v622_v34 = vsel %vm558_vm13, %v500_v15, %v590_v25 }
 0x100   : > { %v965_v33 = vpack.c.bf16 %v606_v29, %v605_v9  ;;  %v604_v35 = vsel %vm540_vm14, %v428_v18, %v572_v26  ;;  %v441_v36 = vadd.f32 %v1251_v24, %v440_v27  ;;  %v1093_v37 = vpop.f32.mrf.mxu0  ;;  %v1109_v38 = vpop.f32.mrf.mxu1  ;;  %v1005_v39 = vpack.c.bf16 %v622_v34, %v621_v16 }
 0x101   : > { %v960_v40 = vpack.c.bf16 %v604_v35, %v603_v17  ;;  %v620_v41 = vsel %vm556_vm15, %v492_v19, %v588_v30  ;;  %vm545_vm0 = vcmp.ge.f32.partialorder %v449_v31, 0.0  ;;  %v577_v43 = vmul.f32 0.2, %v449_v31 }
 0x102   : > { %1029 = vst [vmem:[%s1266_s13 + $0x18] sm:$0xff] %v965_v33   ;;  %v1000_v42 = vpack.c.bf16 %v620_v41, %v619_v22  ;;  %vm561_vm1 = vcmp.ge.f32.partialorder %v513_v32, 0.0  ;;  %v593_v44 = vmul.f32 0.2, %v513_v32  ;;  %v443_v45 = vpop.f32.mrf.mxu0  ;;  %v507_v46 = vpop.f32.mrf.mxu1  ;;  %1037 = vst [vmem:[%s1266_s13 + $0x58] sm:$0xff] %v1005_v39   ;;  %vm543_vm2 = vcmp.ge.f32.partialorder %v441_v36, 0.0 }
 0x103   : > { %1028 = vst [vmem:[%s1266_s13 + $0x10] sm:$0xff] %v960_v40   ;;  %v575_v47 = vmul.f32 0.2, %v441_v36  ;;  %v505_v48 = vadd.f32 %v1251_v24, %v504_v28  ;;  %v452_v49 = vadd.f32 %v1093_v37, %v1251_v24  ;;  %v609_v50 = vsel %vm545_vm0, %v449_v31, %v577_v43 }
 0x104   : > { %1036 = vst [vmem:[%s1266_s13 + $0x50] sm:$0xff] %v1000_v42   ;;  %v516_v51 = vadd.f32 %v1109_v38, %v1251_v24  ;;  %v444_v52 = vadd.f32 %v1251_v24, %v443_v45  ;;  %v1096_v53 = vpop.f32.mrf.mxu0  ;;  %v1112_v54 = vpop.f32.mrf.mxu1  ;;  %v625_v55 = vsel %vm561_vm1, %v513_v32, %v593_v44  ;;  %v508_v63 = vadd.f32 %v1251_v24, %v507_v46 }
 0x105   : > { %v607_v56 = vsel %vm543_vm2, %v441_v36, %v575_v47  ;;  %vm559_vm3 = vcmp.ge.f32.partialorder %v505_v48, 0.0  ;;  %vm546_vm4 = vcmp.ge.f32.partialorder %v452_v49, 0.0  ;;  %v578_v57 = vmul.f32 0.2, %v452_v49 }
 0x106   : > { %vm562_vm5 = vcmp.ge.f32.partialorder %v516_v51, 0.0  ;;  %v594_v58 = vmul.f32 0.2, %v516_v51  ;;  %vm544_vm6 = vcmp.ge.f32.partialorder %v444_v52, 0.0  ;;  %v456_v59 = vpop.f32.mrf.mxu0  ;;  %v520_v60 = vpop.f32.mrf.mxu1  ;;  %v591_v61 = vmul.f32 0.2, %v505_v48 }
 0x107   : > { %v576_v62 = vmul.f32 0.2, %v444_v52  ;;  %v465_v0 = vadd.f32 %v1096_v53, %v1251_v24  ;;  %v610_v1 = vsel %vm546_vm4, %v452_v49, %v578_v57  ;;  %v529_v3 = vadd.f32 %v1112_v54, %v1251_v24 }
 0x108   : > { %v626_v2 = vsel %vm562_vm5, %v516_v51, %v594_v58  ;;  %v457_v4 = vadd.f32 %v1251_v24, %v456_v59  ;;  %v1097_v5 = vpop.f32.mrf.mxu0  ;;  %v1113_v6 = vpop.f32.mrf.mxu1  ;;  %v975_v7 = vpack.c.bf16 %v610_v1, %v609_v50  ;;  %vm560_vm7 = vcmp.ge.f32.partialorder %v508_v63, 0.0 }
 0x109   : > { %v1015_v8 = vpack.c.bf16 %v626_v2, %v625_v55  ;;  %v608_v9 = vsel %vm544_vm6, %v444_v52, %v576_v62  ;;  %v592_v11 = vmul.f32 0.2, %v508_v63  ;;  %v581_v12 = vmul.f32 0.2, %v465_v0 }
 0x10a   : > { %v970_v10 = vpack.c.bf16 %v608_v9, %v607_v56  ;;  %v623_v13 = vsel %vm559_vm3, %v505_v48, %v591_v61  ;;  %1031 = vst [vmem:[%s1266_s13 + $0x28] sm:$0xff] %v975_v7   ;;  %vm549_vm8 = vcmp.ge.f32.partialorder %v465_v0, 0.0  ;;  %v597_v15 = vmul.f32 0.2, %v529_v3  ;;  %v459_v18 = vpop.f32.mrf.mxu0  ;;  %v523_v19 = vpop.f32.mrf.mxu1 }
 0x10b   : > { %1039 = vst [vmem:[%s1266_s13 + $0x68] sm:$0xff] %v1015_v8   ;;  %v624_v14 = vsel %vm560_vm7, %v508_v63, %v592_v11  ;;  %v521_v16 = vadd.f32 %v1251_v24, %v520_v60  ;;  %v468_v17 = vadd.f32 %v1097_v5, %v1251_v24  ;;  %vm565_vm9 = vcmp.ge.f32.partialorder %v529_v3, 0.0 }
 0x10c   : > { %1030 = vst [vmem:[%s1266_s13 + $0x20] sm:$0xff] %v970_v10   ;;  %v1010_v20 = vpack.c.bf16 %v624_v14, %v623_v13  ;;  %vm547_vm10 = vcmp.ge.f32.partialorder %v457_v4, 0.0  ;;  %v532_v21 = vadd.f32 %v1113_v6, %v1251_v24  ;;  %v613_v22 = vsel %vm549_vm8, %v465_v0, %v581_v12 }
 0x10d   : > { %v579_v23 = vmul.f32 0.2, %v457_v4  ;;  %vm550_vm11 = vcmp.ge.f32.partialorder %v468_v17, 0.0  ;;  %v582_v25 = vmul.f32 0.2, %v468_v17  ;;  %v460_v27 = vadd.f32 %v1251_v24, %v459_v18 }
 0x10e   : > { %1038 = vst [vmem:[%s1266_s13 + $0x60] sm:$0xff] %v1010_v20   ;;  %vm566_vm12 = vcmp.ge.f32.partialorder %v532_v21, 0.0  ;;  %v598_v26 = vmul.f32 0.2, %v532_v21  ;;  %v524_v28 = vadd.f32 %v1251_v24, %v523_v19  ;;  %v629_v29 = vsel %vm565_vm9, %v529_v3, %v597_v15 }
 0x10f   : > { %vm563_vm13 = vcmp.ge.f32.partialorder %v521_v16, 0.0  ;;  %v595_v30 = vmul.f32 0.2, %v521_v16  ;;  %v614_v31 = vsel %vm550_vm11, %v468_v17, %v582_v25  ;;  %vm548_vm14 = vcmp.ge.f32.partialorder %v460_v27, 0.0 }
 0x110   : > { %v985_v32 = vpack.c.bf16 %v614_v31, %v613_v22  ;;  %v630_v33 = vsel %vm566_vm12, %v532_v21, %v598_v26  ;;  %v580_v34 = vmul.f32 0.2, %v460_v27  ;;  %vm564_vm15 = vcmp.ge.f32.partialorder %v524_v28, 0.0 }
 0x111   : > { %v1025_v35 = vpack.c.bf16 %v630_v33, %v629_v29  ;;  %v596_v36 = vmul.f32 0.2, %v524_v28  ;;  %v611_v37 = vsel %vm547_vm10, %v457_v4, %v579_v23  ;;  %v627_v39 = vsel %vm563_vm13, %v521_v16, %v595_v30 }
 0x112   : > { %1033 = vst [vmem:[%s1266_s13 + $0x38] sm:$0xff] %v985_v32   ;;  %v612_v38 = vsel %vm548_vm14, %v460_v27, %v580_v34 }
 0x113   : > { %1041 = vst [vmem:[%s1266_s13 + $0x78] sm:$0xff] %v1025_v35   ;;  %v980_v24 = vpack.c.bf16 %v612_v38, %v611_v37  ;;  %v628_v40 = vsel %vm564_vm15, %v524_v28, %v596_v36 }
 0x114   : > { %v1020_v41 = vpack.c.bf16 %v628_v40, %v627_v39 }
 0x115   : > { %1032 = vst [vmem:[%s1266_s13 + $0x30] sm:$0xff] %v980_v24  }
 0x116   : > { %1040 = vst [vmem:[%s1266_s13 + $0x70] sm:$0xff] %v1020_v41  }
 0x117 PF: > { %s13_s12 = sadd.s32 1, %s1168_s12  }
 0x118   : > { %p10_p4 = scmp.ge.s32.totalorder %s13_s12, 4  }
 0x11a   :  { %12 = sbr.rel (!%p10_p4) target bundleno = 1 (0x1), region = 62 }

// kernel: discriminator_forward.7
= control target key start
LH: loop header
LB: loop body
LE: loop exit
PB: predicated region body
PF: predicated region fallthrough
CT: control target
= control target key end

     0   :  { %s743_s12 = smov 0   ;;  %s825_s0 = inlined_call_operand.vmem [shape: bf16[128,256], index: 0, kind: input, shape index: {}]   ;;  %s826_s1 = inlined_call_operand.vmem [shape: bf16[256,128], index: 1, kind: input, shape index: {}]   ;;  %s827_s2 = inlined_call_operand.vmem [shape: f32[1,128], index: 2, kind: input, shape index: {}]   ;;  %s828_s3 = inlined_call_operand.vmem [shape: bf16[128,128], index: 3, kind: output, shape index: {}]  }
   0x1 LB: > { %s546_s13 = sadd.s32 4294967295, %s721_s12   ;;  %p550_p0 = scmp.ge.s32.totalorder %s721_s12, 1  ;;  %s721_s12 = sphi %s743_s12, %s13_s12  }
   0x2   : > { %p139_p1 = scmp.lt.s32.totalorder %s721_s12, 3 }
   0x4   : > { %p140_p2 = pnand %p550_p0, %p139_p1 }
   0x5   : > { %s551_s16 = sshll.u32 (!%p140_p2), %s546_s13, 3 }
   0x6   : > { %143 = sbr.rel (%p140_p2) target bundleno = 261 (0x105), region = 32  ;;  %p165_p3 = scmp.lt.s32.totalorder (!%p140_p2), %s551_s16, 15 }
   0xb   : > { %v687_v0 = vld [vmem:[%s826_s1 + $0x78] sm:$0xff]   ;;  %v689_v2 = vld [vmem:[%s826_s1 + $0x70] sm:$0xff]   ;;  %v691_v4 = vld [vmem:[%s826_s1 + $0x68] sm:$0xff]   ;;  %s830_s16 = smov (!%p165_p3, %s551_s16), 15 }
   0xc   : > { %v688_v1 = vld [vmem:[%s826_s1 + $0x38] sm:$0xff]   ;;  %623 = vmatprep.subr.bf16.mxu0 %v687_v0  ;;  %663 = vmatprep.subr.bf16.mxu1 %v687_v0  ;;  %v690_v3 = vld [vmem:[%s826_s1 + $0x30] sm:$0xff]   ;;  %v692_v5 = vld [vmem:[%s826_s1 + $0x28] sm:$0xff]   ;;  %s591_s4 = sshll.u32 %s830_s16, 3  ;;  %s555_s28 = sshll.u32 %s830_s16, 2 }
   0xd   : > { %624 = vmatpush3.bf16.msra.mxu0 %v688_v1  ;;  %671 = vmatpush3.bf16.msra.mxu1 %v688_v1  ;;  %v693_v6 = vld [vmem:[%s826_s1 + $0x60] sm:$0xff]   ;;  %v695_v8 = vld [vmem:[%s826_s1 + $0x58] sm:$0xff]   ;;  %s784_s9 = scalar_lea.vmem %s825_s0, %s591_s4  ;;  %v697_v10 = vld [vmem:[%s826_s1 + $0x50] sm:$0xff]   ;;  %s175_s4 = scalar_lea.vmem %s828_s3, %s555_s28 }
   0xe   : > { %625 = vmatprep.subr.bf16.mxu0 %v689_v2  ;;  %664 = vmatprep.subr.bf16.mxu1 %v689_v2  ;;  %v694_v7 = vld [vmem:[%s826_s1 + $0x20] sm:$0xff]   ;;  %v696_v9 = vld [vmem:[%s826_s1 + $0x18] sm:$0xff]   ;;  %v698_v13 = vld [vmem:[%s826_s1 + $0x10] sm:$0xff]  }
   0xf   : > { %v705_v11 = vld [vmem:[%s784_s9 + $0x4] ss:$8 sps:$4 sm:$0xff]   ;;  %v703_v18 = vld [vmem:[%s784_s9] ss:$8 sps:$4 sm:$0xff]   ;;  %v709_v20 = vld [vmem:[%s784_s9 + $0x14] ss:$8 sps:$4 sm:$0xff]  }
  0x10   : > { %v708_v12 = vld [vmem:[%s784_s9 + $0x24] ss:$8 sps:$4 sm:$0xff]   ;;  %393 = vmatprep.mubr.bf16.mxu0 %v705_v11  ;;  %v706_v19 = vld [vmem:[%s784_s9 + $0x20] ss:$8 sps:$4 sm:$0xff]   ;;  %v711_v21 = vld [vmem:[%s784_s9 + $0x34] ss:$8 sps:$4 sm:$0xff]  }
  0x11   : > { %626 = vmatpush3.bf16.msra.mxu0 %v690_v3  ;;  %672 = vmatpush3.bf16.msra.mxu1 %v690_v3  ;;  %v699_v14 = vld [vmem:[%s826_s1 + $0x48] sm:$0xff]   ;;  %v701_v16 = vld [vmem:[%s826_s1 + $0x40] sm:$0xff]   ;;  %v713_v22 = vld [vmem:[%s784_s9 + $0x10] ss:$8 sps:$4 sm:$0xff]  }
  0x12   : > { %627 = vmatprep.subr.bf16.mxu0 %v691_v4  ;;  %665 = vmatprep.subr.bf16.mxu1 %v691_v4  ;;  %v700_v15 = vld [vmem:[%s826_s1 + $0x8] sm:$0xff]   ;;  %v702_v17 = vld [vmem:[%s826_s1] sm:$0xff]   ;;  %v714_v23 = vld [vmem:[%s784_s9 + $0x30] ss:$8 sps:$4 sm:$0xff]  }
  0x13   : > { %409 = vmatprep.mubr.bf16.mxu1 %v708_v12  ;;  %v556_v26 = vld [vmem:[%s827_s2] ss:$0 sm:$0xff] }
  0x15   : > { %628 = vmatpush3.bf16.msra.mxu0 %v692_v5  ;;  %673 = vmatpush3.bf16.msra.mxu1 %v692_v5 }
  0x16   : > { %629 = vmatprep.subr.bf16.mxu0 %v693_v6  ;;  %666 = vmatprep.subr.bf16.mxu1 %v693_v6 }
  0x19   : > { %630 = vmatpush3.bf16.msra.mxu0 %v694_v7  ;;  %674 = vmatpush3.bf16.msra.mxu1 %v694_v7 }
  0x1a   : > { %631 = vmatprep.subr.bf16.mxu0 %v695_v8  ;;  %667 = vmatprep.subr.bf16.mxu1 %v695_v8 }
  0x1d   : > { %632 = vmatpush3.bf16.msra.mxu0 %v696_v9  ;;  %675 = vmatpush3.bf16.msra.mxu1 %v696_v9 }
  0x1e   : > { %633 = vmatprep.subr.bf16.mxu0 %v697_v10  ;;  %668 = vmatprep.subr.bf16.mxu1 %v697_v10 }
  0x21   : > { %634 = vmatpush3.bf16.msra.mxu0 %v698_v13  ;;  %676 = vmatpush3.bf16.msra.mxu1 %v698_v13 }
  0x22   : > { %635 = vmatprep.subr.bf16.mxu0 %v699_v14  ;;  %669 = vmatprep.subr.bf16.mxu1 %v699_v14 }
  0x25   : > { %636 = vmatpush3.bf16.msra.mxu0 %v700_v15  ;;  %677 = vmatpush3.bf16.msra.mxu1 %v700_v15 }
  0x26   : > { %637 = vmatprep.subr.bf16.mxu0 %v701_v16  ;;  %670 = vmatprep.subr.bf16.mxu1 %v701_v16 }
  0x29   : > { %638 = vmatpush3.bf16.msra.mxu0 %v702_v17  ;;  %678 = vmatpush3.bf16.msra.mxu1 %v702_v17 }
  0x2c   : > { %394 = vmatmul.mubr.bf16.vlgmr.msra.gmra.mxu0 %v703_v18  ;;  %410 = vmatmul.mubr.bf16.vlgmr.msra.gmra.mxu1 %v706_v19 }
  0x2d   : > { %401 = vmatprep.mubr.bf16.mxu0 %v709_v20  ;;  %417 = vmatprep.mubr.bf16.mxu1 %v711_v21 }
  0x34   : > { %402 = vmatmul.mubr.bf16.gmra.mxu0 %v713_v22  ;;  %418 = vmatmul.mubr.bf16.gmra.mxu1 %v714_v23 }
  0xec   : > { %v639_v24 = vpop.f32.mrf.mxu0  ;;  %v651_v25 = vpop.f32.mrf.mxu1 }
  0xee   : > { %v640_v27 = vpop.f32.mrf.mxu0  ;;  %v652_v28 = vpop.f32.mrf.mxu1 }
  0xef   : > { %v641_v29 = vadd.f32 %v640_v27, %v639_v24  ;;  %v653_v30 = vadd.f32 %v652_v28, %v651_v25 }
  0xf0   : > { %v642_v31 = vpop.f32.mrf.mxu0  ;;  %v654_v32 = vpop.f32.mrf.mxu1 }
  0xf1   : > { %v396_v33 = vadd.f32 %v641_v29, %v556_v26  ;;  %v412_v34 = vadd.f32 %v653_v30, %v556_v26 }
  0xf2   : > { %v643_v35 = vpop.f32.mrf.mxu0  ;;  %v655_v36 = vpop.f32.mrf.mxu1 }
  0xf3   : > { %v644_v37 = vadd.f32 %v643_v35, %v642_v31  ;;  %v656_v38 = vadd.f32 %v655_v36, %v654_v32  ;;  %v434_v41 = vmul.f32 0.2, %v396_v33  ;;  %v438_v42 = vmul.f32 0.2, %v412_v34 }
  0xf4   : > { %v645_v39 = vpop.f32.mrf.mxu0  ;;  %v657_v40 = vpop.f32.mrf.mxu1  ;;  %vm426_vm0 = vcmp.ge.f32.partialorder %v396_v33, 0.0  ;;  %vm430_vm1 = vcmp.ge.f32.partialorder %v412_v34, 0.0 }
  0xf5   : > { %v399_v43 = vadd.f32 %v644_v37, %v556_v26  ;;  %v415_v44 = vadd.f32 %v656_v38, %v556_v26  ;;  %v442_v53 = vsel %vm426_vm0, %v396_v33, %v434_v41  ;;  %v446_v54 = vsel %vm430_vm1, %v412_v34, %v438_v42 }
  0xf6   : > { %v646_v45 = vpop.f32.mrf.mxu0  ;;  %v658_v46 = vpop.f32.mrf.mxu1 }
  0xf7   : > { %v647_v47 = vadd.f32 %v646_v45, %v645_v39  ;;  %v659_v48 = vadd.f32 %v658_v46, %v657_v40  ;;  %vm427_vm2 = vcmp.ge.f32.partialorder %v399_v43, 0.0  ;;  %v435_v49 = vmul.f32 0.2, %v399_v43 }
  0xf8   : > { %vm431_vm3 = vcmp.ge.f32.partialorder %v415_v44, 0.0  ;;  %v439_v50 = vmul.f32 0.2, %v415_v44  ;;  %v648_v51 = vpop.f32.mrf.mxu0  ;;  %v660_v52 = vpop.f32.mrf.mxu1 }
  0xf9   : > { %v443_v55 = vsel %vm427_vm2, %v399_v43, %v435_v49  ;;  %v404_v57 = vadd.f32 %v647_v47, %v556_v26  ;;  %v420_v58 = vadd.f32 %v659_v48, %v556_v26 }
  0xfa   : > { %v447_v56 = vsel %vm431_vm3, %v415_v44, %v439_v50  ;;  %v649_v59 = vpop.f32.mrf.mxu0  ;;  %v661_v60 = vpop.f32.mrf.mxu1  ;;  %v603_v61 = vpack.c.bf16 %v443_v55, %v442_v53 }
  0xfb   : > { %v613_v62 = vpack.c.bf16 %v447_v56, %v446_v54  ;;  %v650_v63 = vadd.f32 %v649_v59, %v648_v51  ;;  %v662_v0 = vadd.f32 %v661_v60, %v660_v52  ;;  %v436_v1 = vmul.f32 0.2, %v404_v57 }
  0xfc   : > { %604 = vst [vmem:[%s175_s4] sm:$0xff] %v603_v61   ;;  %v440_v2 = vmul.f32 0.2, %v420_v58  ;;  %vm428_vm4 = vcmp.ge.f32.partialorder %v404_v57, 0.0  ;;  %vm432_vm5 = vcmp.ge.f32.partialorder %v420_v58, 0.0 }
  0xfd   : > { %621 = vst [vmem:[%s175_s4 + $0x10] sm:$0xff] %v613_v62   ;;  %v407_v3 = vadd.f32 %v650_v63, %v556_v26  ;;  %v423_v4 = vadd.f32 %v662_v0, %v556_v26  ;;  %v444_v7 = vsel %vm428_vm4, %v404_v57, %v436_v1 }
  0xfe   : > { %v448_v8 = vsel %vm432_vm5, %v420_v58, %v440_v2 }
  0xff   : > { %vm429_vm6 = vcmp.ge.f32.partialorder %v407_v3, 0.0  ;;  %v437_v5 = vmul.f32 0.2, %v407_v3  ;;  %vm433_vm7 = vcmp.ge.f32.partialorder %v423_v4, 0.0  ;;  %v441_v6 = vmul.f32 0.2, %v423_v4 }
 0x101   : > { %v445_v9 = vsel %vm429_vm6, %v407_v3, %v437_v5  ;;  %v449_v10 = vsel %vm433_vm7, %v423_v4, %v441_v6 }
 0x102   : > { %v608_v11 = vpack.c.bf16 %v445_v9, %v444_v7  ;;  %v618_v12 = vpack.c.bf16 %v449_v10, %v448_v8 }
 0x104   : > { %620 = vst [vmem:[%s175_s4 + $0x8] sm:$0xff] %v608_v11   ;;  %622 = vst [vmem:[%s175_s4 + $0x18] sm:$0xff] %v618_v12  }
 0x105 PF: > { %s13_s12 = sadd.s32 1, %s721_s12  }
 0x106   : > { %p10_p4 = scmp.ge.s32.totalorder %s13_s12, 4  }
 0x108   :  { %12 = sbr.rel (!%p10_p4) target bundleno = 1 (0x1), region = 62 }

// kernel: discriminator_forward.8
= control target key start
LH: loop header
LB: loop body
LE: loop exit
PB: predicated region body
PF: predicated region fallthrough
CT: control target
= control target key end

     0   :  { %s779_s12 = smov 0   ;;  %s901_s0 = inlined_call_operand.vmem [shape: bf16[32,512], index: 0, kind: input, shape index: {}]   ;;  %s902_s1 = inlined_call_operand.vmem [shape: bf16[512,128], index: 1, kind: input, shape index: {}]   ;;  %s903_s2 = inlined_call_operand.vmem [shape: f32[1,128], index: 2, kind: input, shape index: {}]   ;;  %s904_s3 = inlined_call_operand.vmem [shape: f32[32,128], index: 3, kind: output, shape index: {}]  }
   0x1 LB: > { %s611_s13 = sadd.s32 4294967295, %s757_s12   ;;  %p615_p0 = scmp.ge.s32.totalorder %s757_s12, 1  ;;  %s757_s12 = sphi %s779_s12, %s13_s12  }
   0x2   : > { %p139_p1 = scmp.lt.s32.totalorder %s757_s12, 3 }
   0x4   : > { %p140_p2 = pnand %p615_p0, %p139_p1 }
   0x5   : > { %s616_s21 = sshll.u32 (!%p140_p2), %s611_s13, 1 }
   0x6   : > { %143 = sbr.rel (%p140_p2) target bundleno = 254 (0xfe), region = 32  ;;  %p165_p3 = scmp.lt.s32.totalorder (!%p140_p2), %s616_s21, 3 }
   0xb   : > { %v713_v0 = vld [vmem:[%s902_s1 + $0x78] sm:$0xff]   ;;  %v717_v4 = vld [vmem:[%s902_s1 + $0x70] sm:$0xff]   ;;  %v721_v8 = vld [vmem:[%s902_s1 + $0x68] sm:$0xff]   ;;  %s906_s21 = smov (!%p165_p3, %s616_s21), 3 }
   0xc   : > { %v714_v1 = vld [vmem:[%s902_s1 + $0xf8] sm:$0xff]   ;;  %661 = vmatprep.subr.bf16.mxu0 %v713_v0  ;;  %v718_v5 = vld [vmem:[%s902_s1 + $0xf0] sm:$0xff]   ;;  %v722_v9 = vld [vmem:[%s902_s1 + $0xe8] sm:$0xff]   ;;  %s660_s18 = sshll.u32 %s906_s21, 4  ;;  %s620_s7 = sshll.u32 %s906_s21, 3 }
   0xd   : > { %v715_v2 = vld [vmem:[%s902_s1 + $0x38] sm:$0xff]   ;;  %683 = vmatprep.subr.bf16.mxu1 %v714_v1  ;;  %v719_v6 = vld [vmem:[%s902_s1 + $0x30] sm:$0xff]   ;;  %v723_v10 = vld [vmem:[%s902_s1 + $0x28] sm:$0xff]   ;;  %s169_s28 = scalar_lea.vmem %s901_s0, %s660_s18  ;;  %s175_s10 = scalar_lea.vmem %s904_s3, %s620_s7 }
   0xe   : > { %v716_v3 = vld [vmem:[%s902_s1 + $0xb8] sm:$0xff]   ;;  %662 = vmatpush3.bf16.msra.mxu0 %v715_v2  ;;  %v720_v7 = vld [vmem:[%s902_s1 + $0xb0] sm:$0xff]   ;;  %v724_v11 = vld [vmem:[%s902_s1 + $0xa8] sm:$0xff]  }
   0xf   : > { %684 = vmatpush3.bf16.msra.mxu1 %v716_v3  ;;  %663 = vmatprep.subr.bf16.mxu0 %v717_v4  ;;  %v725_v12 = vld [vmem:[%s902_s1 + $0x60] sm:$0xff]   ;;  %v729_v16 = vld [vmem:[%s902_s1 + $0x58] sm:$0xff]   ;;  %v733_v20 = vld [vmem:[%s902_s1 + $0x50] sm:$0xff]  }
  0x10   : > { %685 = vmatprep.subr.bf16.mxu1 %v718_v5  ;;  %v726_v13 = vld [vmem:[%s902_s1 + $0xe0] sm:$0xff]   ;;  %v730_v17 = vld [vmem:[%s902_s1 + $0xd8] sm:$0xff]   ;;  %v734_v21 = vld [vmem:[%s902_s1 + $0xd0] sm:$0xff]  }
  0x11   : > { %v727_v14 = vld [vmem:[%s902_s1 + $0x20] sm:$0xff]   ;;  %v731_v18 = vld [vmem:[%s902_s1 + $0x18] sm:$0xff]   ;;  %v735_v22 = vld [vmem:[%s902_s1 + $0x10] sm:$0xff]  }
  0x12   : > { %664 = vmatpush3.bf16.msra.mxu0 %v719_v6  ;;  %v728_v15 = vld [vmem:[%s902_s1 + $0xa0] sm:$0xff]   ;;  %v732_v19 = vld [vmem:[%s902_s1 + $0x98] sm:$0xff]   ;;  %v736_v23 = vld [vmem:[%s902_s1 + $0x90] sm:$0xff]  }
  0x13   : > { %686 = vmatpush3.bf16.msra.mxu1 %v720_v7  ;;  %665 = vmatprep.subr.bf16.mxu0 %v721_v8  ;;  %v737_v24 = vld [vmem:[%s902_s1 + $0x48] sm:$0xff]   ;;  %v741_v28 = vld [vmem:[%s902_s1 + $0x40] sm:$0xff]  }
  0x14   : > { %687 = vmatprep.subr.bf16.mxu1 %v722_v9  ;;  %v738_v25 = vld [vmem:[%s902_s1 + $0xc8] sm:$0xff]   ;;  %v742_v29 = vld [vmem:[%s902_s1 + $0xc0] sm:$0xff]  }
  0x15   : > { %v739_v26 = vld [vmem:[%s902_s1 + $0x8] sm:$0xff]   ;;  %v743_v30 = vld [vmem:[%s902_s1] sm:$0xff]  }
  0x16   : > { %666 = vmatpush3.bf16.msra.mxu0 %v723_v10  ;;  %v740_v27 = vld [vmem:[%s902_s1 + $0x88] sm:$0xff]   ;;  %v744_v31 = vld [vmem:[%s902_s1 + $0x80] sm:$0xff]  }
  0x17   : > { %688 = vmatpush3.bf16.msra.mxu1 %v724_v11  ;;  %667 = vmatprep.subr.bf16.mxu0 %v725_v12  ;;  %v745_v32 = vld [vmem:[%s169_s28] ss:$16 sps:$4 sm:$0xff]   ;;  %v747_v33 = vld [vmem:[%s169_s28 + $0x4] ss:$16 sps:$4 sm:$0xff]   ;;  %v748_v34 = vld [vmem:[%s169_s28 + $0x8] ss:$16 sps:$4 sm:$0xff]  }
  0x18   : > { %689 = vmatprep.subr.bf16.mxu1 %v726_v13  ;;  %v750_v35 = vld [vmem:[%s169_s28 + $0xc] ss:$16 sps:$4 sm:$0xff]   ;;  %497 = vmatprep.mubr.bf16.mxu0 %v747_v33  ;;  %v621_v38 = vld [vmem:[%s903_s2] ss:$0 sm:$0xff] }
  0x19   : > { %538 = vmatprep.mubr.bf16.mxu1 %v750_v35 }
  0x1a   : > { %668 = vmatpush3.bf16.msra.mxu0 %v727_v14 }
  0x1b   : > { %690 = vmatpush3.bf16.msra.mxu1 %v728_v15  ;;  %669 = vmatprep.subr.bf16.mxu0 %v729_v16 }
  0x1c   : > { %691 = vmatprep.subr.bf16.mxu1 %v730_v17 }
  0x1e   : > { %670 = vmatpush3.bf16.msra.mxu0 %v731_v18 }
  0x1f   : > { %692 = vmatpush3.bf16.msra.mxu1 %v732_v19  ;;  %671 = vmatprep.subr.bf16.mxu0 %v733_v20 }
  0x20   : > { %693 = vmatprep.subr.bf16.mxu1 %v734_v21 }
  0x22   : > { %672 = vmatpush3.bf16.msra.mxu0 %v735_v22 }
  0x23   : > { %694 = vmatpush3.bf16.msra.mxu1 %v736_v23  ;;  %673 = vmatprep.subr.bf16.mxu0 %v737_v24 }
  0x24   : > { %695 = vmatprep.subr.bf16.mxu1 %v738_v25 }
  0x26   : > { %674 = vmatpush3.bf16.msra.mxu0 %v739_v26 }
  0x27   : > { %696 = vmatpush3.bf16.msra.mxu1 %v740_v27  ;;  %675 = vmatprep.subr.bf16.mxu0 %v741_v28 }
  0x28   : > { %697 = vmatprep.subr.bf16.mxu1 %v742_v29 }
  0x2a   : > { %676 = vmatpush3.bf16.msra.mxu0 %v743_v30 }
  0x2b   : > { %698 = vmatpush3.bf16.msra.mxu1 %v744_v31 }
  0x2d   : > { %498 = vmatmul.mubr.bf16.vlgmr.msra.gmra.mxu0 %v745_v32 }
  0x2e   : > { %539 = vmatmul.mubr.bf16.vlgmr.msra.gmra.mxu1 %v748_v34 }
  0xed   : > { %v677_v36 = vpop.f32.mrf.mxu0 }
  0xee   : > { %v699_v37 = vpop.f32.mrf.mxu1 }
  0xef   : > { %v678_v39 = vpop.f32.mrf.mxu0 }
  0xf0   : > { %v679_v40 = vadd.f32 %v678_v39, %v677_v36  ;;  %v700_v41 = vpop.f32.mrf.mxu1 }
  0xf1   : > { %v680_v42 = vpop.f32.mrf.mxu0  ;;  %v701_v44 = vadd.f32 %v700_v41, %v699_v37 }
  0xf2   : > { %v500_v43 = vadd.f32 %v679_v40, %v621_v38  ;;  %v702_v45 = vpop.f32.mrf.mxu1 }
  0xf3   : > { %v681_v46 = vpop.f32.mrf.mxu0 }
  0xf4   : > { %v541_v47 = vadd.f32 %v701_v44, %v500_v43  ;;  %v682_v48 = vadd.f32 %v681_v46, %v680_v42  ;;  %v703_v49 = vpop.f32.mrf.mxu1 }
  0xf5   : > { %v704_v52 = vadd.f32 %v703_v49, %v702_v45 }
  0xf6   : > { %vm547_vm0 = vcmp.ge.f32.partialorder %v541_v47, 0.0  ;;  %v549_v50 = vmul.f32 0.2, %v541_v47  ;;  %v503_v51 = vadd.f32 %v682_v48, %v621_v38 }
  0xf8   : > { %v551_v53 = vsel %vm547_vm0, %v541_v47, %v549_v50  ;;  %v544_v54 = vadd.f32 %v704_v52, %v503_v51 }
  0xf9   : > { %553 = vst [vmem:[%s175_s10] sm:$0xff] %v551_v53 }
  0xfa   : > { %vm548_vm1 = vcmp.ge.f32.partialorder %v544_v54, 0.0  ;;  %v550_v55 = vmul.f32 0.2, %v544_v54 }
  0xfc   : > { %v552_v56 = vsel %vm548_vm1, %v544_v54, %v550_v55 }
  0xfd   : > { %554 = vst [vmem:[%s175_s10 + $0x8] sm:$0xff] %v552_v56 }
  0xfe PF: > { %s13_s12 = sadd.s32 1, %s757_s12  }
  0xff   : > { %p10_p4 = scmp.ge.s32.totalorder %s13_s12, 4  }
 0x101   :  { %12 = sbr.rel (!%p10_p4) target bundleno = 1 (0x1), region = 62 }

// kernel: discriminator_forward.9
= control target key start
LH: loop header
LB: loop body
LE: loop exit
PB: predicated region body
PF: predicated region fallthrough
CT: control target
= control target key end

     0   :  { %10 = vsyncpa [#allocation5], 0  ;;  %v1003_v26 = vmov 1983009808   ;;  %v31_v28 = vlaneseq  ;;  %vm69_vm0 = vcmask 1041408   ;;  %s1540_s0 = inlined_call_operand.vmem [shape: f32[2,1024], index: 0, kind: input, shape index: {}]   ;;  %s1541_s1 = inlined_call_operand.vmem [shape: f32[1024,1], index: 1, kind: input, shape index: {}]   ;;  %s1542_s2 = inlined_call_operand.hbm [shape: f32[1,1024], index: 2, kind: output, shape index: {0}]   ;;  %s1543_s3 = inlined_call_operand.hbm [shape: f32[1,1024], index: 3, kind: output, shape index: {1}]   ;;  %s1544_s4 = inlined_call_operand.vmem [shape: f32[2,1], index: 4, kind: output, shape index: {2}]  }
   0x1   :  { %v380_v0 = vld [vmem:[%s1541_s1 + $0xf8] sm:$0xff]  ;;  %v379_v4 = vld [vmem:[%s1541_s1 + $0xf0] sm:$0xff]  ;;  %v378_v8 = vld [vmem:[%s1541_s1 + $0xe8] sm:$0xff]  ;;  %v29_v27 = vunpack.c.l.s4 %v1003_v26 }
   0x2   :  { %v412_v1 = vld [vmem:[%s1541_s1 + $0x1f8] sm:$0xff]  ;;  %809 = vmatprep.subr.mxu0 %v380_v0  ;;  %v411_v5 = vld [vmem:[%s1541_s1 + $0x1f0] sm:$0xff]  ;;  %v410_v9 = vld [vmem:[%s1541_s1 + $0x1e8] sm:$0xff]  ;;  %v1134_v38 = vshrl.u32 %v31_v28, 7 }
   0x3   :  { %v364_v2 = vld [vmem:[%s1541_s1 + $0x78] sm:$0xff]  ;;  %844 = vmatprep.subr.mxu1 %v412_v1  ;;  %v363_v6 = vld [vmem:[%s1541_s1 + $0x70] sm:$0xff]  ;;  %v362_v10 = vld [vmem:[%s1541_s1 + $0x68] sm:$0xff]  ;;  %v30_v37 = vunpack.c.0.s8 %v29_v27 }
   0x4   :  { %v396_v3 = vld [vmem:[%s1541_s1 + $0x178] sm:$0xff]  ;;  %810 = vmatpush3.msra.mxu0 %v364_v2  ;;  %v395_v7 = vld [vmem:[%s1541_s1 + $0x170] sm:$0xff]  ;;  %v394_v11 = vld [vmem:[%s1541_s1 + $0x168] sm:$0xff] }
   0x5   :  { %845 = vmatpush3.msra.mxu1 %v396_v3  ;;  %811 = vmatprep.subr.mxu0 %v379_v4  ;;  %v377_v12 = vld [vmem:[%s1541_s1 + $0xe0] sm:$0xff]  ;;  %v376_v16 = vld [vmem:[%s1541_s1 + $0xd8] sm:$0xff]  ;;  %v375_v20 = vld [vmem:[%s1541_s1 + $0xd0] sm:$0xff]  ;;  %v1161_v47 = vsub.s32 %v30_v37, %v1134_v38 }
   0x6   :  { %846 = vmatprep.subr.mxu1 %v411_v5  ;;  %812 = vmatpush3.msra.mxu0 %v363_v6  ;;  %v409_v13 = vld [vmem:[%s1541_s1 + $0x1e0] sm:$0xff]  ;;  %v408_v17 = vld [vmem:[%s1541_s1 + $0x1d8] sm:$0xff]  ;;  %v407_v21 = vld [vmem:[%s1541_s1 + $0x1d0] sm:$0xff] }
   0x7   :  { %847 = vmatpush3.msra.mxu1 %v395_v7  ;;  %813 = vmatprep.subr.mxu0 %v378_v8  ;;  %v361_v14 = vld [vmem:[%s1541_s1 + $0x60] sm:$0xff]  ;;  %v360_v18 = vld [vmem:[%s1541_s1 + $0x58] sm:$0xff]  ;;  %v359_v22 = vld [vmem:[%s1541_s1 + $0x50] sm:$0xff] }
   0x8   :  { %848 = vmatprep.subr.mxu1 %v410_v9  ;;  %v393_v15 = vld [vmem:[%s1541_s1 + $0x160] sm:$0xff]  ;;  %814 = vmatpush3.msra.mxu0 %v362_v10  ;;  %v392_v19 = vld [vmem:[%s1541_s1 + $0x158] sm:$0xff]  ;;  %v391_v23 = vld [vmem:[%s1541_s1 + $0x150] sm:$0xff] }
   0x9   :  { %849 = vmatpush3.msra.mxu1 %v394_v11  ;;  %815 = vmatprep.subr.mxu0 %v377_v12  ;;  %v374_v24 = vld [vmem:[%s1541_s1 + $0xc8] sm:$0xff]  ;;  %v373_v31 = vld [vmem:[%s1541_s1 + $0xc0] sm:$0xff]  ;;  %v372_v35 = vld [vmem:[%s1541_s1 + $0xb8] sm:$0xff] }
   0xa   :  { %850 = vmatprep.subr.mxu1 %v409_v13  ;;  %816 = vmatpush3.msra.mxu0 %v361_v14  ;;  %v406_v25 = vld [vmem:[%s1541_s1 + $0x1c8] sm:$0xff]  ;;  %v405_v32 = vld [vmem:[%s1541_s1 + $0x1c0] sm:$0xff]  ;;  %v404_v36 = vld [vmem:[%s1541_s1 + $0x1b8] sm:$0xff] }
   0xb   :  { %851 = vmatpush3.msra.mxu1 %v393_v15  ;;  %817 = vmatprep.subr.mxu0 %v376_v16  ;;  %v358_v29 = vld [vmem:[%s1541_s1 + $0x48] sm:$0xff]  ;;  %v357_v33 = vld [vmem:[%s1541_s1 + $0x40] sm:$0xff]  ;;  %v356_v39 = vld [vmem:[%s1541_s1 + $0x38] sm:$0xff] }
   0xc   :  { %852 = vmatprep.subr.mxu1 %v408_v17  ;;  %818 = vmatpush3.msra.mxu0 %v360_v18  ;;  %v390_v30 = vld [vmem:[%s1541_s1 + $0x148] sm:$0xff]  ;;  %v389_v34 = vld [vmem:[%s1541_s1 + $0x140] sm:$0xff]  ;;  %v388_v40 = vld [vmem:[%s1541_s1 + $0x138] sm:$0xff] }
   0xd   :  { %853 = vmatpush3.msra.mxu1 %v392_v19  ;;  %819 = vmatprep.subr.mxu0 %v375_v20  ;;  %v371_v41 = vld [vmem:[%s1541_s1 + $0xb0] sm:$0xff]  ;;  %v370_v45 = vld [vmem:[%s1541_s1 + $0xa8] sm:$0xff]  ;;  %v369_v50 = vld [vmem:[%s1541_s1 + $0xa0] sm:$0xff] }
   0xe   :  { %854 = vmatprep.subr.mxu1 %v407_v21  ;;  %820 = vmatpush3.msra.mxu0 %v359_v22  ;;  %v403_v42 = vld [vmem:[%s1541_s1 + $0x1b0] sm:$0xff]  ;;  %v402_v46 = vld [vmem:[%s1541_s1 + $0x1a8] sm:$0xff]  ;;  %v401_v51 = vld [vmem:[%s1541_s1 + $0x1a0] sm:$0xff] }
   0xf   :  { %855 = vmatpush3.msra.mxu1 %v391_v23  ;;  %821 = vmatprep.subr.mxu0 %v374_v24  ;;  %v355_v43 = vld [vmem:[%s1541_s1 + $0x30] sm:$0xff]  ;;  %v354_v48 = vld [vmem:[%s1541_s1 + $0x28] sm:$0xff]  ;;  %v353_v52 = vld [vmem:[%s1541_s1 + $0x20] sm:$0xff] }
  0x10   :  { %856 = vmatprep.subr.mxu1 %v406_v25  ;;  %822 = vmatpush3.msra.mxu0 %v358_v29  ;;  %v387_v44 = vld [vmem:[%s1541_s1 + $0x130] sm:$0xff]  ;;  %v386_v49 = vld [vmem:[%s1541_s1 + $0x128] sm:$0xff]  ;;  %v385_v53 = vld [vmem:[%s1541_s1 + $0x120] sm:$0xff] }
  0x11   :  { %857 = vmatpush3.msra.mxu1 %v390_v30  ;;  %823 = vmatprep.subr.mxu0 %v373_v31  ;;  %v22_v54 = vld [vmem:[%s1540_s0] sm:$0xff]  ;;  %v368_v55 = vld [vmem:[%s1541_s1 + $0x98] sm:$0xff]  ;;  %v367_v62 = vld [vmem:[%s1541_s1 + $0x90] sm:$0xff] }
  0x12   :  { %858 = vmatprep.subr.mxu1 %v405_v32  ;;  %824 = vmatpush3.msra.mxu0 %v357_v33  ;;  %v400_v56 = vld [vmem:[%s1541_s1 + $0x198] sm:$0xff]  ;;  %v1191_v57 = vrot.slane %v22_v54, %v1161_v47  ;;  %v187_v58 = vmul.f32 %v22_v54, %v22_v54  ;;  %v27_v59 = vcombine.high %v22_v54, %v22_v54  ;;  %v399_v63 = vld [vmem:[%s1541_s1 + $0x190] sm:$0xff]  ;;  %v366_v8 = vld [vmem:[%s1541_s1 + $0x88] sm:$0xff] }
  0x13   :  { %859 = vmatpush3.msra.mxu1 %v389_v34  ;;  %825 = vmatprep.subr.mxu0 %v372_v35  ;;  %v352_v60 = vld [vmem:[%s1541_s1 + $0x18] sm:$0xff]  ;;  %v351_v4 = vld [vmem:[%s1541_s1 + $0x10] sm:$0xff]  ;;  %v398_v9 = vld [vmem:[%s1541_s1 + $0x188] sm:$0xff] }
  0x14   :  { %860 = vmatprep.subr.mxu1 %v404_v36  ;;  %826 = vmatpush3.msra.mxu0 %v356_v39  ;;  %v384_v61 = vld [vmem:[%s1541_s1 + $0x118] sm:$0xff]  ;;  %v42_v0 = vcombine.high %v1191_v57, %v1191_v57  ;;  %v70_v1 = vsel %vm69_vm0, %v1191_v57, 0.0  ;;  %v191_v2 = vcombine.high %v187_v58, %v187_v58  ;;  %v1210_v3 = vrot.slane %v187_v58, %v1161_v47  ;;  %v383_v5 = vld [vmem:[%s1541_s1 + $0x110] sm:$0xff]  ;;  %v350_v12 = vld [vmem:[%s1541_s1 + $0x8] sm:$0xff] }
  0x15   :  { %861 = vmatpush3.msra.mxu1 %v388_v40  ;;  %827 = vmatprep.subr.mxu0 %v371_v41  ;;  %v71_v6 = vrot.slane %v70_v1, 4  ;;  %v41_v7 = vrot.slane %v27_v59, %v1161_v47  ;;  %v382_v13 = vld [vmem:[%s1541_s1 + $0x108] sm:$0xff]  ;;  %v365_v16 = vld [vmem:[%s1541_s1 + $0x80] sm:$0xff]  ;;  %v444_v30 = vld [vmem:[%s1541_s1 + $0x2f8] sm:$0xff] }
  0x16   :  { %862 = vmatprep.subr.mxu1 %v403_v42  ;;  %828 = vmatpush3.msra.mxu0 %v355_v43  ;;  %v77_v10 = vsel %vm69_vm0, %v42_v0, 0.0  ;;  %v1227_v11 = vrot.slane %v191_v2, %v1161_v47  ;;  %v397_v17 = vld [vmem:[%s1541_s1 + $0x180] sm:$0xff]  ;;  %v476_v31 = vld [vmem:[%s1541_s1 + $0x3f8] sm:$0xff]  ;;  %v443_v39 = vld [vmem:[%s1541_s1 + $0x2f0] sm:$0xff] }
  0x17   :  { %863 = vmatpush3.msra.mxu1 %v387_v44  ;;  %829 = vmatprep.subr.mxu0 %v370_v45  ;;  %v72_v14 = vadd.f32 %v71_v6, %v70_v1  ;;  %v78_v15 = vrot.slane %v77_v10, 4  ;;  %v43_v18 = vcombine.high %v41_v7, %v41_v7  ;;  %v84_v19 = vsel %vm69_vm0, %v41_v7, 0.0  ;;  %v349_v20 = vld [vmem:[%s1541_s1] sm:$0xff]  ;;  %v428_v34 = vld [vmem:[%s1541_s1 + $0x278] sm:$0xff]  ;;  %v475_v40 = vld [vmem:[%s1541_s1 + $0x3f0] sm:$0xff] }
  0x18   :  { %864 = vmatprep.subr.mxu1 %v402_v46  ;;  %830 = vmatpush3.msra.mxu0 %v354_v48  ;;  %v381_v23 = vld [vmem:[%s1541_s1 + $0x100] sm:$0xff]  ;;  %v85_v24 = vrot.slane %v84_v19, 4  ;;  %v460_v35 = vld [vmem:[%s1541_s1 + $0x378] sm:$0xff]  ;;  %v427_v43 = vld [vmem:[%s1541_s1 + $0x270] sm:$0xff] }
  0x19   :  { %865 = vmatpush3.msra.mxu1 %v386_v49  ;;  %831 = vmatprep.subr.mxu0 %v369_v50  ;;  %v73_v21 = vrot.slane %v72_v14, 2  ;;  %v79_v22 = vadd.f32 %v78_v15, %v77_v10  ;;  %v91_v25 = vsel %vm69_vm0, %v43_v18, 0.0  ;;  %v459_v44 = vld [vmem:[%s1541_s1 + $0x370] sm:$0xff]  ;;  %v442_v48 = vld [vmem:[%s1541_s1 + $0x2e8] sm:$0xff]  ;;  %v425_v58 = vld [vmem:[%s1541_s1 + $0x260] sm:$0xff] }
  0x1a   :  { %866 = vmatprep.subr.mxu1 %v401_v51  ;;  %832 = vmatpush3.msra.mxu0 %v353_v52  ;;  %v86_v28 = vadd.f32 %v85_v24, %v84_v19  ;;  %v92_v29 = vrot.slane %v91_v25, 4  ;;  %v474_v49 = vld [vmem:[%s1541_s1 + $0x3e8] sm:$0xff]  ;;  %v457_v59 = vld [vmem:[%s1541_s1 + $0x360] sm:$0xff]  ;;  %v456_v1 = vld [vmem:[%s1541_s1 + $0x358] sm:$0xff] }
  0x1b   :  { %867 = vmatpush3.msra.mxu1 %v385_v53  ;;  %833 = vmatprep.subr.mxu0 %v368_v55  ;;  %v74_v26 = vadd.f32 %v73_v21, %v72_v14  ;;  %v80_v27 = vrot.slane %v79_v22, 2  ;;  %v426_v51 = vld [vmem:[%s1541_s1 + $0x268] sm:$0xff]  ;;  %v441_v55 = vld [vmem:[%s1541_s1 + $0x2e0] sm:$0xff]  ;;  %v423_v6 = vld [vmem:[%s1541_s1 + $0x250] sm:$0xff] }
  0x1c   :  { %868 = vmatprep.subr.mxu1 %v400_v56  ;;  %834 = vmatpush3.msra.mxu0 %v352_v60  ;;  %v87_v36 = vrot.slane %v86_v28, 2  ;;  %v93_v37 = vadd.f32 %v92_v29, %v91_v25  ;;  %v458_v52 = vld [vmem:[%s1541_s1 + $0x368] sm:$0xff]  ;;  %v473_v56 = vld [vmem:[%s1541_s1 + $0x3e0] sm:$0xff] }
  0x1d   :  { %869 = vmatpush3.msra.mxu1 %v384_v61  ;;  %835 = vmatprep.subr.mxu0 %v367_v62  ;;  %v75_v32 = vrot.slane %v74_v26, 1  ;;  %v81_v33 = vadd.f32 %v80_v27, %v79_v22  ;;  %v440_v62 = vld [vmem:[%s1541_s1 + $0x2d8] sm:$0xff] }
  0x1e   :  { %870 = vmatprep.subr.mxu1 %v399_v63  ;;  %836 = vmatpush3.msra.mxu0 %v351_v4  ;;  %v88_v45 = vadd.f32 %v87_v36, %v86_v28  ;;  %v94_v46 = vrot.slane %v93_v37, 2  ;;  %v472_v63 = vld [vmem:[%s1541_s1 + $0x3d8] sm:$0xff]  ;;  %v439_v4 = vld [vmem:[%s1541_s1 + $0x2d0] sm:$0xff] }
  0x1f   :  { %871 = vmatpush3.msra.mxu1 %v383_v5  ;;  %837 = vmatprep.subr.mxu0 %v366_v8  ;;  %v1268_v41 = vadd.f32 %v75_v32, %v74_v26  ;;  %v82_v42 = vrot.slane %v81_v33, 1  ;;  %v471_v5 = vld [vmem:[%s1541_s1 + $0x3d0] sm:$0xff]  ;;  %v23_v8 = vld [vmem:[%s1540_s0 + $0x8] sm:$0xff] }
  0x20   :  { %872 = vmatprep.subr.mxu1 %v398_v9  ;;  %838 = vmatpush3.msra.mxu0 %v350_v12  ;;  %v89_v53 = vrot.slane %v88_v45, 1  ;;  %v95_v54 = vadd.f32 %v94_v46, %v93_v37 }
  0x21   :  { %873 = vmatpush3.msra.mxu1 %v382_v13  ;;  %839 = vmatprep.subr.mxu0 %v365_v16  ;;  %v1282_v50 = vadd.f32 %v82_v42, %v81_v33 }
  0x22   :  { %874 = vmatprep.subr.mxu1 %v397_v17  ;;  %840 = vmatpush3.msra.mxu0 %v349_v20  ;;  %v1304_v60 = vadd.f32 %v89_v53, %v88_v45  ;;  %v96_v61 = vrot.slane %v95_v54, 1 }
  0x23   :  { %541 = vmatprep.mubr.f32.mxu0 %v42_v0  ;;  %875 = vmatpush3.msra.mxu1 %v381_v23  ;;  %v424_v0 = vld [vmem:[%s1541_s1 + $0x258] sm:$0xff] }
  0x24   :  { %611 = vmatprep.mubr.f32.mxu1 %v43_v18  ;;  %542 = vmatmul.mubr.f32.vlgmr.msra.gmra.mxu0 %v1191_v57  ;;  %v134_v57 = vcombine.low %v1268_v41, %v1282_v50  ;;  %v1318_v2 = vadd.f32 %v96_v61, %v95_v54 }
  0x25   :  { %612 = vmatmul.mubr.f32.vlgmr.msra.gmra.mxu1 %v41_v7  ;;  %879 = vmatprep.subr.mxu0 %v444_v30  ;;  %v455_v7 = vld [vmem:[%s1541_s1 + $0x350] sm:$0xff] }
  0x26   :  { %914 = vmatprep.subr.mxu1 %v476_v31  ;;  %880 = vmatpush3.msra.mxu0 %v428_v34 }
  0x27   :  { %915 = vmatpush3.msra.mxu1 %v460_v35  ;;  %881 = vmatprep.subr.mxu0 %v443_v39 }
  0x28   :  { %916 = vmatprep.subr.mxu1 %v475_v40  ;;  %882 = vmatpush3.msra.mxu0 %v427_v43 }
  0x29   :  { %917 = vmatpush3.msra.mxu1 %v459_v44  ;;  %883 = vmatprep.subr.mxu0 %v442_v48 }
  0x2a   :  { %918 = vmatprep.subr.mxu1 %v474_v49  ;;  %884 = vmatpush3.msra.mxu0 %v426_v51 }
  0x2b   :  { %919 = vmatpush3.msra.mxu1 %v458_v52  ;;  %885 = vmatprep.subr.mxu0 %v441_v55 }
  0x2c   :  { %920 = vmatprep.subr.mxu1 %v473_v56  ;;  %886 = vmatpush3.msra.mxu0 %v425_v58 }
  0x2d   :  { %921 = vmatpush3.msra.mxu1 %v457_v59  ;;  %887 = vmatprep.subr.mxu0 %v440_v62 }
  0x2e   :  { %922 = vmatprep.subr.mxu1 %v472_v63 }
  0x2f   :  { %11 = vsyncpa [#allocation7], 0  ;;  %v135_v9 = vcombine.low %v1304_v60, %v1318_v2  ;;  %888 = vmatpush3.msra.mxu0 %v424_v0  ;;  %923 = vmatpush3.msra.mxu1 %v456_v1  ;;  %v438_v10 = vld [vmem:[%s1541_s1 + $0x2c8] sm:$0xff]  ;;  %v1344_v13 = vrot.slane %v23_v8, %v1161_v47  ;;  %v188_v14 = vmul.f32 %v23_v8, %v23_v8  ;;  %v437_v18 = vld [vmem:[%s1541_s1 + $0x2c0] sm:$0xff]  ;;  %s1006_s13 = smov [#allocation6]  }
  0x30   :  { %v470_v12 = vld [vmem:[%s1541_s1 + $0x3c8] sm:$0xff]  ;;  %889 = vmatprep.subr.mxu0 %v439_v4  ;;  %924 = vmatprep.subr.mxu1 %v471_v5  ;;  %v44_v17 = vcombine.high %v23_v8, %v23_v8  ;;  %v469_v19 = vld [vmem:[%s1541_s1 + $0x3c0] sm:$0xff]  ;;  %v436_v28 = vld [vmem:[%s1541_s1 + $0x2b8] sm:$0xff]  ;;  %s792_s14 = sshll.u32 %s1006_s13, 4  ;;  %s793_s14 = int_to_ptr.vmem [resolvable:$true] %s792_s14 }
  0x31   :  { %v422_v15 = vld [vmem:[%s1541_s1 + $0x248] sm:$0xff]  ;;  %890 = vmatpush3.msra.mxu0 %v423_v6  ;;  %925 = vmatpush3.msra.mxu1 %v455_v7  ;;  %v1360_v20 = vcombine.high %v1344_v13, %v1344_v13  ;;  %v98_v21 = vsel %vm69_vm0, %v1344_v13, 0.0  ;;  %v208_v22 = vcombine.high %v188_v14, %v188_v14  ;;  %v1365_v23 = vrot.slane %v188_v14, %v1161_v47  ;;  %v421_v24 = vld [vmem:[%s1541_s1 + $0x240] sm:$0xff]  ;;  %v468_v29 = vld [vmem:[%s1541_s1 + $0x3b8] sm:$0xff] }
  0x32   :  { %v454_v16 = vld [vmem:[%s1541_s1 + $0x348] sm:$0xff]  ;;  %891 = vmatprep.subr.mxu0 %v438_v10  ;;  %926 = vmatprep.subr.mxu1 %v470_v12  ;;  %v453_v25 = vld [vmem:[%s1541_s1 + $0x340] sm:$0xff]  ;;  %v99_v26 = vrot.slane %v98_v21, 4  ;;  %v1374_v27 = vrot.slane %v44_v17, %v1161_v47  ;;  %v420_v32 = vld [vmem:[%s1541_s1 + $0x238] sm:$0xff] }
  0x33   :  { %892 = vmatpush3.msra.mxu0 %v422_v15  ;;  %927 = vmatpush3.msra.mxu1 %v454_v16  ;;  %v105_v30 = vsel %vm69_vm0, %v1360_v20, 0.0  ;;  %v1385_v31 = vrot.slane %v208_v22, %v1161_v47  ;;  %v452_v33 = vld [vmem:[%s1541_s1 + $0x338] sm:$0xff]  ;;  %v435_v36 = vld [vmem:[%s1541_s1 + $0x2b0] sm:$0xff]  ;;  %v434_v45 = vld [vmem:[%s1541_s1 + $0x2a8] sm:$0xff] }
  0x34   :  { %893 = vmatprep.subr.mxu0 %v437_v18  ;;  %928 = vmatprep.subr.mxu1 %v469_v19  ;;  %v100_v34 = vadd.f32 %v99_v26, %v98_v21  ;;  %v106_v35 = vrot.slane %v105_v30, 4  ;;  %v467_v47 = vld [vmem:[%s1541_s1 + $0x3b0] sm:$0xff]  ;;  %v1401_v37 = vcombine.high %v1374_v27, %v1374_v27  ;;  %v112_v39 = vsel %vm69_vm0, %v1374_v27, 0.0  ;;  %v466_v46 = vld [vmem:[%s1541_s1 + $0x3a8] sm:$0xff]  ;;  %v433_v56 = vld [vmem:[%s1541_s1 + $0x2a0] sm:$0xff] }
  0x35   :  { %894 = vmatpush3.msra.mxu0 %v421_v24  ;;  %929 = vmatpush3.msra.mxu1 %v453_v25  ;;  %v419_v40 = vld [vmem:[%s1541_s1 + $0x230] sm:$0xff]  ;;  %v113_v48 = vrot.slane %v112_v39, 4  ;;  %v418_v51 = vld [vmem:[%s1541_s1 + $0x228] sm:$0xff]  ;;  %v465_v58 = vld [vmem:[%s1541_s1 + $0x3a0] sm:$0xff] }
  0x36   :  { %895 = vmatprep.subr.mxu0 %v436_v28  ;;  %930 = vmatprep.subr.mxu1 %v468_v29  ;;  %v451_v42 = vld [vmem:[%s1541_s1 + $0x330] sm:$0xff]  ;;  %v101_v43 = vrot.slane %v100_v34, 2  ;;  %v107_v44 = vadd.f32 %v106_v35, %v105_v30  ;;  %v119_v49 = vsel %vm69_vm0, %v1401_v37, 0.0  ;;  %v450_v52 = vld [vmem:[%s1541_s1 + $0x328] sm:$0xff]  ;;  %v417_v61 = vld [vmem:[%s1541_s1 + $0x220] sm:$0xff] }
  0x37   :  { %896 = vmatpush3.msra.mxu0 %v420_v32  ;;  %931 = vmatpush3.msra.mxu1 %v452_v33  ;;  %v120_v55 = vrot.slane %v119_v49, 4  ;;  %v114_v59 = vadd.f32 %v113_v48, %v112_v39  ;;  %v449_v62 = vld [vmem:[%s1541_s1 + $0x320] sm:$0xff]  ;;  %v432_v4 = vld [vmem:[%s1541_s1 + $0x298] sm:$0xff]  ;;  %v431_v15 = vld [vmem:[%s1541_s1 + $0x290] sm:$0xff] }
  0x38   :  { %897 = vmatprep.subr.mxu0 %v435_v36  ;;  %932 = vmatprep.subr.mxu1 %v467_v47  ;;  %v102_v53 = vadd.f32 %v101_v43, %v100_v34  ;;  %v108_v54 = vrot.slane %v107_v44, 2  ;;  %v464_v5 = vld [vmem:[%s1541_s1 + $0x398] sm:$0xff]  ;;  %v463_v16 = vld [vmem:[%s1541_s1 + $0x390] sm:$0xff]  ;;  %v430_v24 = vld [vmem:[%s1541_s1 + $0x288] sm:$0xff]  ;;  %v233_v43 = vsel %vm69_vm0, %v1210_v3, 0.0 }
  0x39   :  { %898 = vmatpush3.msra.mxu0 %v419_v40  ;;  %933 = vmatpush3.msra.mxu1 %v451_v42  ;;  %v121_v1 = vadd.f32 %v120_v55, %v119_v49  ;;  %v115_v6 = vrot.slane %v114_v59, 2  ;;  %v416_v7 = vld [vmem:[%s1541_s1 + $0x218] sm:$0xff]  ;;  %v415_v18 = vld [vmem:[%s1541_s1 + $0x210] sm:$0xff]  ;;  %v462_v25 = vld [vmem:[%s1541_s1 + $0x388] sm:$0xff]  ;;  %v206_v42 = vcombine.high %v1210_v3, %v1210_v3  ;;  %v224_v3 = vcombine.high %v1385_v31, %v1385_v31 }
  0x3a   :  { %899 = vmatprep.subr.mxu0 %v434_v45  ;;  %934 = vmatprep.subr.mxu1 %v466_v46  ;;  %v103_v63 = vrot.slane %v102_v53, 1  ;;  %v109_v0 = vadd.f32 %v108_v54, %v107_v44  ;;  %v448_v8 = vld [vmem:[%s1541_s1 + $0x318] sm:$0xff]  ;;  %v447_v19 = vld [vmem:[%s1541_s1 + $0x310] sm:$0xff]  ;;  %v414_v28 = vld [vmem:[%s1541_s1 + $0x208] sm:$0xff]  ;;  %v207_v44 = vcombine.high %v1227_v11, %v1227_v11  ;;  %v223_v45 = vcombine.high %v1365_v23, %v1365_v23 }
  0x3b   :  { %900 = vmatpush3.msra.mxu0 %v418_v51  ;;  %935 = vmatpush3.msra.mxu1 %v450_v52  ;;  %v122_v14 = vrot.slane %v121_v1, 2  ;;  %v116_v17 = vadd.f32 %v115_v6, %v114_v59  ;;  %v446_v29 = vld [vmem:[%s1541_s1 + $0x308] sm:$0xff]  ;;  %v429_v33 = vld [vmem:[%s1541_s1 + $0x280] sm:$0xff]  ;;  %v240_v46 = vsel %vm69_vm0, %v206_v42, 0.0  ;;  %v275_v52 = vsel %vm69_vm0, %v1385_v31, 0.0 }
  0x3c   :  { %901 = vmatprep.subr.mxu0 %v433_v56  ;;  %936 = vmatprep.subr.mxu1 %v465_v58  ;;  %v1449_v10 = vadd.f32 %v103_v63, %v102_v53  ;;  %v110_v12 = vrot.slane %v109_v0, 1  ;;  %v461_v34 = vld [vmem:[%s1541_s1 + $0x380] sm:$0xff]  ;;  %v254_v49 = vsel %vm69_vm0, %v207_v44, 0.0  ;;  %v268_v51 = vsel %vm69_vm0, %v223_v45, 0.0 }
  0x3d   :  { %902 = vmatpush3.msra.mxu0 %v417_v61  ;;  %937 = vmatpush3.msra.mxu1 %v449_v62  ;;  %v123_v22 = vadd.f32 %v122_v14, %v121_v1  ;;  %v117_v26 = vrot.slane %v116_v17, 1  ;;  %v413_v36 = vld [vmem:[%s1541_s1 + $0x200] sm:$0xff]  ;;  %v241_v53 = vrot.slane %v240_v46, 4  ;;  %v269_v58 = vrot.slane %v268_v51, 4 }
  0x3e   :  { %903 = vmatprep.subr.mxu0 %v432_v4  ;;  %938 = vmatprep.subr.mxu1 %v464_v5  ;;  %v1463_v21 = vadd.f32 %v110_v12, %v109_v0  ;;  %v445_v39 = vld [vmem:[%s1541_s1 + $0x300] sm:$0xff]  ;;  %v276_v59 = vrot.slane %v275_v52, 4  ;;  %v282_v61 = vsel %vm69_vm0, %v224_v3, 0.0  ;;  %s1005_s1 = smov [#allocation4]  }
  0x3f   :  { %904 = vmatpush3.msra.mxu0 %v416_v7  ;;  %939 = vmatpush3.msra.mxu1 %v448_v8  ;;  %v124_v32 = vrot.slane %v123_v22, 1  ;;  %v1485_v35 = vadd.f32 %v117_v26, %v116_v17  ;;  %v242_v62 = vadd.f32 %v241_v53, %v240_v46  ;;  %v283_v1 = vrot.slane %v282_v61, 4  ;;  %s782_s12 = sshll.u32 %s1005_s1, 4  ;;  %s783_s12 = int_to_ptr.vmem [resolvable:$true] %s782_s12 }
  0x40   :  { %905 = vmatprep.subr.mxu0 %v431_v15  ;;  %940 = vmatprep.subr.mxu1 %v463_v16  ;;  %v136_v30 = vcombine.low %v1449_v10, %v1463_v21  ;;  %v270_v6 = vadd.f32 %v269_v58, %v268_v51  ;;  %v277_v7 = vadd.f32 %v276_v59, %v275_v52  ;;  %s959_s15 = scalar_lea.vmem %s783_s12, 128  ;;  %p964_p1 = scmp.lt.s32.totalorder %s783_s12, %s783_s12 }
  0x41   :  { %906 = vmatpush3.msra.mxu0 %v415_v18  ;;  %941 = vmatpush3.msra.mxu1 %v447_v19  ;;  %v1490_v47 = vadd.f32 %v124_v32, %v123_v22  ;;  %v284_v8 = vadd.f32 %v283_v1, %v282_v61  ;;  %v243_v12 = vrot.slane %v242_v62, 2  ;;  %p960_p0 = scmp.ne.s32.totalorder %s783_s12, %s959_s15  ;;  %p965_p2 = scmp.lt.s32.totalorder %s959_s15, %s959_s15 }
  0x42   :  { %907 = vmatprep.subr.mxu0 %v430_v24  ;;  %942 = vmatprep.subr.mxu1 %v462_v25  ;;  %v271_v17 = vrot.slane %v270_v6, 2  ;;  %v278_v18 = vrot.slane %v277_v7, 2 }
  0x43   :  { %908 = vmatpush3.msra.mxu0 %v414_v28  ;;  %943 = vmatpush3.msra.mxu1 %v446_v29  ;;  %v137_v40 = vcombine.low %v1485_v35, %v1490_v47  ;;  %v285_v19 = vrot.slane %v284_v8, 2  ;;  %v244_v24 = vadd.f32 %v243_v12, %v242_v62  ;;  %p966_p3 = por %p965_p2, %p964_p1 }
  0x44   :  { %909 = vmatprep.subr.mxu0 %v429_v33  ;;  %944 = vmatprep.subr.mxu1 %v461_v34  ;;  %v272_v29 = vadd.f32 %v271_v17, %v270_v6  ;;  %v279_v32 = vadd.f32 %v278_v18, %v277_v7 }
  0x45   :  { %910 = vmatpush3.msra.mxu0 %v413_v36  ;;  %681 = vmatprep.mubr.f32.mxu0 %v1360_v20  ;;  %v234_v20 = vrot.slane %v233_v43, 4  ;;  %v286_v33 = vadd.f32 %v285_v19, %v284_v8  ;;  %p967_p4 = pnand %p966_p3, %p960_p0 }
  0x46   :  { %945 = vmatpush3.msra.mxu1 %v445_v39  ;;  %751 = vmatprep.mubr.f32.mxu1 %v1401_v37  ;;  %v1004_v37 = vmov 1966171168   ;;  %v245_v39 = vrot.slane %v244_v24, 1  ;;  %v273_v46 = vrot.slane %v272_v29, 1 }
  0x47   :  { %682 = vmatmul.mubr.f32.vlgmr.msra.gmra.mxu0 %v1344_v13  ;;  %752 = vmatmul.mubr.f32.vlgmr.msra.gmra.mxu1 %v1374_v27  ;;  %v247_v13 = vsel %vm69_vm0, %v1227_v11, 0.0  ;;  %v261_v27 = vsel %vm69_vm0, %v1365_v23, 0.0  ;;  %v139_v48 = vunpack.c.l.s4 %v1004_v37  ;;  %v235_v56 = vadd.f32 %v234_v20, %v233_v43 }
  0x48   :  { %v248_v54 = vrot.slane %v247_v13, 4  ;;  %v262_v55 = vrot.slane %v261_v27, 4  ;;  %v255_v11 = vrot.slane %v254_v49, 4  ;;  %v246_v41 = vadd.f32 %v245_v39, %v244_v24 }
  0x49   :  { %v140_v23 = vunpack.c.0.s8 %v139_v48  ;;  %v236_v4 = vrot.slane %v235_v56, 2  ;;  %v280_v37 = vrot.slane %v279_v32, 1  ;;  %v287_v10 = vrot.slane %v286_v33, 1 }
  0x4a   :  { %v249_v63 = vadd.f32 %v248_v54, %v247_v13  ;;  %v263_v0 = vadd.f32 %v262_v55, %v261_v27  ;;  %v256_v5 = vadd.f32 %v255_v11, %v254_v49 }
  0x4b   :  { %v143_v31 = vsub.s32 %v140_v23, %v1134_v38  ;;  %v237_v22 = vadd.f32 %v236_v4, %v235_v56  ;;  %v281_v48 = vadd.f32 %v280_v37, %v279_v32  ;;  %v288_v49 = vadd.f32 %v287_v10, %v286_v33 }
  0x4c   :  { %v250_v14 = vrot.slane %v249_v63, 2  ;;  %v257_v15 = vrot.slane %v256_v5, 2  ;;  %v264_v16 = vrot.slane %v263_v0, 2 }
  0x4d   :  { %v144_v34 = vrot.slane %v134_v57, %v143_v31  ;;  %v151_v38 = vrot.slane %v135_v9, %v143_v31  ;;  %v158_v35 = vrot.slane %v136_v30, %v143_v31  ;;  %v165_v36 = vrot.slane %v137_v40, %v143_v31 }
  0x4e   :  { %v251_v25 = vadd.f32 %v250_v14, %v249_v63  ;;  %v258_v26 = vadd.f32 %v257_v15, %v256_v5  ;;  %v265_v28 = vadd.f32 %v264_v16, %v263_v0  ;;  %v238_v47 = vrot.slane %v237_v22, 1 }
  0x4f   :  { %v166_v44 = vcombine.low %v144_v34, %v151_v38  ;;  %v167_v45 = vcombine.low %v158_v35, %v165_v36  ;;  %v274_v9 = vadd.f32 %v273_v46, %v272_v29  ;;  %v300_v54 = vcombine.low %v281_v48, %v288_v49 }
  0x50   :  { %v252_v42 = vrot.slane %v251_v25, 1  ;;  %v259_v43 = vrot.slane %v258_v26, 1  ;;  %v266_v20 = vrot.slane %v265_v28, 1  ;;  %v239_v13 = vadd.f32 %v238_v47, %v237_v22 }
  0x51   :  { %v174_v57 = vrot.slane %v166_v44, %v143_v31  ;;  %v181_v27 = vrot.slane %v167_v45, %v143_v31  ;;  %v328_v11 = vrot.slane %v300_v54, %v143_v31 }
  0x52   :  { %v253_v50 = vadd.f32 %v252_v42, %v251_v25  ;;  %v260_v60 = vadd.f32 %v259_v43, %v258_v26  ;;  %v267_v2 = vadd.f32 %v266_v20, %v265_v28  ;;  %v297_v21 = vcombine.low %v239_v13, %v246_v41 }
  0x53   :  { %v182_v30 = vcombine.low %v174_v57, %v181_v27 }
  0x54   :  { %v298_v40 = vcombine.low %v253_v50, %v260_v60  ;;  %v299_v3 = vcombine.low %v267_v2, %v274_v9  ;;  %v307_v51 = vrot.slane %v297_v21, %v143_v31 }
  0x55   :  { %v769_v52 = vmul.f32 0.5, %v182_v30 }
  0x56   :  { %v314_v53 = vrot.slane %v298_v40, %v143_v31  ;;  %v321_v55 = vrot.slane %v299_v3, %v143_v31 }
  0x57   :  { %770 = vst [vmem:[#allocation4] sm:$0xff] %v769_v52  ;;  %v772_v58 = vmul.f32 2.0, %v769_v52 }
  0x58   :  { %v329_v56 = vcombine.low %v307_v51, %v314_v53  ;;  %v330_v23 = vcombine.low %v321_v55, %v328_v11 }
  0x59   :  { %v773_v62 = vmul.f32 %v772_v58, %v769_v52 }
  0x5a   :  { %v337_v59 = vrot.slane %v329_v56, %v143_v31  ;;  %v344_v61 = vrot.slane %v330_v23, %v143_v31 }
  0x5b   :  { %970 = shalt.err (!%p967_p4)
}
  0x5c   :  { %785 = dma.vmem_to_hbm [thread:$0]  %s783_s12, 128, %s1542_s2, [#allocation5]   ;;  %v345_v63 = vcombine.low %v337_v59, %v344_v61 }
  0x5d   :  { %s979_s17 = scalar_lea.vmem %s793_s14, 128  ;;  %p984_p6 = scmp.lt.s32.totalorder %s793_s14, %s793_s14 }
  0x5e   :  { %v774_v0 = vsub.f32 %v345_v63, %v773_v62  ;;  %p980_p5 = scmp.ne.s32.totalorder %s793_s14, %s979_s17  ;;  %p985_p7 = scmp.lt.s32.totalorder %s979_s17, %s979_s17 }
  0x60   :  { %775 = vst [vmem:[#allocation6] sm:$0xff] %v774_v0  ;;  %p986_p8 = por %p985_p7, %p984_p6 }
  0x62   :  { %p987_p9 = pnand %p986_p8, %p980_p5 }
  0x64   :  { %990 = shalt.err (!%p987_p9)
}
  0x65   :  { %795 = dma.vmem_to_hbm [thread:$0]  %s793_s14, 128, %s1543_s3, [#allocation7]   ;;  %vm763_vm1 = vcmask 1024  }
  0xe4   :  { %v841_v1 = vpop.f32.mrf.mxu0 }
  0xe5   :  { %v876_v4 = vpop.f32.mrf.mxu1 }
  0xe6   :  { %v842_v5 = vpop.f32.mrf.mxu0 }
  0xe7   :  { %v877_v6 = vpop.f32.mrf.mxu1  ;;  %v843_v7 = vadd.f32 %v842_v5, %v841_v1 }
  0xe8   :  { %v878_v8 = vadd.f32 %v877_v6, %v876_v4 }
  0xea   :  { %v614_v16 = vadd.f32 %v878_v8, %v843_v7 }
 0x107   :  { %v911_v31 = vpop.f32.mrf.mxu0  ;;  %v946_v12 = vpop.f32.mrf.mxu1 }
 0x109   :  { %v912_v14 = vpop.f32.mrf.mxu0  ;;  %v947_v15 = vpop.f32.mrf.mxu1 }
 0x10a   :  { %v913_v17 = vadd.f32 %v912_v14, %v911_v31  ;;  %v948_v19 = vadd.f32 %v947_v15, %v946_v12 }
 0x10c   :  { %v684_v18 = vadd.f32 %v913_v17, %v614_v16 }
 0x10e   :  { %v754_v22 = vadd.f32 %v948_v19, %v684_v18 }
 0x110   :  { %v808_v24 = vmul.f32 -1.442695, %v754_v22 }
 0x112   :  { %955 = vpow2.f32 %v808_v24 }
 0x11f   :  { %v956_v25 = vpop.eup %955 }
 0x120   :  { %v760_v26 = vadd.f32 1.0, %v956_v25 }
 0x122   :  { %957 = vrcp.f32 %v760_v26 }
 0x12f   :  { %v958_v28 = vpop.eup %957 }
 0x130   :  { %764 = vst.msk [vmem:[%s1544_s4] sm:$0x3] %vm763_vm1, %v958_v28 }
 0x131   :  { %999 = dma.done.wait [#allocation5], 128  }
 0x132   :  { %1000 = vsyncadd [#allocation5], 4294967168 }
 0x133   :  { %1001 = dma.done.wait [#allocation7], 128  }
 0x134   :  { %1002 = vsyncadd [#allocation7], 4294967168 }
 0x135   :  { %806 = vsyncpa [#allocation5], 1 }
 0x136   :  { %807 = vsyncpa [#allocation7], 1 }

</bundles_post_ra>
